<compile_context>
chip_gen: v5e
topology: v5e:2x2
jax: 0.10.0
libtpu: 0.0.40
codegen_flags: <defaults>
</compile_context>

<pallas_src>
import jax
import jax.numpy as jnp
from jax.experimental import pallas as pl
from jax.experimental.pallas import tpu as pltpu

NEG_SLOPE = 0.01    # F.leaky_relu default
HIDDEN = 32         # logical hidden size
F_PAD = 128         # lane-dense padded feature / hidden width
NODE_PAD = 128      # node counts padded to a multiple of this (lane-dense adjacency)
NUM_LAYERS = 3

EDGE_TYPES = (
    ("cdr3b", "binds_to", "tra_peptide"),
    ("cdr3b", "binds_to", "trb_peptide"),
    ("tra_peptide", "rev_binds_to", "cdr3b"),
    ("trb_peptide", "rev_binds_to", "cdr3b"),
)
NODE_TYPES = ("cdr3b", "tra_peptide", "trb_peptide")


def _round_up(n, m):
    return ((n + m - 1) // m) * m


# ------------------------------------------------------------------ fused kernel
def fused_hetero_gnn_kernel(
    xc_ref, xa_ref, xb_ref,                       # bf16 padded features (NP, 128)
    adj_c2a_ref, adj_c2b_ref,                     # bf16 row-normalized A[dst, src]
    adj_a2c_ref, adj_b2c_ref,
    wa_ref, wb_ref, wc_ref,                       # bf16 stacked weights (L,256/384,128)
    ba_ref, bb_ref, bc_ref,                       # f32 biases (L,1,128)
    oc_ref, oa_ref, ob_ref,                       # f32 outputs (NP, 128)
):
    num_layers = wa_ref.shape[0]

    def leaky(s):  # f32 elementwise
        return jnp.where(s > 0, s, NEG_SLOPE * s)

    xc = xc_ref[...]
    xa = xa_ref[...]
    xb = xb_ref[...]

    xc_f = xa_f = xb_f = None
    for l in range(num_layers):  # fully unrolled: tiny static trip count
        # ---- neighbor-mean aggregation: bf16 operands, f32 accumulation ----
        agg_ca = jnp.dot(adj_c2a_ref[...], xc, preferred_element_type=jnp.float32)
        agg_cb = jnp.dot(adj_c2b_ref[...], xc, preferred_element_type=jnp.float32)
        agg_ac = jnp.dot(adj_a2c_ref[...], xa, preferred_element_type=jnp.float32)
        agg_bc = jnp.dot(adj_b2c_ref[...], xb, preferred_element_type=jnp.float32)

        # ---- fused [msg | self] @ [[W_l], [W_r]] : one matmul per dst type ----
        lhs_a = jnp.concatenate([agg_ca.astype(jnp.bfloat16), xa], axis=-1)  # K=256
        lhs_b = jnp.concatenate([agg_cb.astype(jnp.bfloat16), xb], axis=-1)  # K=256
        lhs_c = jnp.concatenate(                                             # K=384
            [agg_ac.astype(jnp.bfloat16), agg_bc.astype(jnp.bfloat16), xc], axis=-1)

        na = jnp.dot(lhs_a, wa_ref[l], preferred_element_type=jnp.float32) + ba_ref[l]
        nb = jnp.dot(lhs_b, wb_ref[l], preferred_element_type=jnp.float32) + bb_ref[l]
        # HeteroConv aggr='sum' over the two cdr3b-targeting relations is folded
        # into wc (W_l2 | W_l3 | W_r2+W_r3) and bc = b2 + b3.
        nc = jnp.dot(lhs_c, wc_ref[l], preferred_element_type=jnp.float32) + bc_ref[l]

        xa_f, xb_f, xc_f = leaky(na), leaky(nb), leaky(nc)
        xa = xa_f.astype(jnp.bfloat16)
        xb = xb_f.astype(jnp.bfloat16)
        xc = xc_f.astype(jnp.bfloat16)

    oc_ref[...] = xc_f
    oa_ref[...] = xa_f
    ob_ref[...] = xb_f


# ------------------------------------------------------------------ wrapper
def _pad_features(x, n_pad):
    n, f = x.shape
    out = jnp.zeros((n_pad, F_PAD), jnp.float32).at[:n, :f].set(x)
    return out.astype(jnp.bfloat16)


def _pad_adj(a, nd_pad, ns_pad):
    nd, ns = a.shape
    out = jnp.zeros((nd_pad, ns_pad), jnp.float32).at[:nd, :ns].set(a)
    return out.astype(jnp.bfloat16)


def hetero_gnn_forward(x_dict, adj_dict, packed):
    wa, wb, wc, ba, bb, bc = packed

    n_of = {t: x_dict[t].shape[0] for t in NODE_TYPES}
    np_of = {t: _round_up(n_of[t], NODE_PAD) for t in NODE_TYPES}

    xc = _pad_features(x_dict["cdr3b"], np_of["cdr3b"])
    xa = _pad_features(x_dict["tra_peptide"], np_of["tra_peptide"])
    xb = _pad_features(x_dict["trb_peptide"], np_of["trb_peptide"])

    adj_c2a = _pad_adj(adj_dict[EDGE_TYPES[0]], np_of["tra_peptide"], np_of["cdr3b"])
    adj_c2b = _pad_adj(adj_dict[EDGE_TYPES[1]], np_of["trb_peptide"], np_of["cdr3b"])
    adj_a2c = _pad_adj(adj_dict[EDGE_TYPES[2]], np_of["cdr3b"], np_of["tra_peptide"])
    adj_b2c = _pad_adj(adj_dict[EDGE_TYPES[3]], np_of["cdr3b"], np_of["trb_peptide"])

    inputs = (xc, xa, xb, adj_c2a, adj_c2b, adj_a2c, adj_b2c,
              wa, wb, wc, ba, bb, bc)

    # advisory cost estimate (padded shapes) so XLA does not over-serialize
    flops = 0
    for _ in range(NUM_LAYERS):
        flops += 2 * np_of["tra_peptide"] * np_of["cdr3b"] * F_PAD        # A @ x (c->a)
        flops += 2 * np_of["trb_peptide"] * np_of["cdr3b"] * F_PAD        # A @ x (c->b)
        flops += 2 * np_of["cdr3b"] * np_of["tra_peptide"] * F_PAD        # A @ x (a->c)
        flops += 2 * np_of["cdr3b"] * np_of["trb_peptide"] * F_PAD        # A @ x (b->c)
        flops += 2 * np_of["tra_peptide"] * (2 * F_PAD) * F_PAD           # fused proj a
        flops += 2 * np_of["trb_peptide"] * (2 * F_PAD) * F_PAD           # fused proj b
        flops += 2 * np_of["cdr3b"] * (3 * F_PAD) * F_PAD                 # fused proj c
    out_bytes = sum(np_of[t] * F_PAD * 4 for t in NODE_TYPES)
    bytes_accessed = sum(int(v.size) * v.dtype.itemsize for v in inputs) + out_bytes

    # scoped-VMEM limit sized to the real resident footprint with headroom
    # (v5e default is 16 MiB; stay well under physical: 128 MiB v5e/v6e, 64 MiB v7x)
    resident_bytes = bytes_accessed
    vmem_limit = int(min(100 * 2**20, max(16 * 2**20, 4 * resident_bytes)))

    vmem = pl.BlockSpec(memory_space=pltpu.MemorySpace.VMEM)

    oc, oa, ob = pl.pallas_call(
        fused_hetero_gnn_kernel,
        out_shape=(
            jax.ShapeDtypeStruct((np_of["cdr3b"], F_PAD), jnp.float32),
            jax.ShapeDtypeStruct((np_of["tra_peptide"], F_PAD), jnp.float32),
            jax.ShapeDtypeStruct((np_of["trb_peptide"], F_PAD), jnp.float32),
        ),
        in_specs=[vmem] * len(inputs),
        out_specs=(vmem, vmem, vmem),
        compiler_params=pltpu.CompilerParams(vmem_limit_bytes=vmem_limit),
        cost_estimate=pl.CostEstimate(
            flops=flops, transcendentals=0, bytes_accessed=bytes_accessed),
    )(*inputs)

    return {
        "cdr3b": oc[: n_of["cdr3b"], :HIDDEN],
        "tra_peptide": oa[: n_of["tra_peptide"], :HIDDEN],
        "trb_peptide": ob[: n_of["trb_peptide"], :HIDDEN],
    }


# ------------------------------------------------------------------ graph / params
def build_norm_adj(edge_index, n_src, n_dst):
    """Dense row-normalized adjacency A[dst, src] realizing scatter-mean."""
    src, dst = edge_index[0], edge_index[1]
    a = jnp.zeros((n_dst, n_src), jnp.float32).at[dst, src].add(1.0)
    deg = a.sum(axis=1, keepdims=True)
    return a / jnp.maximum(deg, 1.0)


def init_params(key, in_dims, hidden, num_layers):
    """raw_params[layer][edge_type] = (W_l (F_src,H), W_r (F_dst,H), b (H,))."""
    raw = []
    dims = dict(in_dims)
    for _ in range(num_layers):
        layer = {}
        for et in EDGE_TYPES:
            src, _, dst = et
            key, k1, k2, k3 = jax.random.split(key, 4)
            f_src, f_dst = dims[src], dims[dst]
            w_l = jax.random.normal(k1, (f_src, hidden), jnp.float32) / jnp.sqrt(
                jnp.float32(f_src))
            w_r = jax.random.normal(k2, (f_dst, hidden), jnp.float32) / jnp.sqrt(
                jnp.float32(f_dst))
            bias = jax.random.normal(k3, (hidden,), jnp.float32) * 0.01
            layer[et] = (w_l, w_r, bias)
        raw.append(layer)
        dims = {k: hidden for k in dims}   # after a layer all features are H-dim
    return raw


def pack_params(raw, hidden):
    """Pack per-destination stacked weights for the fused kernel.

    wa / wb : (L, 2*F_PAD, F_PAD) = [[W_l], [W_r]] for dst tra / trb
    wc      : (L, 3*F_PAD, F_PAD) = [[W_l2], [W_l3], [W_r2 + W_r3]] for dst cdr3b
    ba/bb/bc: (L, 1, F_PAD) f32 (bc = b2 + b3, exact pre-sum)
    """
    L = len(raw)
    wa = jnp.zeros((L, 2 * F_PAD, F_PAD), jnp.float32)
    wb = jnp.zeros((L, 2 * F_PAD, F_PAD), jnp.float32)
    wc = jnp.zeros((L, 3 * F_PAD, F_PAD), jnp.float32)
    ba = jnp.zeros((L, 1, F_PAD), jnp.float32)
    bb = jnp.zeros((L, 1, F_PAD), jnp.float32)
    bc = jnp.zeros((L, 1, F_PAD), jnp.float32)

    for l, layer in enumerate(raw):
        # dst = tra_peptide (relation 0, src = cdr3b)
        w_l, w_r, bias = layer[EDGE_TYPES[0]]
        wa = wa.at[l, : w_l.shape[0], :hidden].set(w_l)
        wa = wa.at[l, F_PAD : F_PAD + w_r.shape[0], :hidden].set(w_r)
        ba = ba.at[l, 0, :hidden].set(bias)
        # dst = trb_peptide (relation 1, src = cdr3b)
        w_l, w_r, bias = layer[EDGE_TYPES[1]]
        wb = wb.at[l, : w_l.shape[0], :hidden].set(w_l)
        wb = wb.at[l, F_PAD : F_PAD + w_r.shape[0], :hidden].set(w_r)
        bb = bb.at[l, 0, :hidden].set(bias)
        # dst = cdr3b (relations 2 & 3) -- self weights / bias pre-summed (exact)
        w_l2, w_r2, b2 = layer[EDGE_TYPES[2]]
        w_l3, w_r3, b3 = layer[EDGE_TYPES[3]]
        wc = wc.at[l, : w_l2.shape[0], :hidden].set(w_l2)
        wc = wc.at[l, F_PAD : F_PAD + w_l3.shape[0], :hidden].set(w_l3)
        wc = wc.at[l, 2 * F_PAD : 2 * F_PAD + w_r2.shape[0], :hidden].set(w_r2 + w_r3)
        bc = bc.at[l, 0, :hidden].set(b2 + b3)

    return (wa.astype(jnp.bfloat16), wb.astype(jnp.bfloat16), wc.astype(jnp.bfloat16),
            ba, bb, bc)


def reference_forward(x_dict, adj_dict, raw_params):
    """Pure-JAX f32 (unpadded) reference of the same forward pass."""
    x = dict(x_dict)
    for layer in raw_params:
        partials = {}
        for et in EDGE_TYPES:
            src, _, dst = et
            w_l, w_r, bias = layer[et]
            agg = adj_dict[et] @ x[src]
            partials.setdefault(dst, []).append(agg @ w_l + x[dst] @ w_r + bias)
        x = {d: jax.nn.leaky_relu(sum(ps), NEG_SLOPE) for d, ps in partials.items()}
    return x


# ------------------------------------------------------------------ main
if __name__ == "__main__":
    key = jax.random.PRNGKey(0)

    n_nodes = {"cdr3b": 16, "tra_peptide": 8, "trb_peptide": 8}
    in_dims = {"cdr3b": 12, "tra_peptide": 10, "trb_peptide": 10}
    n_edges = 40

    # node features
    x_dict = {}
    for nt in NODE_TYPES:
        key, k = jax.random.split(key)
        x_dict[nt] = jax.random.normal(k, (n_nodes[nt], in_dims[nt]), jnp.float32)

    # random edge_index per edge type -> dense row-normalized adjacency
    adj_dict = {}
    for et in EDGE_TYPES:
        src, _, dst = et
        key, k1, k2 = jax.random.split(key, 3)
        ei = jnp.stack(
            [
                jax.random.randint(k1, (n_edges,), 0, n_nodes[src]),
                jax.random.randint(k2, (n_edges,), 0, n_nodes[dst]),
            ]
        )
        adj_dict[et] = build_norm_adj(ei, n_nodes[src], n_nodes[dst])

    raw_params = init_params(jax.random.PRNGKey(42), in_dims, HIDDEN, NUM_LAYERS)
    packed = pack_params(raw_params, HIDDEN)

    out = hetero_gnn_forward(x_dict, adj_dict, packed)
    out = jax.block_until_ready(out)

    ref = reference_forward(x_dict, adj_dict, raw_params)

    # MXU operands are bf16 (f32 accumulation), so compare with a *relative*
    # tolerance; expected error ~1e-2 relative over 3 layers, assert 3e-2.
    for nt in NODE_TYPES:
        assert out[nt].shape == (n_nodes[nt], HIDDEN), out[nt].shape
        assert bool(jnp.all(jnp.isfinite(out[nt])))
        err = float(jnp.max(jnp.abs(out[nt] - ref[nt])))
        scale = max(1.0, float(jnp.max(jnp.abs(ref[nt]))))
        assert err <= 3e-2 * scale, f"{nt}: max abs err {err} (scale {scale})"

    print("KERNEL_OK")
</pallas_src>

<mosaic_0001>
module attributes {stable_mosaic.version = 11 : i64} {
  func.func @fused_hetero_gnn_kernel(%arg0: memref<128x128xbf16, #tpu.memory_space<vmem>>, %arg1: memref<128x128xbf16, #tpu.memory_space<vmem>>, %arg2: memref<128x128xbf16, #tpu.memory_space<vmem>>, %arg3: memref<128x128xbf16, #tpu.memory_space<vmem>>, %arg4: memref<128x128xbf16, #tpu.memory_space<vmem>>, %arg5: memref<128x128xbf16, #tpu.memory_space<vmem>>, %arg6: memref<128x128xbf16, #tpu.memory_space<vmem>>, %arg7: memref<3x256x128xbf16, #tpu.memory_space<vmem>>, %arg8: memref<3x256x128xbf16, #tpu.memory_space<vmem>>, %arg9: memref<3x384x128xbf16, #tpu.memory_space<vmem>>, %arg10: memref<3x1x128xf32, #tpu.memory_space<vmem>>, %arg11: memref<3x1x128xf32, #tpu.memory_space<vmem>>, %arg12: memref<3x1x128xf32, #tpu.memory_space<vmem>>, %arg13: memref<128x128xf32, #tpu.memory_space<vmem>>, %arg14: memref<128x128xf32, #tpu.memory_space<vmem>>, %arg15: memref<128x128xf32, #tpu.memory_space<vmem>>) attributes {dimension_semantics = [], scalar_prefetch = 0 : i64, scratch_operands = 0 : i64, tpu.core_type = #tpu.core_type<tc>} {
    %c0 = arith.constant 0 : index
    %c0_0 = arith.constant 0 : index
    %0 = vector.load %arg0[%c0, %c0_0] : memref<128x128xbf16, #tpu.memory_space<vmem>>, vector<128x128xbf16>
    %c0_1 = arith.constant 0 : index
    %c0_2 = arith.constant 0 : index
    %1 = vector.load %arg1[%c0_1, %c0_2] : memref<128x128xbf16, #tpu.memory_space<vmem>>, vector<128x128xbf16>
    %c0_3 = arith.constant 0 : index
    %c0_4 = arith.constant 0 : index
    %2 = vector.load %arg2[%c0_3, %c0_4] : memref<128x128xbf16, #tpu.memory_space<vmem>>, vector<128x128xbf16>
    %c0_5 = arith.constant 0 : index
    %c0_6 = arith.constant 0 : index
    %3 = vector.load %arg3[%c0_5, %c0_6] : memref<128x128xbf16, #tpu.memory_space<vmem>>, vector<128x128xbf16>
    %cst = arith.constant dense<0.000000e+00> : vector<128x128xf32>
    %4 = tpu.matmul %3, %0, %cst {dimension_numbers = #tpu.dot_dimension_numbers<[1], [0], [0], [1], [0, 0, 1, 1], [], []>} : vector<128x128xbf16>, vector<128x128xbf16>, vector<128x128xf32> -> vector<128x128xf32>
    %c0_7 = arith.constant 0 : index
    %c0_8 = arith.constant 0 : index
    %5 = vector.load %arg4[%c0_7, %c0_8] : memref<128x128xbf16, #tpu.memory_space<vmem>>, vector<128x128xbf16>
    %cst_9 = arith.constant dense<0.000000e+00> : vector<128x128xf32>
    %6 = tpu.matmul %5, %0, %cst_9 {dimension_numbers = #tpu.dot_dimension_numbers<[1], [0], [0], [1], [0, 0, 1, 1], [], []>} : vector<128x128xbf16>, vector<128x128xbf16>, vector<128x128xf32> -> vector<128x128xf32>
    %c0_10 = arith.constant 0 : index
    %c0_11 = arith.constant 0 : index
    %7 = vector.load %arg5[%c0_10, %c0_11] : memref<128x128xbf16, #tpu.memory_space<vmem>>, vector<128x128xbf16>
    %cst_12 = arith.constant dense<0.000000e+00> : vector<128x128xf32>
    %8 = tpu.matmul %7, %1, %cst_12 {dimension_numbers = #tpu.dot_dimension_numbers<[1], [0], [0], [1], [0, 0, 1, 1], [], []>} : vector<128x128xbf16>, vector<128x128xbf16>, vector<128x128xf32> -> vector<128x128xf32>
    %c0_13 = arith.constant 0 : index
    %c0_14 = arith.constant 0 : index
    %9 = vector.load %arg6[%c0_13, %c0_14] : memref<128x128xbf16, #tpu.memory_space<vmem>>, vector<128x128xbf16>
    %cst_15 = arith.constant dense<0.000000e+00> : vector<128x128xf32>
    %10 = tpu.matmul %9, %2, %cst_15 {dimension_numbers = #tpu.dot_dimension_numbers<[1], [0], [0], [1], [0, 0, 1, 1], [], []>} : vector<128x128xbf16>, vector<128x128xbf16>, vector<128x128xf32> -> vector<128x128xf32>
    %11 = arith.truncf %4 : vector<128x128xf32> to vector<128x128xbf16>
    %12 = tpu.concatenate %11, %1 in 1 : vector<128x128xbf16>, vector<128x128xbf16> -> vector<128x256xbf16>
    %13 = arith.truncf %6 : vector<128x128xf32> to vector<128x128xbf16>
    %14 = tpu.concatenate %13, %2 in 1 : vector<128x128xbf16>, vector<128x128xbf16> -> vector<128x256xbf16>
    %15 = arith.truncf %8 : vector<128x128xf32> to vector<128x128xbf16>
    %16 = arith.truncf %10 : vector<128x128xf32> to vector<128x128xbf16>
    %17 = tpu.concatenate %15, %16, %0 in 1 : vector<128x128xbf16>, vector<128x128xbf16>, vector<128x128xbf16> -> vector<128x384xbf16>
    %c0_16 = arith.constant 0 : index
    %c0_17 = arith.constant 0 : index
    %c0_18 = arith.constant 0 : index
    %18 = vector.load %arg7[%c0_16, %c0_17, %c0_18] : memref<3x256x128xbf16, #tpu.memory_space<vmem>>, vector<1x256x128xbf16>
    %19 = vector.shape_cast %18 : vector<1x256x128xbf16> to vector<256x128xbf16>
    %cst_19 = arith.constant dense<0.000000e+00> : vector<128x128xf32>
    %20 = tpu.matmul %12, %19, %cst_19 {dimension_numbers = #tpu.dot_dimension_numbers<[1], [0], [0], [1], [0, 0, 1, 1], [], []>} : vector<128x256xbf16>, vector<256x128xbf16>, vector<128x128xf32> -> vector<128x128xf32>
    %c0_20 = arith.constant 0 : index
    %c0_21 = arith.constant 0 : index
    %c0_22 = arith.constant 0 : index
    %21 = vector.load %arg10[%c0_20, %c0_21, %c0_22] : memref<3x1x128xf32, #tpu.memory_space<vmem>>, vector<1x1x128xf32>
    %22 = vector.shape_cast %21 : vector<1x1x128xf32> to vector<1x128xf32>
    %23 = vector.broadcast %22 : vector<1x128xf32> to vector<128x128xf32>
    %24 = arith.addf %20, %23 : vector<128x128xf32>
    %c0_23 = arith.constant 0 : index
    %c0_24 = arith.constant 0 : index
    %c0_25 = arith.constant 0 : index
    %25 = vector.load %arg8[%c0_23, %c0_24, %c0_25] : memref<3x256x128xbf16, #tpu.memory_space<vmem>>, vector<1x256x128xbf16>
    %26 = vector.shape_cast %25 : vector<1x256x128xbf16> to vector<256x128xbf16>
    %cst_26 = arith.constant dense<0.000000e+00> : vector<128x128xf32>
    %27 = tpu.matmul %14, %26, %cst_26 {dimension_numbers = #tpu.dot_dimension_numbers<[1], [0], [0], [1], [0, 0, 1, 1], [], []>} : vector<128x256xbf16>, vector<256x128xbf16>, vector<128x128xf32> -> vector<128x128xf32>
    %c0_27 = arith.constant 0 : index
    %c0_28 = arith.constant 0 : index
    %c0_29 = arith.constant 0 : index
    %28 = vector.load %arg11[%c0_27, %c0_28, %c0_29] : memref<3x1x128xf32, #tpu.memory_space<vmem>>, vector<1x1x128xf32>
    %29 = vector.shape_cast %28 : vector<1x1x128xf32> to vector<1x128xf32>
    %30 = vector.broadcast %29 : vector<1x128xf32> to vector<128x128xf32>
    %31 = arith.addf %27, %30 : vector<128x128xf32>
    %c0_30 = arith.constant 0 : index
    %c0_31 = arith.constant 0 : index
    %c0_32 = arith.constant 0 : index
    %32 = vector.load %arg9[%c0_30, %c0_31, %c0_32] : memref<3x384x128xbf16, #tpu.memory_space<vmem>>, vector<1x384x128xbf16>
    %33 = vector.shape_cast %32 : vector<1x384x128xbf16> to vector<384x128xbf16>
    %cst_33 = arith.constant dense<0.000000e+00> : vector<128x128xf32>
    %34 = tpu.matmul %17, %33, %cst_33 {dimension_numbers = #tpu.dot_dimension_numbers<[1], [0], [0], [1], [0, 0, 1, 1], [], []>} : vector<128x384xbf16>, vector<384x128xbf16>, vector<128x128xf32> -> vector<128x128xf32>
    %c0_34 = arith.constant 0 : index
    %c0_35 = arith.constant 0 : index
    %c0_36 = arith.constant 0 : index
    %35 = vector.load %arg12[%c0_34, %c0_35, %c0_36] : memref<3x1x128xf32, #tpu.memory_space<vmem>>, vector<1x1x128xf32>
    %36 = vector.shape_cast %35 : vector<1x1x128xf32> to vector<1x128xf32>
    %37 = vector.broadcast %36 : vector<1x128xf32> to vector<128x128xf32>
    %38 = arith.addf %34, %37 : vector<128x128xf32>
    %cst_37 = arith.constant 0.000000e+00 : f32
    %39 = vector.broadcast %cst_37 : f32 to vector<128x128xf32>
    %40 = arith.cmpf ogt, %24, %39 : vector<128x128xf32>
    %cst_38 = arith.constant 0.00999999977 : f32
    %41 = vector.broadcast %cst_38 : f32 to vector<128x128xf32>
    %42 = arith.mulf %41, %24 : vector<128x128xf32>
    %43 = arith.select %40, %24, %42 : vector<128x128xi1>, vector<128x128xf32>
    %cst_39 = arith.constant 0.000000e+00 : f32
    %44 = vector.broadcast %cst_39 : f32 to vector<128x128xf32>
    %45 = arith.cmpf ogt, %31, %44 : vector<128x128xf32>
    %cst_40 = arith.constant 0.00999999977 : f32
    %46 = vector.broadcast %cst_40 : f32 to vector<128x128xf32>
    %47 = arith.mulf %46, %31 : vector<128x128xf32>
    %48 = arith.select %45, %31, %47 : vector<128x128xi1>, vector<128x128xf32>
    %cst_41 = arith.constant 0.000000e+00 : f32
    %49 = vector.broadcast %cst_41 : f32 to vector<128x128xf32>
    %50 = arith.cmpf ogt, %38, %49 : vector<128x128xf32>
    %cst_42 = arith.constant 0.00999999977 : f32
    %51 = vector.broadcast %cst_42 : f32 to vector<128x128xf32>
    %52 = arith.mulf %51, %38 : vector<128x128xf32>
    %53 = arith.select %50, %38, %52 : vector<128x128xi1>, vector<128x128xf32>
    %54 = arith.truncf %43 : vector<128x128xf32> to vector<128x128xbf16>
    %55 = arith.truncf %48 : vector<128x128xf32> to vector<128x128xbf16>
    %56 = arith.truncf %53 : vector<128x128xf32> to vector<128x128xbf16>
    %c0_43 = arith.constant 0 : index
    %c0_44 = arith.constant 0 : index
    %57 = vector.load %arg3[%c0_43, %c0_44] : memref<128x128xbf16, #tpu.memory_space<vmem>>, vector<128x128xbf16>
    %cst_45 = arith.constant dense<0.000000e+00> : vector<128x128xf32>
    %58 = tpu.matmul %57, %56, %cst_45 {dimension_numbers = #tpu.dot_dimension_numbers<[1], [0], [0], [1], [0, 0, 1, 1], [], []>} : vector<128x128xbf16>, vector<128x128xbf16>, vector<128x128xf32> -> vector<128x128xf32>
    %c0_46 = arith.constant 0 : index
    %c0_47 = arith.constant 0 : index
    %59 = vector.load %arg4[%c0_46, %c0_47] : memref<128x128xbf16, #tpu.memory_space<vmem>>, vector<128x128xbf16>
    %cst_48 = arith.constant dense<0.000000e+00> : vector<128x128xf32>
    %60 = tpu.matmul %59, %56, %cst_48 {dimension_numbers = #tpu.dot_dimension_numbers<[1], [0], [0], [1], [0, 0, 1, 1], [], []>} : vector<128x128xbf16>, vector<128x128xbf16>, vector<128x128xf32> -> vector<128x128xf32>
    %c0_49 = arith.constant 0 : index
    %c0_50 = arith.constant 0 : index
    %61 = vector.load %arg5[%c0_49, %c0_50] : memref<128x128xbf16, #tpu.memory_space<vmem>>, vector<128x128xbf16>
    %cst_51 = arith.constant dense<0.000000e+00> : vector<128x128xf32>
    %62 = tpu.matmul %61, %54, %cst_51 {dimension_numbers = #tpu.dot_dimension_numbers<[1], [0], [0], [1], [0, 0, 1, 1], [], []>} : vector<128x128xbf16>, vector<128x128xbf16>, vector<128x128xf32> -> vector<128x128xf32>
    %c0_52 = arith.constant 0 : index
    %c0_53 = arith.constant 0 : index
    %63 = vector.load %arg6[%c0_52, %c0_53] : memref<128x128xbf16, #tpu.memory_space<vmem>>, vector<128x128xbf16>
    %cst_54 = arith.constant dense<0.000000e+00> : vector<128x128xf32>
    %64 = tpu.matmul %63, %55, %cst_54 {dimension_numbers = #tpu.dot_dimension_numbers<[1], [0], [0], [1], [0, 0, 1, 1], [], []>} : vector<128x128xbf16>, vector<128x128xbf16>, vector<128x128xf32> -> vector<128x128xf32>
    %65 = arith.truncf %58 : vector<128x128xf32> to vector<128x128xbf16>
    %66 = tpu.concatenate %65, %54 in 1 : vector<128x128xbf16>, vector<128x128xbf16> -> vector<128x256xbf16>
    %67 = arith.truncf %60 : vector<128x128xf32> to vector<128x128xbf16>
    %68 = tpu.concatenate %67, %55 in 1 : vector<128x128xbf16>, vector<128x128xbf16> -> vector<128x256xbf16>
    %69 = arith.truncf %62 : vector<128x128xf32> to vector<128x128xbf16>
    %70 = arith.truncf %64 : vector<128x128xf32> to vector<128x128xbf16>
    %71 = tpu.concatenate %69, %70, %56 in 1 : vector<128x128xbf16>, vector<128x128xbf16>, vector<128x128xbf16> -> vector<128x384xbf16>
    %c1 = arith.constant 1 : index
    %c0_55 = arith.constant 0 : index
    %c0_56 = arith.constant 0 : index
    %72 = vector.load %arg7[%c1, %c0_55, %c0_56] : memref<3x256x128xbf16, #tpu.memory_space<vmem>>, vector<1x256x128xbf16>
    %73 = vector.shape_cast %72 : vector<1x256x128xbf16> to vector<256x128xbf16>
    %cst_57 = arith.constant dense<0.000000e+00> : vector<128x128xf32>
    %74 = tpu.matmul %66, %73, %cst_57 {dimension_numbers = #tpu.dot_dimension_numbers<[1], [0], [0], [1], [0, 0, 1, 1], [], []>} : vector<128x256xbf16>, vector<256x128xbf16>, vector<128x128xf32> -> vector<128x128xf32>
    %c1_58 = arith.constant 1 : index
    %c0_59 = arith.constant 0 : index
    %c0_60 = arith.constant 0 : index
    %75 = vector.load %arg10[%c1_58, %c0_59, %c0_60] : memref<3x1x128xf32, #tpu.memory_space<vmem>>, vector<1x1x128xf32>
    %76 = vector.shape_cast %75 : vector<1x1x128xf32> to vector<1x128xf32>
    %77 = vector.broadcast %76 : vector<1x128xf32> to vector<128x128xf32>
    %78 = arith.addf %74, %77 : vector<128x128xf32>
    %c1_61 = arith.constant 1 : index
    %c0_62 = arith.constant 0 : index
    %c0_63 = arith.constant 0 : index
    %79 = vector.load %arg8[%c1_61, %c0_62, %c0_63] : memref<3x256x128xbf16, #tpu.memory_space<vmem>>, vector<1x256x128xbf16>
    %80 = vector.shape_cast %79 : vector<1x256x128xbf16> to vector<256x128xbf16>
    %cst_64 = arith.constant dense<0.000000e+00> : vector<128x128xf32>
    %81 = tpu.matmul %68, %80, %cst_64 {dimension_numbers = #tpu.dot_dimension_numbers<[1], [0], [0], [1], [0, 0, 1, 1], [], []>} : vector<128x256xbf16>, vector<256x128xbf16>, vector<128x128xf32> -> vector<128x128xf32>
    %c1_65 = arith.constant 1 : index
    %c0_66 = arith.constant 0 : index
    %c0_67 = arith.constant 0 : index
    %82 = vector.load %arg11[%c1_65, %c0_66, %c0_67] : memref<3x1x128xf32, #tpu.memory_space<vmem>>, vector<1x1x128xf32>
    %83 = vector.shape_cast %82 : vector<1x1x128xf32> to vector<1x128xf32>
    %84 = vector.broadcast %83 : vector<1x128xf32> to vector<128x128xf32>
    %85 = arith.addf %81, %84 : vector<128x128xf32>
    %c1_68 = arith.constant 1 : index
    %c0_69 = arith.constant 0 : index
    %c0_70 = arith.constant 0 : index
    %86 = vector.load %arg9[%c1_68, %c0_69, %c0_70] : memref<3x384x128xbf16, #tpu.memory_space<vmem>>, vector<1x384x128xbf16>
    %87 = vector.shape_cast %86 : vector<1x384x128xbf16> to vector<384x128xbf16>
    %cst_71 = arith.constant dense<0.000000e+00> : vector<128x128xf32>
    %88 = tpu.matmul %71, %87, %cst_71 {dimension_numbers = #tpu.dot_dimension_numbers<[1], [0], [0], [1], [0, 0, 1, 1], [], []>} : vector<128x384xbf16>, vector<384x128xbf16>, vector<128x128xf32> -> vector<128x128xf32>
    %c1_72 = arith.constant 1 : index
    %c0_73 = arith.constant 0 : index
    %c0_74 = arith.constant 0 : index
    %89 = vector.load %arg12[%c1_72, %c0_73, %c0_74] : memref<3x1x128xf32, #tpu.memory_space<vmem>>, vector<1x1x128xf32>
    %90 = vector.shape_cast %89 : vector<1x1x128xf32> to vector<1x128xf32>
    %91 = vector.broadcast %90 : vector<1x128xf32> to vector<128x128xf32>
    %92 = arith.addf %88, %91 : vector<128x128xf32>
    %cst_75 = arith.constant 0.000000e+00 : f32
    %93 = vector.broadcast %cst_75 : f32 to vector<128x128xf32>
    %94 = arith.cmpf ogt, %78, %93 : vector<128x128xf32>
    %cst_76 = arith.constant 0.00999999977 : f32
    %95 = vector.broadcast %cst_76 : f32 to vector<128x128xf32>
    %96 = arith.mulf %95, %78 : vector<128x128xf32>
    %97 = arith.select %94, %78, %96 : vector<128x128xi1>, vector<128x128xf32>
    %cst_77 = arith.constant 0.000000e+00 : f32
    %98 = vector.broadcast %cst_77 : f32 to vector<128x128xf32>
    %99 = arith.cmpf ogt, %85, %98 : vector<128x128xf32>
    %cst_78 = arith.constant 0.00999999977 : f32
    %100 = vector.broadcast %cst_78 : f32 to vector<128x128xf32>
    %101 = arith.mulf %100, %85 : vector<128x128xf32>
    %102 = arith.select %99, %85, %101 : vector<128x128xi1>, vector<128x128xf32>
    %cst_79 = arith.constant 0.000000e+00 : f32
    %103 = vector.broadcast %cst_79 : f32 to vector<128x128xf32>
    %104 = arith.cmpf ogt, %92, %103 : vector<128x128xf32>
    %cst_80 = arith.constant 0.00999999977 : f32
    %105 = vector.broadcast %cst_80 : f32 to vector<128x128xf32>
    %106 = arith.mulf %105, %92 : vector<128x128xf32>
    %107 = arith.select %104, %92, %106 : vector<128x128xi1>, vector<128x128xf32>
    %108 = arith.truncf %97 : vector<128x128xf32> to vector<128x128xbf16>
    %109 = arith.truncf %102 : vector<128x128xf32> to vector<128x128xbf16>
    %110 = arith.truncf %107 : vector<128x128xf32> to vector<128x128xbf16>
    %c0_81 = arith.constant 0 : index
    %c0_82 = arith.constant 0 : index
    %111 = vector.load %arg3[%c0_81, %c0_82] : memref<128x128xbf16, #tpu.memory_space<vmem>>, vector<128x128xbf16>
    %cst_83 = arith.constant dense<0.000000e+00> : vector<128x128xf32>
    %112 = tpu.matmul %111, %110, %cst_83 {dimension_numbers = #tpu.dot_dimension_numbers<[1], [0], [0], [1], [0, 0, 1, 1], [], []>} : vector<128x128xbf16>, vector<128x128xbf16>, vector<128x128xf32> -> vector<128x128xf32>
    %c0_84 = arith.constant 0 : index
    %c0_85 = arith.constant 0 : index
    %113 = vector.load %arg4[%c0_84, %c0_85] : memref<128x128xbf16, #tpu.memory_space<vmem>>, vector<128x128xbf16>
    %cst_86 = arith.constant dense<0.000000e+00> : vector<128x128xf32>
    %114 = tpu.matmul %113, %110, %cst_86 {dimension_numbers = #tpu.dot_dimension_numbers<[1], [0], [0], [1], [0, 0, 1, 1], [], []>} : vector<128x128xbf16>, vector<128x128xbf16>, vector<128x128xf32> -> vector<128x128xf32>
    %c0_87 = arith.constant 0 : index
    %c0_88 = arith.constant 0 : index
    %115 = vector.load %arg5[%c0_87, %c0_88] : memref<128x128xbf16, #tpu.memory_space<vmem>>, vector<128x128xbf16>
    %cst_89 = arith.constant dense<0.000000e+00> : vector<128x128xf32>
    %116 = tpu.matmul %115, %108, %cst_89 {dimension_numbers = #tpu.dot_dimension_numbers<[1], [0], [0], [1], [0, 0, 1, 1], [], []>} : vector<128x128xbf16>, vector<128x128xbf16>, vector<128x128xf32> -> vector<128x128xf32>
    %c0_90 = arith.constant 0 : index
    %c0_91 = arith.constant 0 : index
    %117 = vector.load %arg6[%c0_90, %c0_91] : memref<128x128xbf16, #tpu.memory_space<vmem>>, vector<128x128xbf16>
    %cst_92 = arith.constant dense<0.000000e+00> : vector<128x128xf32>
    %118 = tpu.matmul %117, %109, %cst_92 {dimension_numbers = #tpu.dot_dimension_numbers<[1], [0], [0], [1], [0, 0, 1, 1], [], []>} : vector<128x128xbf16>, vector<128x128xbf16>, vector<128x128xf32> -> vector<128x128xf32>
    %119 = arith.truncf %112 : vector<128x128xf32> to vector<128x128xbf16>
    %120 = tpu.concatenate %119, %108 in 1 : vector<128x128xbf16>, vector<128x128xbf16> -> vector<128x256xbf16>
    %121 = arith.truncf %114 : vector<128x128xf32> to vector<128x128xbf16>
    %122 = tpu.concatenate %121, %109 in 1 : vector<128x128xbf16>, vector<128x128xbf16> -> vector<128x256xbf16>
    %123 = arith.truncf %116 : vector<128x128xf32> to vector<128x128xbf16>
    %124 = arith.truncf %118 : vector<128x128xf32> to vector<128x128xbf16>
    %125 = tpu.concatenate %123, %124, %110 in 1 : vector<128x128xbf16>, vector<128x128xbf16>, vector<128x128xbf16> -> vector<128x384xbf16>
    %c2 = arith.constant 2 : index
    %c0_93 = arith.constant 0 : index
    %c0_94 = arith.constant 0 : index
    %126 = vector.load %arg7[%c2, %c0_93, %c0_94] : memref<3x256x128xbf16, #tpu.memory_space<vmem>>, vector<1x256x128xbf16>
    %127 = vector.shape_cast %126 : vector<1x256x128xbf16> to vector<256x128xbf16>
    %cst_95 = arith.constant dense<0.000000e+00> : vector<128x128xf32>
    %128 = tpu.matmul %120, %127, %cst_95 {dimension_numbers = #tpu.dot_dimension_numbers<[1], [0], [0], [1], [0, 0, 1, 1], [], []>} : vector<128x256xbf16>, vector<256x128xbf16>, vector<128x128xf32> -> vector<128x128xf32>
    %c2_96 = arith.constant 2 : index
    %c0_97 = arith.constant 0 : index
    %c0_98 = arith.constant 0 : index
    %129 = vector.load %arg10[%c2_96, %c0_97, %c0_98] : memref<3x1x128xf32, #tpu.memory_space<vmem>>, vector<1x1x128xf32>
    %130 = vector.shape_cast %129 : vector<1x1x128xf32> to vector<1x128xf32>
    %131 = vector.broadcast %130 : vector<1x128xf32> to vector<128x128xf32>
    %132 = arith.addf %128, %131 : vector<128x128xf32>
    %c2_99 = arith.constant 2 : index
    %c0_100 = arith.constant 0 : index
    %c0_101 = arith.constant 0 : index
    %133 = vector.load %arg8[%c2_99, %c0_100, %c0_101] : memref<3x256x128xbf16, #tpu.memory_space<vmem>>, vector<1x256x128xbf16>
    %134 = vector.shape_cast %133 : vector<1x256x128xbf16> to vector<256x128xbf16>
    %cst_102 = arith.constant dense<0.000000e+00> : vector<128x128xf32>
    %135 = tpu.matmul %122, %134, %cst_102 {dimension_numbers = #tpu.dot_dimension_numbers<[1], [0], [0], [1], [0, 0, 1, 1], [], []>} : vector<128x256xbf16>, vector<256x128xbf16>, vector<128x128xf32> -> vector<128x128xf32>
    %c2_103 = arith.constant 2 : index
    %c0_104 = arith.constant 0 : index
    %c0_105 = arith.constant 0 : index
    %136 = vector.load %arg11[%c2_103, %c0_104, %c0_105] : memref<3x1x128xf32, #tpu.memory_space<vmem>>, vector<1x1x128xf32>
    %137 = vector.shape_cast %136 : vector<1x1x128xf32> to vector<1x128xf32>
    %138 = vector.broadcast %137 : vector<1x128xf32> to vector<128x128xf32>
    %139 = arith.addf %135, %138 : vector<128x128xf32>
    %c2_106 = arith.constant 2 : index
    %c0_107 = arith.constant 0 : index
    %c0_108 = arith.constant 0 : index
    %140 = vector.load %arg9[%c2_106, %c0_107, %c0_108] : memref<3x384x128xbf16, #tpu.memory_space<vmem>>, vector<1x384x128xbf16>
    %141 = vector.shape_cast %140 : vector<1x384x128xbf16> to vector<384x128xbf16>
    %cst_109 = arith.constant dense<0.000000e+00> : vector<128x128xf32>
    %142 = tpu.matmul %125, %141, %cst_109 {dimension_numbers = #tpu.dot_dimension_numbers<[1], [0], [0], [1], [0, 0, 1, 1], [], []>} : vector<128x384xbf16>, vector<384x128xbf16>, vector<128x128xf32> -> vector<128x128xf32>
    %c2_110 = arith.constant 2 : index
    %c0_111 = arith.constant 0 : index
    %c0_112 = arith.constant 0 : index
    %143 = vector.load %arg12[%c2_110, %c0_111, %c0_112] : memref<3x1x128xf32, #tpu.memory_space<vmem>>, vector<1x1x128xf32>
    %144 = vector.shape_cast %143 : vector<1x1x128xf32> to vector<1x128xf32>
    %145 = vector.broadcast %144 : vector<1x128xf32> to vector<128x128xf32>
    %146 = arith.addf %142, %145 : vector<128x128xf32>
    %cst_113 = arith.constant 0.000000e+00 : f32
    %147 = vector.broadcast %cst_113 : f32 to vector<128x128xf32>
    %148 = arith.cmpf ogt, %132, %147 : vector<128x128xf32>
    %cst_114 = arith.constant 0.00999999977 : f32
    %149 = vector.broadcast %cst_114 : f32 to vector<128x128xf32>
    %150 = arith.mulf %149, %132 : vector<128x128xf32>
    %151 = arith.select %148, %132, %150 : vector<128x128xi1>, vector<128x128xf32>
    %cst_115 = arith.constant 0.000000e+00 : f32
    %152 = vector.broadcast %cst_115 : f32 to vector<128x128xf32>
    %153 = arith.cmpf ogt, %139, %152 : vector<128x128xf32>
    %cst_116 = arith.constant 0.00999999977 : f32
    %154 = vector.broadcast %cst_116 : f32 to vector<128x128xf32>
    %155 = arith.mulf %154, %139 : vector<128x128xf32>
    %156 = arith.select %153, %139, %155 : vector<128x128xi1>, vector<128x128xf32>
    %cst_117 = arith.constant 0.000000e+00 : f32
    %157 = vector.broadcast %cst_117 : f32 to vector<128x128xf32>
    %158 = arith.cmpf ogt, %146, %157 : vector<128x128xf32>
    %cst_118 = arith.constant 0.00999999977 : f32
    %159 = vector.broadcast %cst_118 : f32 to vector<128x128xf32>
    %160 = arith.mulf %159, %146 : vector<128x128xf32>
    %161 = arith.select %158, %146, %160 : vector<128x128xi1>, vector<128x128xf32>
    %c0_119 = arith.constant 0 : index
    %c0_120 = arith.constant 0 : index
    %162 = vector.load %arg13[%c0_119, %c0_120] : memref<128x128xf32, #tpu.memory_space<vmem>>, vector<128x128xf32>
    tpu.vector_store %arg13[%c0_119, %c0_120], %161 {strides = array<i32>} : memref<128x128xf32, #tpu.memory_space<vmem>>, vector<128x128xf32>,
    %c0_121 = arith.constant 0 : index
    %c0_122 = arith.constant 0 : index
    %163 = vector.load %arg14[%c0_121, %c0_122] : memref<128x128xf32, #tpu.memory_space<vmem>>, vector<128x128xf32>
    tpu.vector_store %arg14[%c0_121, %c0_122], %151 {strides = array<i32>} : memref<128x128xf32, #tpu.memory_space<vmem>>, vector<128x128xf32>,
    %c0_123 = arith.constant 0 : index
    %c0_124 = arith.constant 0 : index
    %164 = vector.load %arg15[%c0_123, %c0_124] : memref<128x128xf32, #tpu.memory_space<vmem>>, vector<128x128xf32>
    tpu.vector_store %arg15[%c0_123, %c0_124], %156 {strides = array<i32>} : memref<128x128xf32, #tpu.memory_space<vmem>>, vector<128x128xf32>,
    return
  }
}

</mosaic_0001>

<bundles_post_ra>
// kernel: tpu_custom_call.1
= control target key start
LH: loop header
LB: loop body
LE: loop exit
PB: predicated region body
PF: predicated region fallthrough
CT: control target
= control target key end

     0   :  { %21 = vsyncpa [#allocation3], 0  ;;  %s8357_s0 = inlined_call_operand.hbm [shape: bf16[128,128], index: 0, kind: input, shape index: {}]   ;;  %s8358_s1 = inlined_call_operand.hbm [shape: bf16[128,128], index: 1, kind: input, shape index: {}]   ;;  %s8359_s2 = inlined_call_operand.hbm [shape: bf16[128,128], index: 2, kind: input, shape index: {}]   ;;  %s8360_s3 = inlined_call_operand.hbm [shape: bf16[128,128], index: 3, kind: input, shape index: {}]   ;;  %s8361_s4 = inlined_call_operand.hbm [shape: bf16[128,128], index: 4, kind: input, shape index: {}]   ;;  %s8362_s5 = inlined_call_operand.hbm [shape: bf16[128,128], index: 5, kind: input, shape index: {}]   ;;  %s8363_s6 = inlined_call_operand.hbm [shape: bf16[128,128], index: 6, kind: input, shape index: {}]   ;;  %s8364_s7 = inlined_call_operand.hbm [shape: bf16[3,256,128], index: 7, kind: input, shape index: {}]   ;;  %s8365_s8 = inlined_call_operand.hbm [shape: bf16[3,256,128], index: 8, kind: input, shape index: {}]   ;;  %s8366_s9 = inlined_call_operand.hbm [shape: bf16[3,384,128], index: 9, kind: input, shape index: {}]   ;;  %s8367_s10 = inlined_call_operand.vmem [shape: f32[3,1,128], index: 10, kind: input, shape index: {}]   ;;  %s8368_s11 = inlined_call_operand.vmem [shape: f32[3,1,128], index: 11, kind: input, shape index: {}]   ;;  %s8369_s12 = inlined_call_operand.vmem [shape: f32[3,1,128], index: 12, kind: input, shape index: {}]   ;;  %s8370_s13 = inlined_call_operand.hbm [shape: f32[128,128], index: 13, kind: output, shape index: {0}]   ;;  %s8371_s14 = inlined_call_operand.hbm [shape: f32[128,128], index: 14, kind: output, shape index: {1}]   ;;  %s8372_s15 = inlined_call_operand.hbm [shape: f32[128,128], index: 15, kind: output, shape index: {2}]  }
   0x1   :  { %22 = vsyncpa [#allocation6], 0 }
   0x2   :  { %23 = vsyncpa [#allocation9], 0 }
   0x3   :  { %24 = vsyncpa [#allocation12], 0 }
   0x4   :  { %25 = vsyncpa [#allocation15], 0 }
   0x5   :  { %26 = vsyncpa [#allocation18], 0 }
   0x6   :  { %27 = vsyncpa [#allocation4], 0 }
   0x7   :  { %28 = vsyncpa [#allocation21], 0  ;;  %s46_s20 = sshll.u32 %s8358_s1, 4  ;;  %s6928_s21 = smov [#allocation5]   ;;  %s47_s20 = int_to_ptr.hbm [resolvable:$true] %s46_s20 }
   0x8   :  { %s48_s22 = sshll.u32 %s6928_s21, 4  ;;  %s72_s25 = sshll.u32 %s8360_s3, 4  ;;  %s49_s22 = int_to_ptr.vmem [resolvable:$true] %s48_s22  ;;  %s73_s25 = int_to_ptr.hbm [resolvable:$true] %s72_s25 }
   0x9   :  { %s6929_s26 = smov 64   ;;  %s6930_s27 = smov 4  }
   0xa   :  { %54 = dma.hbm_to_vmem [thread:$0]  %s47_s20, 1024, %s49_s22, [#allocation6], %s6929_s26, %s6929_s26, %s6930_s27  }
   0xb   :  { %s6931_s28 = smov [#allocation8]   ;;  %s98_s1 = sshll.u32 %s8362_s5, 4  ;;  %s99_s1 = int_to_ptr.hbm [resolvable:$true] %s98_s1 }
   0xc   :  { %s74_s29 = sshll.u32 %s6931_s28, 4  ;;  %s124_s18 = sshll.u32 %s8364_s7, 4  ;;  %s75_s29 = int_to_ptr.vmem [resolvable:$true] %s74_s29  ;;  %s125_s18 = int_to_ptr.hbm [resolvable:$true] %s124_s18 }
   0xd   :  { %80 = dma.hbm_to_vmem [thread:$0]  %s73_s25, 1024, %s75_s29, [#allocation9], %s6929_s26, %s6929_s26, %s6930_s27  }
   0xe   :  { %s6932_s19 = smov [#allocation11]   ;;  %s6933_s20 = smov [#allocation14]  }
   0xf   :  { %s100_s21 = sshll.u32 %s6932_s19, 4  ;;  %s126_s5 = sshll.u32 %s6933_s20, 4  ;;  %s101_s21 = int_to_ptr.vmem [resolvable:$true] %s100_s21  ;;  %s127_s5 = int_to_ptr.vmem [resolvable:$true] %s126_s5 }
  0x10   :  { %106 = dma.hbm_to_vmem [thread:$0]  %s99_s1, 1024, %s101_s21, [#allocation12], %s6929_s26, %s6929_s26, %s6930_s27  }
  0x11   :  { %s33_s24 = sshll.u32 %s8357_s0, 4  ;;  %s59_s28 = sshll.u32 %s8359_s2, 4  ;;  %s34_s24 = int_to_ptr.hbm [resolvable:$true] %s33_s24  ;;  %s60_s28 = int_to_ptr.hbm [resolvable:$true] %s59_s28 }
  0x12   :  { %132 = dma.hbm_to_vmem [thread:$0]  %s125_s18, 6144, %s127_s5, [#allocation15], %s6929_s26, %s6929_s26, %s6930_s27  }
  0x13   :  { %s6934_s29 = smov [#allocation2]   ;;  %s6935_s16 = smov [#allocation7]  }
  0x14   :  { %s35_s30 = sshll.u32 %s6934_s29, 4  ;;  %s61_s0 = sshll.u32 %s6935_s16, 4  ;;  %s36_s30 = int_to_ptr.vmem [resolvable:$true] %s35_s30  ;;  %s62_s0 = int_to_ptr.vmem [resolvable:$true] %s61_s0 }
  0x15   :  { %41 = dma.hbm_to_vmem [thread:$0]  %s34_s24, 1024, %s36_s30, [#allocation3], %s6929_s26, %s6929_s26, %s6930_s27  }
  0x16   :  { %s85_s17 = sshll.u32 %s8361_s4, 4  ;;  %s111_s19 = sshll.u32 %s8363_s6, 4  ;;  %s86_s17 = int_to_ptr.hbm [resolvable:$true] %s85_s17  ;;  %s112_s19 = int_to_ptr.hbm [resolvable:$true] %s111_s19 }
  0x17   :  { %67 = dma.hbm_to_vmem [thread:$0]  %s60_s28, 1024, %s62_s0, [#allocation6], %s6929_s26, %s6929_s26, %s6930_s27  }
  0x18   :  { %s6936_s21 = smov [#allocation10]   ;;  %s6937_s5 = smov [#allocation13]  }
  0x19   :  { %s87_s20 = sshll.u32 %s6936_s21, 4  ;;  %s113_s4 = sshll.u32 %s6937_s5, 4  ;;  %s88_s20 = int_to_ptr.vmem [resolvable:$true] %s87_s20  ;;  %s114_s4 = int_to_ptr.vmem [resolvable:$true] %s113_s4 }
  0x1a   :  { %93 = dma.hbm_to_vmem [thread:$0]  %s86_s17, 1024, %s88_s20, [#allocation9], %s6929_s26, %s6929_s26, %s6930_s27  }
  0x1b   :  { %s137_s24 = sshll.u32 %s8365_s8, 4  ;;  %s150_s25 = sshll.u32 %s8366_s9, 4  ;;  %s138_s24 = int_to_ptr.hbm [resolvable:$true] %s137_s24  ;;  %s151_s25 = int_to_ptr.hbm [resolvable:$true] %s150_s25 }
  0x1c   :  { %119 = dma.hbm_to_vmem [thread:$0]  %s112_s19, 1024, %s114_s4, [#allocation12], %s6929_s26, %s6929_s26, %s6930_s27  }
  0x1d   :  { %s6938_s28 = smov [#allocation16]   ;;  %s6939_s30 = smov [#allocation17]  }
  0x1e   :  { %s139_s29 = sshll.u32 %s6938_s28, 4  ;;  %s152_s8 = sshll.u32 %s6939_s30, 4  ;;  %s140_s29 = int_to_ptr.vmem [resolvable:$true] %s139_s29  ;;  %s153_s8 = int_to_ptr.vmem [resolvable:$true] %s152_s8 }
  0x1f   :  { %145 = dma.hbm_to_vmem [thread:$0]  %s138_s24, 6144, %s140_s29, [#allocation15], %s6929_s26, %s6929_s26, %s6930_s27  }
  0x20   :  { %158 = dma.hbm_to_vmem [thread:$0]  %s151_s25, 9216, %s153_s8, [#allocation18], %s6929_s26, %s6929_s26, %s6930_s27  }
  0x21   :  { %6912 = dma.done.wait [#allocation3], 1024  }
  0x22   :  { %6913 = vsyncadd [#allocation3], 4294966272 }
  0x23   :  { %6914 = dma.done.wait [#allocation6], 2048  }
  0x24   :  { %6915 = vsyncadd [#allocation6], 4294965248 }
  0x25   :  { %6916 = dma.done.wait [#allocation9], 2048  }
  0x26   :  { %6917 = vsyncadd [#allocation9], 4294965248 }
  0x27   :  { %6918 = dma.done.wait [#allocation12], 2048  }
  0x28   :  { %6919 = vsyncadd [#allocation12], 4294965248 }
  0x29   :  { %6920 = dma.done.wait [#allocation15], 12288  }
  0x2a   :  { %6921 = vsyncadd [#allocation15], 4294955008 }
  0x2b   :  { %6922 = dma.done.wait [#allocation18], 9216  }
  0x2c   :  { %6923 = vsyncadd [#allocation18], 4294958080  ;;  %v6262_v0 = vld [vmem:[#allocation2 + $0x38] sm:$0xff]  ;;  %v6261_v1 = vld [vmem:[#allocation2 + $0x30] sm:$0xff]  ;;  %s6940_s23 = smov [#allocation20]   ;;  %s5313_s25 = sshll.u32 %s8371_s14, 4  ;;  %s5314_s25 = int_to_ptr.hbm [resolvable:$true] %s5313_s25 }
  0x2d   :  { %365 = vmatpush.bf16.msra.mxu0 %v6262_v0  ;;  %6479 = vmatpush.bf16.msra.mxu1 %v6262_v0  ;;  %v6260_v2 = vld [vmem:[#allocation2 + $0x28] sm:$0xff]  ;;  %v6259_v3 = vld [vmem:[#allocation2 + $0x20] sm:$0xff]  ;;  %v6258_v4 = vld [vmem:[#allocation2 + $0x18] sm:$0xff]  ;;  %s5311_s24 = sshll.u32 %s6940_s23, 4  ;;  %s6941_s28 = smov 128   ;;  %s5312_s24 = int_to_ptr.vmem [resolvable:$true] %s5311_s24 }
  0x2e   :  { %6480 = vmatpush.bf16.msra.mxu2 %v6262_v0  ;;  %6481 = vmatpush.bf16.msra.mxu3 %v6262_v0  ;;  %v6257_v5 = vld [vmem:[#allocation2 + $0x10] sm:$0xff]  ;;  %v6256_v6 = vld [vmem:[#allocation2 + $0x8] sm:$0xff]  ;;  %v7085_v7 = vld [vmem:[#allocation2] sm:$0xff]  ;;  %s6942_s29 = smov 8   ;;  %s5326_s9 = sshll.u32 %s8372_s15, 4  ;;  %s5327_s9 = int_to_ptr.hbm [resolvable:$true] %s5326_s9 }
  0x2f   :  { %v7087_v8 = vld [vmem:[#allocation5 + $0x38] sm:$0xff]  ;;  %v6279_v9 = vld [vmem:[#allocation8] sm:$0xff]  ;;  %v6281_v10 = vld [vmem:[#allocation8 + $0x10] sm:$0xff]  ;;  %s6944_s15 = smov [#allocation19]   ;;  %s5300_s0 = sshll.u32 %s8370_s13, 4  ;;  %s5301_s0 = int_to_ptr.hbm [resolvable:$true] %s5300_s0 }
  0x30   :  { %v6283_v11 = vld [vmem:[#allocation8 + $0x20] sm:$0xff]  ;;  %v7091_v12 = vld [vmem:[#allocation7 + $0x38] sm:$0xff]  ;;  %v6285_v13 = vld [vmem:[#allocation8 + $0x30] sm:$0xff]  ;;  %s5298_s26 = sshll.u32 %s6944_s15, 4  ;;  %s5299_s26 = int_to_ptr.vmem [resolvable:$true] %s5298_s26 }
  0x31   :  { %366 = vmatpush.bf16.msra.mxu0 %v6261_v1  ;;  %6482 = vmatpush.bf16.msra.mxu1 %v6261_v1  ;;  %v7095_v14 = vld [vmem:[#allocation5 + $0x30] sm:$0xff]  ;;  %v7102_v16 = vld [vmem:[#allocation5 + $0x28] sm:$0xff]  ;;  %v7108_v18 = vld [vmem:[#allocation5 + $0x20] sm:$0xff] }
  0x32   :  { %6483 = vmatpush.bf16.msra.mxu2 %v6261_v1  ;;  %6484 = vmatpush.bf16.msra.mxu3 %v6261_v1  ;;  %v7099_v15 = vld [vmem:[#allocation7 + $0x30] sm:$0xff]  ;;  %v7105_v17 = vld [vmem:[#allocation7 + $0x28] sm:$0xff]  ;;  %v7111_v19 = vld [vmem:[#allocation7 + $0x20] sm:$0xff] }
  0x33   :  { %v7114_v20 = vld [vmem:[#allocation5 + $0x18] sm:$0xff]  ;;  %v6280_v21 = vld [vmem:[#allocation8 + $0x8] sm:$0xff]  ;;  %v7120_v26 = vld [vmem:[#allocation5 + $0x10] sm:$0xff] }
  0x34   :  { %v6282_v22 = vld [vmem:[#allocation8 + $0x18] sm:$0xff]  ;;  %v6284_v23 = vld [vmem:[#allocation8 + $0x28] sm:$0xff]  ;;  %v7123_v27 = vld [vmem:[#allocation7 + $0x10] sm:$0xff] }
  0x35   :  { %367 = vmatpush.bf16.msra.mxu0 %v6260_v2  ;;  %6485 = vmatpush.bf16.msra.mxu1 %v6260_v2  ;;  %v7117_v24 = vld [vmem:[#allocation7 + $0x18] sm:$0xff]  ;;  %v7126_v28 = vld [vmem:[#allocation5 + $0x8] sm:$0xff]  ;;  %v7132_v30 = vld [vmem:[#allocation5] sm:$0xff] }
  0x36   :  { %6486 = vmatpush.bf16.msra.mxu2 %v6260_v2  ;;  %6487 = vmatpush.bf16.msra.mxu3 %v6260_v2  ;;  %v6286_v25 = vld [vmem:[#allocation8 + $0x38] sm:$0xff]  ;;  %v7129_v29 = vld [vmem:[#allocation7 + $0x8] sm:$0xff]  ;;  %v7135_v31 = vld [vmem:[#allocation7] sm:$0xff] }
  0x37   :  { %v6287_v32 = vld [vmem:[#allocation10] sm:$0xff]  ;;  %v6288_v35 = vld [vmem:[#allocation10 + $0x8] sm:$0xff]  ;;  %v6289_v38 = vld [vmem:[#allocation10 + $0x10] sm:$0xff] }
  0x38   :  { %v6295_v33 = vld [vmem:[#allocation11] sm:$0xff]  ;;  %v6296_v36 = vld [vmem:[#allocation11 + $0x8] sm:$0xff]  ;;  %v6297_v39 = vld [vmem:[#allocation11 + $0x10] sm:$0xff] }
  0x39   :  { %368 = vmatpush.bf16.msra.mxu0 %v6259_v3  ;;  %6488 = vmatpush.bf16.msra.mxu1 %v6259_v3  ;;  %v6303_v34 = vld [vmem:[#allocation13] sm:$0xff]  ;;  %v6304_v37 = vld [vmem:[#allocation13 + $0x8] sm:$0xff]  ;;  %v6305_v40 = vld [vmem:[#allocation13 + $0x10] sm:$0xff] }
  0x3a   :  { %6489 = vmatpush.bf16.msra.mxu2 %v6259_v3  ;;  %6490 = vmatpush.bf16.msra.mxu3 %v6259_v3  ;;  %v6318_v41 = vld [vmem:[#allocation14 + $0x38] sm:$0xff]  ;;  %v6317_v45 = vld [vmem:[#allocation14 + $0x30] sm:$0xff]  ;;  %v6316_v46 = vld [vmem:[#allocation14 + $0x28] sm:$0xff] }
  0x3b   :  { %v6290_v42 = vld [vmem:[#allocation10 + $0x18] sm:$0xff]  ;;  %v6315_v47 = vld [vmem:[#allocation14 + $0x20] sm:$0xff]  ;;  %v6313_v52 = vld [vmem:[#allocation14 + $0x10] sm:$0xff] }
  0x3c   :  { %v6298_v43 = vld [vmem:[#allocation11 + $0x18] sm:$0xff]  ;;  %v6291_v49 = vld [vmem:[#allocation10 + $0x20] sm:$0xff]  ;;  %v6312_v54 = vld [vmem:[#allocation14 + $0x8] sm:$0xff] }
  0x3d   :  { %369 = vmatpush.bf16.msra.mxu0 %v6258_v4  ;;  %6491 = vmatpush.bf16.msra.mxu1 %v6258_v4  ;;  %v6306_v44 = vld [vmem:[#allocation13 + $0x18] sm:$0xff]  ;;  %v6299_v50 = vld [vmem:[#allocation11 + $0x20] sm:$0xff]  ;;  %v6325_v55 = vld [vmem:[#allocation14 + $0x70] sm:$0xff] }
  0x3e   :  { %6492 = vmatpush.bf16.msra.mxu2 %v6258_v4  ;;  %6493 = vmatpush.bf16.msra.mxu3 %v6258_v4  ;;  %v6314_v48 = vld [vmem:[#allocation14 + $0x18] sm:$0xff]  ;;  %v6307_v51 = vld [vmem:[#allocation13 + $0x20] sm:$0xff]  ;;  %v6324_v57 = vld [vmem:[#allocation14 + $0x68] sm:$0xff] }
  0x3f   :  { %v6326_v53 = vld [vmem:[#allocation14 + $0x78] sm:$0xff]  ;;  %v6311_v56 = vld [vmem:[#allocation14] sm:$0xff]  ;;  %v6292_v60 = vld [vmem:[#allocation10 + $0x28] sm:$0xff] }
  0x40   :  { %v6323_v58 = vld [vmem:[#allocation14 + $0x60] sm:$0xff]  ;;  %v6334_v59 = vld [vmem:[#allocation16 + $0x38] sm:$0xff]  ;;  %v6300_v61 = vld [vmem:[#allocation11 + $0x28] sm:$0xff] }
  0x41   :  { %370 = vmatpush.bf16.msra.mxu0 %v6257_v5  ;;  %6494 = vmatpush.bf16.msra.mxu1 %v6257_v5  ;;  %v6342_v62 = vld [vmem:[#allocation16 + $0x78] sm:$0xff]  ;;  %v6308_v63 = vld [vmem:[#allocation13 + $0x28] sm:$0xff] }
  0x42   :  { %6495 = vmatpush.bf16.msra.mxu2 %v6257_v5  ;;  %6496 = vmatpush.bf16.msra.mxu3 %v6257_v5 }
  0x45   :  { %371 = vmatpush.bf16.msra.mxu0 %v6256_v6  ;;  %6497 = vmatpush.bf16.msra.mxu1 %v6256_v6 }
  0x46   :  { %6498 = vmatpush.bf16.msra.mxu2 %v6256_v6  ;;  %6499 = vmatpush.bf16.msra.mxu3 %v6256_v6 }
  0x49   :  { %372 = vmatpush.bf16.msra.mxu0 %v7085_v7  ;;  %6500 = vmatpush.bf16.msra.mxu1 %v7085_v7 }
  0x4a   :  { %6501 = vmatpush.bf16.msra.mxu2 %v7085_v7  ;;  %6502 = vmatpush.bf16.msra.mxu3 %v7085_v7 }
  0x4c   :  { %373 = vmatmul.bf16.vlgmr.msra.gmra.mxu0 %v6279_v9  ;;  %383 = vmatmul.bf16.vlgmr.msra.gmra.mxu1 %v6281_v10  ;;  %v6331_v9 = vld [vmem:[#allocation16 + $0x20] sm:$0xff] }
  0x4d   :  { %478 = vmatpush.bf16.msrb.mxu1 %v6262_v0  ;;  %393 = vmatmul.bf16.vlgmr.msra.gmra.mxu2 %v6283_v11  ;;  %v6322_v0 = vld [vmem:[#allocation14 + $0x58] sm:$0xff]  ;;  %v6339_v10 = vld [vmem:[#allocation16 + $0x60] sm:$0xff] }
  0x4e   :  { %639 = vmatpush.bf16.msrb.mxu2 %v7087_v8  ;;  %800 = vmatpush.bf16.msrb.mxu3 %v7091_v12  ;;  %v6319_v11 = vld [vmem:[#allocation14 + $0x40] sm:$0xff] }
  0x4f   :  { %403 = vmatmul.bf16.vlgmr.msra.gmra.mxu3 %v6285_v13  ;;  %1237 = vmatpush.bf16.msrb.mxu0 %v6318_v41  ;;  %v6330_v13 = vld [vmem:[#allocation16 + $0x18] sm:$0xff]  ;;  %v6336_v41 = vld [vmem:[#allocation16 + $0x48] sm:$0xff] }
  0x51   :  { %479 = vmatpush.bf16.msrb.mxu1 %v6261_v1  ;;  %v6333_v1 = vld [vmem:[#allocation16 + $0x30] sm:$0xff] }
  0x52   :  { %640 = vmatpush.bf16.msrb.mxu2 %v7095_v14  ;;  %801 = vmatpush.bf16.msrb.mxu3 %v7099_v15 }
  0x53   :  { %1238 = vmatpush.bf16.msrb.mxu0 %v6317_v45  ;;  %v6327_v45 = vld [vmem:[#allocation16] sm:$0xff] }
  0x55   :  { %480 = vmatpush.bf16.msrb.mxu1 %v6260_v2  ;;  %v6341_v2 = vld [vmem:[#allocation16 + $0x70] sm:$0xff] }
  0x56   :  { %641 = vmatpush.bf16.msrb.mxu2 %v7102_v16  ;;  %802 = vmatpush.bf16.msrb.mxu3 %v7105_v17 }
  0x57   :  { %1239 = vmatpush.bf16.msrb.mxu0 %v6316_v46 }
  0x59   :  { %481 = vmatpush.bf16.msrb.mxu1 %v6259_v3  ;;  %v6321_v3 = vld [vmem:[#allocation14 + $0x50] sm:$0xff] }
  0x5a   :  { %642 = vmatpush.bf16.msrb.mxu2 %v7108_v18  ;;  %803 = vmatpush.bf16.msrb.mxu3 %v7111_v19 }
  0x5b   :  { %1240 = vmatpush.bf16.msrb.mxu0 %v6315_v47  ;;  %v6335_v47 = vld [vmem:[#allocation16 + $0x40] sm:$0xff] }
  0x5c   :  { %378 = vmatmul.bf16.gmra.mxu0 %v6280_v21  ;;  %388 = vmatmul.bf16.gmra.mxu1 %v6282_v22  ;;  %v6293_v21 = vld [vmem:[#allocation10 + $0x30] sm:$0xff] }
  0x5d   :  { %482 = vmatpush.bf16.msrb.mxu1 %v6258_v4  ;;  %398 = vmatmul.bf16.gmra.mxu2 %v6284_v23  ;;  %v6332_v4 = vld [vmem:[#allocation16 + $0x28] sm:$0xff] }
  0x5e   :  { %643 = vmatpush.bf16.msrb.mxu2 %v7114_v20  ;;  %804 = vmatpush.bf16.msrb.mxu3 %v7117_v24 }
  0x5f   :  { %408 = vmatmul.bf16.gmra.mxu3 %v6286_v25  ;;  %1241 = vmatpush.bf16.msrb.mxu0 %v6314_v48  ;;  %v6301_v25 = vld [vmem:[#allocation11 + $0x30] sm:$0xff] }
  0x61   :  { %483 = vmatpush.bf16.msrb.mxu1 %v6257_v5  ;;  %v6340_v5 = vld [vmem:[#allocation16 + $0x68] sm:$0xff] }
  0x62   :  { %644 = vmatpush.bf16.msrb.mxu2 %v7120_v26  ;;  %805 = vmatpush.bf16.msrb.mxu3 %v7123_v27 }
  0x63   :  { %1242 = vmatpush.bf16.msrb.mxu0 %v6313_v52 }
  0x65   :  { %484 = vmatpush.bf16.msrb.mxu1 %v6256_v6  ;;  %v6320_v6 = vld [vmem:[#allocation14 + $0x48] sm:$0xff] }
  0x66   :  { %645 = vmatpush.bf16.msrb.mxu2 %v7126_v28  ;;  %806 = vmatpush.bf16.msrb.mxu3 %v7129_v29 }
  0x67   :  { %1243 = vmatpush.bf16.msrb.mxu0 %v6312_v54 }
  0x69   :  { %485 = vmatpush.bf16.msrb.mxu1 %v7085_v7 }
  0x6a   :  { %646 = vmatpush.bf16.msrb.mxu2 %v7132_v30  ;;  %807 = vmatpush.bf16.msrb.mxu3 %v7135_v31 }
  0x6b   :  { %1244 = vmatpush.bf16.msrb.mxu0 %v6311_v56 }
  0x6c   :  { %486 = vmatmul.bf16.vlgmr.msrb.gmra.mxu1 %v6287_v32  ;;  %v6338_v32 = vld [vmem:[#allocation16 + $0x58] sm:$0xff] }
  0x6d   :  { %647 = vmatmul.bf16.vlgmr.msrb.gmra.mxu2 %v6295_v33  ;;  %1286 = vmatpush.bf16.msra.mxu1 %v6326_v53  ;;  %v6309_v33 = vld [vmem:[#allocation13 + $0x30] sm:$0xff]  ;;  %v6302_v53 = vld [vmem:[#allocation11 + $0x38] sm:$0xff] }
  0x6e   :  { %1467 = vmatpush.bf16.msra.mxu2 %v6334_v59  ;;  %1516 = vmatpush.bf16.msra.mxu3 %v6342_v62 }
  0x6f   :  { %808 = vmatmul.bf16.vlgmr.msrb.gmra.mxu3 %v6303_v34  ;;  %v6329_v34 = vld [vmem:[#allocation16 + $0x10] sm:$0xff] }
  0x71   :  { %1287 = vmatpush.bf16.msra.mxu1 %v6325_v55  ;;  %v6310_v55 = vld [vmem:[#allocation13 + $0x38] sm:$0xff] }
  0x72   :  { %1468 = vmatpush.bf16.msra.mxu2 %v6333_v1  ;;  %1517 = vmatpush.bf16.msra.mxu3 %v6341_v2 }
  0x75   :  { %1288 = vmatpush.bf16.msra.mxu1 %v6324_v57 }
  0x76   :  { %1469 = vmatpush.bf16.msra.mxu2 %v6332_v4  ;;  %1518 = vmatpush.bf16.msra.mxu3 %v6340_v5 }
  0x79   :  { %1289 = vmatpush.bf16.msra.mxu1 %v6323_v58 }
  0x7a   :  { %1470 = vmatpush.bf16.msra.mxu2 %v6331_v9  ;;  %1519 = vmatpush.bf16.msra.mxu3 %v6339_v10 }
  0x7c   :  { %491 = vmatmul.bf16.gmra.mxu1 %v6288_v35  ;;  %v6337_v35 = vld [vmem:[#allocation16 + $0x50] sm:$0xff] }
  0x7d   :  { %652 = vmatmul.bf16.gmra.mxu2 %v6296_v36  ;;  %1290 = vmatpush.bf16.msra.mxu1 %v6322_v0 }
  0x7e   :  { %1471 = vmatpush.bf16.msra.mxu2 %v6330_v13  ;;  %1520 = vmatpush.bf16.msra.mxu3 %v6338_v32 }
  0x7f   :  { %813 = vmatmul.bf16.gmra.mxu3 %v6304_v37  ;;  %v6328_v37 = vld [vmem:[#allocation16 + $0x8] sm:$0xff] }
  0x81   :  { %1291 = vmatpush.bf16.msra.mxu1 %v6321_v3 }
  0x82   :  { %1472 = vmatpush.bf16.msra.mxu2 %v6329_v34  ;;  %1521 = vmatpush.bf16.msra.mxu3 %v6337_v35 }
  0x85   :  { %1292 = vmatpush.bf16.msra.mxu1 %v6320_v6 }
  0x86   :  { %1473 = vmatpush.bf16.msra.mxu2 %v6328_v37  ;;  %1522 = vmatpush.bf16.msra.mxu3 %v6336_v41 }
  0x89   :  { %1293 = vmatpush.bf16.msra.mxu1 %v6319_v11 }
  0x8a   :  { %1474 = vmatpush.bf16.msra.mxu2 %v6327_v45  ;;  %1523 = vmatpush.bf16.msra.mxu3 %v6335_v47 }
  0x8c   :  { %496 = vmatmul.bf16.gmra.mxu1 %v6289_v38 }
  0x8d   :  { %657 = vmatmul.bf16.gmra.mxu2 %v6297_v39 }
  0x8f   :  { %818 = vmatmul.bf16.gmra.mxu3 %v6305_v40 }
  0x9c   :  { %501 = vmatmul.bf16.gmra.mxu1 %v6290_v42 }
  0x9d   :  { %662 = vmatmul.bf16.gmra.mxu2 %v6298_v43 }
  0x9f   :  { %823 = vmatmul.bf16.gmra.mxu3 %v6306_v44 }
  0xac   :  { %506 = vmatmul.bf16.gmra.mxu1 %v6291_v49 }
  0xad   :  { %667 = vmatmul.bf16.gmra.mxu2 %v6299_v50  ;;  %v6294_v50 = vld [vmem:[#allocation10 + $0x38] sm:$0xff] }
  0xaf   :  { %828 = vmatmul.bf16.gmra.mxu3 %v6307_v51 }
  0xbc   :  { %511 = vmatmul.bf16.gmra.mxu1 %v6292_v60 }
  0xbd   :  { %672 = vmatmul.bf16.gmra.mxu2 %v6300_v61 }
  0xbf   :  { %833 = vmatmul.bf16.gmra.mxu3 %v6308_v63 }
  0xc9   :  { %v374_v22 = vpop.f32.mrf.mxu0  ;;  %v7140_v23 = vpop.f32.mrf.mxu1 }
  0xca   :  { %v849_v36 = vpack.c.bf16 %v374_v22, %v374_v22  ;;  %v853_v5 = vpack.c.bf16 %v7140_v23, %v7140_v23 }
  0xcc   :  { %516 = vmatmul.bf16.gmra.mxu1 %v6293_v21  ;;  %v881_v42 = vunpack.c.l.b16 %v849_v36  ;;  %v885_v22 = vunpack.c.l.b16 %v853_v5 }
  0xcd   :  { %677 = vmatmul.bf16.gmra.mxu2 %v6301_v25 }
  0xcf   :  { %838 = vmatmul.bf16.gmra.mxu3 %v6309_v33 }
  0xd0   :  { %v7142_v38 = vpop.f32.mrf.mxu2 }
  0xd1   :  { %v376_v39 = vpop.f32.mrf.mxu0  ;;  %v386_v40 = vpop.f32.mrf.mxu1 }
  0xd2   :  { %v850_v43 = vpack.c.bf16 %v376_v39, %v376_v39  ;;  %v7144_v44 = vpop.f32.mrf.mxu3  ;;  %v854_v4 = vpack.c.bf16 %v386_v40, %v386_v40 }
  0xd4   :  { %v882_v46 = vunpack.c.l.b16 %v850_v43  ;;  %v886_v11 = vunpack.c.l.b16 %v854_v4 }
  0xd6   :  { %v897_v48 = vpack.c.b16 %v882_v46, %v881_v42  ;;  %v899_v35 = vpack.c.b16 %v886_v11, %v885_v22 }
  0xd8   :  { %1245 = vmatmul.bf16.vlgmr.msrb.gmra.mxu0 %v897_v48  ;;  %v7146_v49 = vpop.f32.mrf.mxu2 }
  0xd9   :  { %v379_v51 = vpop.f32.mrf.mxu0  ;;  %v389_v52 = vpop.f32.mrf.mxu1 }
  0xda   :  { %v7148_v54 = vpop.f32.mrf.mxu3  ;;  %v851_v56 = vpack.c.bf16 %v379_v51, %v379_v51  ;;  %v855_v48 = vpack.c.bf16 %v389_v52, %v389_v52 }
  0xdc   :  { %521 = vmatmul.bf16.gmra.mxu1 %v6294_v50  ;;  %v883_v60 = vunpack.c.l.b16 %v851_v56 }
  0xdd   :  { %682 = vmatmul.bf16.gmra.mxu2 %v6302_v53 }
  0xdf   :  { %843 = vmatmul.bf16.gmra.mxu3 %v6310_v55 }
  0xe0   :  { %v7150_v57 = vpop.f32.mrf.mxu2 }
  0xe1   :  { %v381_v58 = vpop.f32.mrf.mxu0  ;;  %v391_v59 = vpop.f32.mrf.mxu1 }
  0xe2   :  { %v852_v61 = vpack.c.bf16 %v381_v58, %v381_v58  ;;  %v7152_v62 = vpop.f32.mrf.mxu3  ;;  %v856_v46 = vpack.c.bf16 %v391_v59, %v391_v59 }
  0xe4   :  { %v884_v63 = vunpack.c.l.b16 %v852_v61  ;;  %v888_v55 = vunpack.c.l.b16 %v856_v46 }
  0xe6   :  { %v898_v0 = vpack.c.b16 %v884_v63, %v883_v60 }
  0xe8   :  { %1250 = vmatmul.bf16.gmra.mxu0 %v898_v0  ;;  %v7154_v1 = vpop.f32.mrf.mxu2 }
  0xe9   :  { %v487_v2 = vpop.f32.mrf.mxu1 }
  0xea   :  { %v7156_v3 = vpop.f32.mrf.mxu3  ;;  %v913_v6 = vpack.c.bf16 %v487_v2, %v487_v2 }
  0xec   :  { %1294 = vmatmul.bf16.vlgmr.msra.gmra.mxu1 %v7132_v30  ;;  %v945_v25 = vunpack.c.l.b16 %v913_v6 }
  0xef   :  { %1524 = vmatmul.bf16.vlgmr.msra.gmra.mxu3 %v7135_v31 }
  0xf0   :  { %v648_v9 = vpop.f32.mrf.mxu2 }
  0xf1   :  { %v489_v10 = vpop.f32.mrf.mxu1  ;;  %v977_v33 = vpack.c.bf16 %v648_v9, %v648_v9  ;;  %v861_v9 = vpack.c.bf16 %v7144_v44, %v7144_v44 }
  0xf2   :  { %v914_v13 = vpack.c.bf16 %v489_v10, %v489_v10  ;;  %v809_v21 = vpop.f32.mrf.mxu3  ;;  %v862_v10 = vpack.c.bf16 %v7148_v54, %v7148_v54 }
  0xf3   :  { %v993_v36 = vpack.c.bf16 %v809_v21, %v809_v21  ;;  %v7162_v31 = vunpack.c.l.b16 %v977_v33  ;;  %v858_v21 = vpack.c.bf16 %v7146_v49, %v7146_v49  ;;  %v7196_v22 = vunpack.c.l.b16 %v861_v9 }
  0xf4   :  { %v946_v32 = vunpack.c.l.b16 %v914_v13  ;;  %v857_v13 = vpack.c.bf16 %v7142_v38, %v7142_v38 }
  0xf5   :  { %v7166_v41 = vunpack.c.l.b16 %v993_v36 }
  0xf6   :  { %v961_v34 = vpack.c.b16 %v946_v32, %v945_v25  ;;  %v7198_v25 = vunpack.c.l.b16 %v862_v10  ;;  %v889_v33 = vunpack.c.l.b16 %v857_v13 }
  0xf8   :  { %1255 = vmatmul.bf16.gmra.mxu0 %v899_v35  ;;  %1475 = vmatmul.bf16.vlgmr.msra.gmra.mxu2 %v961_v34  ;;  %v650_v30 = vpop.f32.mrf.mxu2  ;;  %v903_v38 = vpack.c.b16 %v7198_v25, %v7196_v22  ;;  %v6353_v25 = vld [vmem:[#allocation17 + $0x50] sm:$0xff] }
  0xf9   :  { %v492_v37 = vpop.f32.mrf.mxu1  ;;  %v978_v23 = vpack.c.bf16 %v650_v30, %v650_v30 }
  0xfa   :  { %v811_v39 = vpop.f32.mrf.mxu3  ;;  %v915_v50 = vpack.c.bf16 %v492_v37, %v492_v37 }
  0xfb   :  { %v7164_v40 = vunpack.c.l.b16 %v978_v23  ;;  %v994_v42 = vpack.c.bf16 %v811_v39, %v811_v39  ;;  %v6350_v23 = vld [vmem:[#allocation17 + $0x38] sm:$0xff] }
  0xfc   :  { %1299 = vmatmul.bf16.gmra.mxu1 %v7126_v28  ;;  %v887_v28 = vunpack.c.l.b16 %v855_v48  ;;  %v947_v60 = vunpack.c.l.b16 %v915_v50  ;;  %1761 = vmatpush.bf16.msra.mxu0 %v6350_v23  ;;  %v6344_v23 = vld [vmem:[#allocation17 + $0x8] sm:$0xff] }
  0xfd   :  { %v1041_v43 = vpack.c.b16 %v7164_v40, %v7162_v31  ;;  %v7171_v45 = vunpack.c.l.b16 %v994_v42 }
  0xfe   :  { %v900_v0 = vpack.c.b16 %v888_v55, %v887_v28  ;;  %v863_v55 = vpack.c.bf16 %v7152_v62, %v7152_v62 }
  0xff   :  { %1529 = vmatmul.bf16.gmra.mxu3 %v7129_v29  ;;  %v1089_v47 = vpack.c.b16 %v7171_v45, %v7166_v41 }
 0x100   :  { %v653_v51 = vpop.f32.mrf.mxu2 }
 0x101   :  { %v494_v53 = vpop.f32.mrf.mxu1  ;;  %v979_v63 = vpack.c.bf16 %v653_v51, %v653_v51 }
 0x102   :  { %v916_v56 = vpack.c.bf16 %v494_v53, %v494_v53  ;;  %v7176_v58 = vpop.f32.mrf.mxu3  ;;  %v6349_v53 = vld [vmem:[#allocation17 + $0x30] sm:$0xff] }
 0x103   :  { %v7178_v59 = vunpack.c.l.b16 %v979_v63  ;;  %1762 = vmatpush.bf16.msra.mxu0 %v6349_v53  ;;  %v6348_v63 = vld [vmem:[#allocation17 + $0x28] sm:$0xff] }
 0x104   :  { %v948_v61 = vunpack.c.l.b16 %v916_v56  ;;  %v864_v56 = vpack.c.bf16 %v7156_v3, %v7156_v3 }
 0x106   :  { %v962_v2 = vpack.c.b16 %v948_v61, %v947_v60  ;;  %v859_v60 = vpack.c.bf16 %v7150_v57, %v7150_v57  ;;  %v860_v61 = vpack.c.bf16 %v7154_v1, %v7154_v1  ;;  %v7224_v62 = vunpack.c.l.b16 %v864_v56  ;;  %v6347_v57 = vld [vmem:[#allocation17 + $0x20] sm:$0xff] }
 0x107   :  { %1763 = vmatpush.bf16.msra.mxu0 %v6348_v63 }
 0x108   :  { %1260 = vmatmul.bf16.gmra.mxu0 %v900_v0  ;;  %1480 = vmatmul.bf16.gmra.mxu2 %v962_v2  ;;  %v655_v29 = vpop.f32.mrf.mxu2  ;;  %v7222_v0 = vunpack.c.l.b16 %v863_v55 }
 0x109   :  { %v497_v4 = vpop.f32.mrf.mxu1  ;;  %v980_v52 = vpack.c.bf16 %v655_v29, %v655_v29  ;;  %v891_v29 = vunpack.c.l.b16 %v859_v60  ;;  %v6343_v60 = vld [vmem:[#allocation17] sm:$0xff] }
 0x10a   :  { %v7180_v5 = vpop.f32.mrf.mxu3  ;;  %v917_v44 = vpack.c.bf16 %v497_v4, %v497_v4  ;;  %v892_v4 = vunpack.c.l.b16 %v860_v61  ;;  %v6356_v61 = vld [vmem:[#allocation17 + $0x68] sm:$0xff] }
 0x10b   :  { %v7182_v6 = vunpack.c.l.b16 %v980_v52  ;;  %1764 = vmatpush.bf16.msra.mxu0 %v6347_v57 }
 0x10c   :  { %1304 = vmatmul.bf16.gmra.mxu1 %v7120_v26  ;;  %v890_v26 = vunpack.c.l.b16 %v858_v21  ;;  %v949_v36 = vunpack.c.l.b16 %v917_v44  ;;  %v902_v21 = vpack.c.b16 %v892_v4, %v891_v29 }
 0x10d   :  { %v1042_v11 = vpack.c.b16 %v7182_v6, %v7178_v59 }
 0x10e   :  { %v901_v37 = vpack.c.b16 %v890_v26, %v889_v33 }
 0x10f   :  { %1534 = vmatmul.bf16.gmra.mxu3 %v7123_v27 }
 0x110   :  { %v658_v32 = vpop.f32.mrf.mxu2 }
 0x111   :  { %v499_v54 = vpop.f32.mrf.mxu1  ;;  %v981_v49 = vpack.c.bf16 %v658_v32, %v658_v32  ;;  %v6346_v32 = vld [vmem:[#allocation17 + $0x18] sm:$0xff] }
 0x112   :  { %v918_v34 = vpack.c.bf16 %v499_v54, %v499_v54  ;;  %v7200_v35 = vpop.f32.mrf.mxu3  ;;  %1765 = vmatpush.bf16.msra.mxu0 %v6346_v32 }
 0x113   :  { %v7204_v42 = vunpack.c.l.b16 %v981_v49  ;;  %v6345_v49 = vld [vmem:[#allocation17 + $0x10] sm:$0xff] }
 0x114   :  { %v950_v30 = vunpack.c.l.b16 %v918_v34 }
 0x116   :  { %v963_v27 = vpack.c.b16 %v950_v30, %v949_v36  ;;  %1766 = vmatpush.bf16.msra.mxu0 %v6345_v49  ;;  %v6352_v49 = vld [vmem:[#allocation17 + $0x48] sm:$0xff] }
 0x118   :  { %1265 = vmatmul.bf16.gmra.mxu0 %v901_v37  ;;  %1485 = vmatmul.bf16.gmra.mxu2 %v963_v27  ;;  %v660_v39 = vpop.f32.mrf.mxu2  ;;  %v6358_v37 = vld [vmem:[#allocation17 + $0x78] sm:$0xff] }
 0x119   :  { %v502_v46 = vpop.f32.mrf.mxu1  ;;  %v982_v48 = vpack.c.bf16 %v660_v39, %v660_v39  ;;  %1810 = vmatpush.bf16.msrb.mxu1 %v6358_v37  ;;  %v6357_v39 = vld [vmem:[#allocation17 + $0x70] sm:$0xff]  ;;  %v6363_v37 = vld [vmem:[#allocation17 + $0xa0] sm:$0xff] }
 0x11a   :  { %v7206_v50 = vpop.f32.mrf.mxu3  ;;  %v919_v3 = vpack.c.bf16 %v502_v46, %v502_v46  ;;  %1767 = vmatpush.bf16.msra.mxu0 %v6344_v23 }
 0x11b   :  { %v7208_v51 = vunpack.c.l.b16 %v982_v48 }
 0x11c   :  { %1309 = vmatmul.bf16.gmra.mxu1 %v7114_v20  ;;  %v951_v10 = vunpack.c.l.b16 %v919_v3 }
 0x11d   :  { %v1043_v28 = vpack.c.b16 %v7208_v51, %v7204_v42  ;;  %1811 = vmatpush.bf16.msrb.mxu1 %v6357_v39 }
 0x11e   :  { %1768 = vmatpush.bf16.msra.mxu0 %v6343_v60 }
 0x11f   :  { %1539 = vmatmul.bf16.gmra.mxu3 %v7117_v24  ;;  %v904_v24 = vpack.c.b16 %v7224_v62, %v7222_v0  ;;  %v6360_v62 = vld [vmem:[#allocation17 + $0x88] sm:$0xff] }
 0x120   :  { %v663_v2 = vpop.f32.mrf.mxu2 }
 0x121   :  { %v504_v20 = vpop.f32.mrf.mxu1  ;;  %v983_v1 = vpack.c.bf16 %v663_v2, %v663_v2  ;;  %1812 = vmatpush.bf16.msrb.mxu1 %v6356_v61 }
 0x122   :  { %v920_v52 = vpack.c.bf16 %v504_v20, %v504_v20  ;;  %v7226_v9 = vpop.f32.mrf.mxu3  ;;  %v6355_v20 = vld [vmem:[#allocation17 + $0x60] sm:$0xff] }
 0x123   :  { %v7230_v33 = vunpack.c.l.b16 %v983_v1  ;;  %v6354_v1 = vld [vmem:[#allocation17 + $0x58] sm:$0xff] }
 0x124   :  { %v952_v13 = vunpack.c.l.b16 %v920_v52 }
 0x125   :  { %1813 = vmatpush.bf16.msrb.mxu1 %v6355_v20 }
 0x126   :  { %v964_v44 = vpack.c.b16 %v952_v13, %v951_v10 }
 0x128   :  { %1270 = vmatmul.bf16.gmra.mxu0 %v902_v21  ;;  %1490 = vmatmul.bf16.gmra.mxu2 %v964_v44  ;;  %v665_v54 = vpop.f32.mrf.mxu2  ;;  %v6365_v21 = vld [vmem:[#allocation17 + $0xb0] sm:$0xff] }
 0x129   :  { %v507_v26 = vpop.f32.mrf.mxu1  ;;  %v984_v34 = vpack.c.bf16 %v665_v54, %v665_v54  ;;  %1814 = vmatpush.bf16.msrb.mxu1 %v6354_v1 }
 0x12a   :  { %v7232_v36 = vpop.f32.mrf.mxu3  ;;  %v921_v46 = vpack.c.bf16 %v507_v26, %v507_v26 }
 0x12b   :  { %v7234_v30 = vunpack.c.l.b16 %v984_v34 }
 0x12c   :  { %1314 = vmatmul.bf16.gmra.mxu1 %v7108_v18  ;;  %v953_v18 = vunpack.c.l.b16 %v921_v46 }
 0x12d   :  { %v1044_v27 = vpack.c.b16 %v7234_v30, %v7230_v33  ;;  %1815 = vmatpush.bf16.msrb.mxu1 %v6353_v25 }
 0x12f   :  { %1544 = vmatmul.bf16.gmra.mxu3 %v7111_v19  ;;  %v6366_v19 = vld [vmem:[#allocation17 + $0xb8] sm:$0xff] }
 0x130   :  { %v668_v48 = vpop.f32.mrf.mxu2  ;;  %1859 = vmatpush.bf16.msrb.mxu2 %v6366_v19  ;;  %v995_v19 = vpack.c.bf16 %v7176_v58, %v7176_v58 }
 0x131   :  { %v509_v53 = vpop.f32.mrf.mxu1  ;;  %v985_v3 = vpack.c.bf16 %v668_v48, %v668_v48  ;;  %1816 = vmatpush.bf16.msrb.mxu1 %v6352_v49  ;;  %v6351_v48 = vld [vmem:[#allocation17 + $0x40] sm:$0xff] }
 0x132   :  { %v922_v55 = vpack.c.bf16 %v509_v53, %v509_v53  ;;  %v7240_v56 = vpop.f32.mrf.mxu3 }
 0x133   :  { %v7245_v4 = vunpack.c.l.b16 %v985_v3  ;;  %v6361_v3 = vld [vmem:[#allocation17 + $0x90] sm:$0xff] }
 0x134   :  { %v954_v63 = vunpack.c.l.b16 %v922_v55  ;;  %1860 = vmatpush.bf16.msrb.mxu2 %v6365_v21 }
 0x135   :  { %1817 = vmatpush.bf16.msrb.mxu1 %v6351_v48  ;;  %v998_v48 = vpack.c.bf16 %v7206_v50, %v7206_v50 }
 0x136   :  { %v965_v2 = vpack.c.b16 %v954_v63, %v953_v18 }
 0x138   :  { %1275 = vmatmul.bf16.gmra.mxu0 %v903_v38  ;;  %1495 = vmatmul.bf16.gmra.mxu2 %v965_v2  ;;  %v670_v29 = vpop.f32.mrf.mxu2  ;;  %v6364_v38 = vld [vmem:[#allocation17 + $0xa8] sm:$0xff] }
 0x139   :  { %v512_v52 = vpop.f32.mrf.mxu1  ;;  %v986_v57 = vpack.c.bf16 %v670_v29, %v670_v29  ;;  %1861 = vmatpush.bf16.msrb.mxu2 %v6364_v38  ;;  %v996_v29 = vpack.c.bf16 %v7180_v5, %v7180_v5 }
 0x13a   :  { %v7247_v10 = vpop.f32.mrf.mxu3  ;;  %v923_v44 = vpack.c.bf16 %v512_v52, %v512_v52 }
 0x13b   :  { %v7249_v13 = vunpack.c.l.b16 %v986_v57 }
 0x13c   :  { %1319 = vmatmul.bf16.gmra.mxu1 %v7102_v16  ;;  %v955_v16 = vunpack.c.l.b16 %v923_v44  ;;  %v7278_v44 = vunpack.c.l.b16 %v996_v29 }
 0x13d   :  { %v1045_v22 = vpack.c.b16 %v7249_v13, %v7245_v4  ;;  %1862 = vmatpush.bf16.msrb.mxu2 %v6363_v37 }
 0x13f   :  { %1549 = vmatmul.bf16.gmra.mxu3 %v7105_v17  ;;  %v6362_v17 = vld [vmem:[#allocation17 + $0x98] sm:$0xff] }
 0x140   :  { %v673_v32 = vpop.f32.mrf.mxu2 }
 0x141   :  { %v514_v54 = vpop.f32.mrf.mxu1  ;;  %v987_v39 = vpack.c.bf16 %v673_v32, %v673_v32  ;;  %1863 = vmatpush.bf16.msrb.mxu2 %v6362_v17  ;;  %v7302_v17 = vld [vmem:[%s8367_s10] ss:$0 sm:$0xff] }
 0x142   :  { %v924_v26 = vpack.c.bf16 %v514_v54, %v514_v54  ;;  %v7255_v34 = vpop.f32.mrf.mxu3 }
 0x143   :  { %v7260_v55 = vunpack.c.l.b16 %v987_v39 }
 0x144   :  { %v956_v23 = vunpack.c.l.b16 %v924_v26 }
 0x145   :  { %1864 = vmatpush.bf16.msrb.mxu2 %v6361_v3 }
 0x146   :  { %v966_v46 = vpack.c.b16 %v956_v23, %v955_v16 }
 0x148   :  { %1280 = vmatmul.bf16.gmra.mxu0 %v904_v24  ;;  %1500 = vmatmul.bf16.gmra.mxu2 %v966_v46  ;;  %v675_v53 = vpop.f32.mrf.mxu2  ;;  %v997_v46 = vpack.c.bf16 %v7200_v35, %v7200_v35 }
 0x149   :  { %v517_v60 = vpop.f32.mrf.mxu1  ;;  %v988_v61 = vpack.c.bf16 %v675_v53, %v675_v53  ;;  %1865 = vmatpush.bf16.msrb.mxu2 %v6360_v62 }
 0x14a   :  { %v7262_v18 = vpop.f32.mrf.mxu3  ;;  %v925_v24 = vpack.c.bf16 %v517_v60, %v517_v60  ;;  %v7306_v62 = vunpack.c.l.b16 %v997_v46 }
 0x14b   :  { %v7264_v63 = vunpack.c.l.b16 %v988_v61 }
 0x14c   :  { %1324 = vmatmul.bf16.gmra.mxu1 %v7095_v14  ;;  %v6359_v14 = vld [vmem:[#allocation17 + $0x80] sm:$0xff]  ;;  %v957_v1 = vunpack.c.l.b16 %v925_v24  ;;  %v7308_v24 = vunpack.c.l.b16 %v998_v48 }
 0x14d   :  { %v1046_v0 = vpack.c.b16 %v7264_v63, %v7260_v55  ;;  %1866 = vmatpush.bf16.msrb.mxu2 %v6359_v14 }
 0x14f   :  { %1554 = vmatmul.bf16.gmra.mxu3 %v7099_v15  ;;  %v7276_v15 = vunpack.c.l.b16 %v995_v19 }
 0x150   :  { %v678_v2 = vpop.f32.mrf.mxu2 }
 0x151   :  { %v519_v20 = vpop.f32.mrf.mxu1  ;;  %v989_v25 = vpack.c.bf16 %v678_v2, %v678_v2  ;;  %v1090_v37 = vpack.c.b16 %v7278_v44, %v7276_v15 }
 0x152   :  { %v926_v52 = vpack.c.bf16 %v519_v20, %v519_v20  ;;  %v7274_v57 = vpop.f32.mrf.mxu3 }
 0x153   :  { %v7283_v5 = vunpack.c.l.b16 %v989_v25 }
 0x154   :  { %v958_v21 = vunpack.c.l.b16 %v926_v52 }
 0x155   :  { %v1246_v38 = vpop.f32.mrf.mxu0 }
 0x156   :  { %v967_v32 = vpack.c.b16 %v958_v21, %v957_v1  ;;  %v1247_v35 = vadd.f32 %v7302_v17, %v1246_v38  ;;  %v1091_v1 = vpack.c.b16 %v7308_v24, %v7306_v62 }
 0x158   :  { %1505 = vmatmul.bf16.gmra.mxu2 %v967_v32  ;;  %1769 = vmatmul.bf16.vlgmr.msra.gmra.mxu0 %v1041_v43  ;;  %v680_v58 = vpop.f32.mrf.mxu2  ;;  %v999_v32 = vpack.c.bf16 %v7226_v9, %v7226_v9  ;;  %v7344_v9 = vld [vmem:[%s8368_s11] ss:$0 sm:$0xff] }
 0x159   :  { %v522_v54 = vpop.f32.mrf.mxu1  ;;  %v990_v26 = vpack.c.bf16 %v680_v58, %v680_v58  ;;  %v1000_v58 = vpack.c.bf16 %v7232_v36, %v7232_v36 }
 0x15a   :  { %v7285_v49 = vpop.f32.mrf.mxu3  ;;  %v927_v31 = vpack.c.bf16 %v522_v54, %v522_v54 }
 0x15b   :  { %v7289_v16 = vunpack.c.l.b16 %v990_v26 }
 0x15c   :  { %1329 = vmatmul.bf16.gmra.mxu1 %v7087_v8  ;;  %v959_v60 = vunpack.c.l.b16 %v927_v31 }
 0x15d   :  { %v1248_v23 = vpop.f32.mrf.mxu0  ;;  %v1047_v39 = vpack.c.b16 %v7289_v16, %v7283_v5  ;;  %v1005_v16 = vpack.c.bf16 %v7274_v57, %v7274_v57 }
 0x15e   :  { %v1249_v6 = vadd.f32 %v7302_v17, %v1248_v23 }
 0x15f   :  { %1559 = vmatmul.bf16.gmra.mxu3 %v7091_v12 }
 0x160   :  { %v683_v40 = vpop.f32.mrf.mxu2 }
 0x161   :  { %v524_v43 = vpop.f32.mrf.mxu1  ;;  %v991_v12 = vpack.c.bf16 %v683_v40, %v683_v40  ;;  %v7332_v40 = vunpack.c.l.b16 %v999_v32 }
 0x162   :  { %v928_v8 = vpack.c.bf16 %v524_v43, %v524_v43  ;;  %v7304_v53 = vpop.f32.mrf.mxu3  ;;  %v7334_v43 = vunpack.c.l.b16 %v1000_v58 }
 0x163   :  { %v7314_v20 = vunpack.c.l.b16 %v991_v12 }
 0x164   :  { %v960_v61 = vunpack.c.l.b16 %v928_v8 }
 0x165   :  { %v1251_v3 = vpop.f32.mrf.mxu0 }
 0x166   :  { %v968_v2 = vpack.c.b16 %v960_v61, %v959_v60  ;;  %v1252_v23 = vadd.f32 %v7302_v17, %v1251_v3  ;;  %v1092_v3 = vpack.c.b16 %v7334_v43, %v7332_v40 }
 0x168   :  { %1510 = vmatmul.bf16.gmra.mxu2 %v968_v2  ;;  %1774 = vmatmul.bf16.gmra.mxu0 %v1042_v11  ;;  %v685_v50 = vpop.f32.mrf.mxu2 }
 0x169   :  { %v1295_v19 = vpop.f32.mrf.mxu1  ;;  %v992_v29 = vpack.c.bf16 %v685_v50, %v685_v50 }
 0x16a   :  { %v1296_v52 = vadd.f32 %v1295_v19, %v1247_v35  ;;  %v7316_v14 = vpop.f32.mrf.mxu3 }
 0x16b   :  { %v7320_v21 = vunpack.c.l.b16 %v992_v29 }
 0x16c   :  { %1818 = vmatmul.bf16.vlgmr.msrb.gmra.mxu1 %v1089_v47  ;;  %v1924_v11 = vmul.f32 0.01, %v1296_v52  ;;  %vm1908_vm0 = vcmp.gt.f32.partialorder %v1296_v52, 0.0 }
 0x16d   :  { %v1253_v25 = vpop.f32.mrf.mxu0  ;;  %v1048_v59 = vpack.c.b16 %v7320_v21, %v7314_v20 }
 0x16e   :  { %v1940_v54 = vsel %vm1908_vm0, %v1296_v52, %v1924_v11  ;;  %v1254_v51 = vadd.f32 %v7302_v17, %v1253_v25 }
 0x16f   :  { %v2052_v45 = vpack.c.bf16 %v1940_v54, %v1940_v54 }
 0x171   :  { %v1297_v38 = vpop.f32.mrf.mxu1  ;;  %v2262_v36 = vunpack.c.l.b16 %v2052_v45  ;;  %v6529_v45 = vld [vmem:[#allocation2 + $0x8] sm:$0xff] }
 0x172   :  { %v1298_v26 = vadd.f32 %v1297_v38, %v1249_v6  ;;  %v1525_v31 = vpop.f32.mrf.mxu3 }
 0x174   :  { %vm1909_vm1 = vcmp.gt.f32.partialorder %v1298_v26, 0.0  ;;  %v1925_v41 = vmul.f32 0.01, %v1298_v26 }
 0x175   :  { %v1256_v47 = vpop.f32.mrf.mxu0 }
 0x176   :  { %v1941_v46 = vsel %vm1909_vm1, %v1298_v26, %v1925_v41 }
 0x177   :  { %v2053_v48 = vpack.c.bf16 %v1941_v46, %v1941_v46 }
 0x178   :  { %1779 = vmatmul.bf16.gmra.mxu0 %v1043_v28  ;;  %1867 = vmatmul.bf16.vlgmr.msrb.gmra.mxu2 %v7085_v7 }
 0x179   :  { %v1300_v8 = vpop.f32.mrf.mxu1  ;;  %v2263_v60 = vunpack.c.l.b16 %v2053_v48 }
 0x17a   :  { %v1301_v61 = vadd.f32 %v1300_v8, %v1252_v23  ;;  %v1527_v12 = vpop.f32.mrf.mxu3 }
 0x17b   :  { %v1476_v35 = vpop.f32.mrf.mxu2  ;;  %v7348_v2 = vpack.c.b16 %v2263_v60, %v2262_v36 }
 0x17c   :  { %v1477_v42 = vadd.f32 %v7344_v9, %v1476_v35  ;;  %1823 = vmatmul.bf16.gmra.mxu1 %v1090_v37  ;;  %v1926_v28 = vmul.f32 0.01, %v1301_v61  ;;  %vm1910_vm2 = vcmp.gt.f32.partialorder %v1301_v61, 0.0 }
 0x17d   :  { %v1258_v7 = vpop.f32.mrf.mxu0 }
 0x17e   :  { %v1526_v50 = vadd.f32 %v1525_v31, %v1477_v42  ;;  %v1942_v29 = vsel %vm1910_vm2, %v1301_v61, %v1926_v28  ;;  %v1257_v31 = vadd.f32 %v7302_v17, %v1256_v47 }
 0x17f   :  { %v2054_v54 = vpack.c.bf16 %v1942_v29, %v1942_v29 }
 0x180   :  { %v1972_v52 = vmul.f32 0.01, %v1526_v50  ;;  %vm1956_vm3 = vcmp.gt.f32.partialorder %v1526_v50, 0.0 }
 0x181   :  { %v1302_v19 = vpop.f32.mrf.mxu1  ;;  %v2264_v23 = vunpack.c.l.b16 %v2054_v54 }
 0x182   :  { %v1303_v6 = vadd.f32 %v1302_v19, %v1254_v51  ;;  %v1530_v11 = vpop.f32.mrf.mxu3  ;;  %v1988_v44 = vsel %vm1956_vm3, %v1526_v50, %v1972_v52  ;;  %v1259_v19 = vadd.f32 %v7302_v17, %v1258_v7 }
 0x183   :  { %v1478_v38 = vpop.f32.mrf.mxu2  ;;  %v2068_v46 = vpack.c.bf16 %v1988_v44, %v1988_v44 }
 0x184   :  { %vm1911_vm4 = vcmp.gt.f32.partialorder %v1303_v6, 0.0  ;;  %v1927_v32 = vmul.f32 0.01, %v1303_v6  ;;  %v1479_v58 = vadd.f32 %v7344_v9, %v1478_v38 }
 0x185   :  { %v1261_v15 = vpop.f32.mrf.mxu0  ;;  %v2359_v33 = vunpack.c.l.b16 %v2068_v46 }
 0x186   :  { %v1943_v37 = vsel %vm1911_vm4, %v1303_v6, %v1927_v32  ;;  %v1528_v26 = vadd.f32 %v1527_v12, %v1479_v58 }
 0x187   :  { %v2055_v25 = vpack.c.bf16 %v1943_v37, %v1943_v37 }
 0x188   :  { %vm1957_vm5 = vcmp.gt.f32.partialorder %v1528_v26, 0.0  ;;  %v1973_v41 = vmul.f32 0.01, %v1528_v26  ;;  %1784 = vmatmul.bf16.gmra.mxu0 %v1044_v27  ;;  %1872 = vmatmul.bf16.gmra.mxu2 %v6529_v45 }
 0x189   :  { %v1305_v48 = vpop.f32.mrf.mxu1  ;;  %v2265_v36 = vunpack.c.l.b16 %v2055_v25  ;;  %v1262_v25 = vadd.f32 %v7302_v17, %v1261_v15 }
 0x18a   :  { %v1989_v8 = vsel %vm1957_vm5, %v1528_v26, %v1973_v41  ;;  %v1306_v60 = vadd.f32 %v1305_v48, %v1257_v31  ;;  %v1532_v61 = vpop.f32.mrf.mxu3  ;;  %v6530_v31 = vld [vmem:[#allocation2 + $0x10] sm:$0xff] }
 0x18b   :  { %v1481_v35 = vpop.f32.mrf.mxu2  ;;  %v7360_v12 = vpack.c.b16 %v2265_v36, %v2264_v23  ;;  %v2069_v42 = vpack.c.bf16 %v1989_v8, %v1989_v8 }
 0x18c   :  { %v1482_v47 = vadd.f32 %v7344_v9, %v1481_v35  ;;  %1828 = vmatmul.bf16.gmra.mxu1 %v1091_v1  ;;  %v1928_v51 = vmul.f32 0.01, %v1306_v60  ;;  %vm1912_vm6 = vcmp.gt.f32.partialorder %v1306_v60, 0.0 }
 0x18d   :  { %v1263_v30 = vpop.f32.mrf.mxu0  ;;  %v2360_v27 = vunpack.c.l.b16 %v2069_v42 }
 0x18e   :  { %v1531_v28 = vadd.f32 %v1530_v11, %v1482_v47  ;;  %v1944_v52 = vsel %vm1912_vm6, %v1306_v60, %v1928_v51  ;;  %v1002_v51 = vpack.c.bf16 %v7247_v10, %v7247_v10 }
 0x18f   :  { %v7366_v50 = vpack.c.b16 %v2360_v27, %v2359_v33  ;;  %v2056_v1 = vpack.c.bf16 %v1944_v52, %v1944_v52  ;;  %v1001_v33 = vpack.c.bf16 %v7240_v56, %v7240_v56 }
 0x190   :  { %v1974_v6 = vmul.f32 0.01, %v1531_v28  ;;  %vm1958_vm7 = vcmp.gt.f32.partialorder %v1531_v28, 0.0 }
 0x191   :  { %v1307_v29 = vpop.f32.mrf.mxu1  ;;  %v2266_v41 = vunpack.c.l.b16 %v2056_v1  ;;  %v1081_v52 = vunpack.c.l.b16 %v1001_v33 }
 0x192   :  { %v1308_v38 = vadd.f32 %v1307_v29, %v1259_v19  ;;  %v1535_v32 = vpop.f32.mrf.mxu3  ;;  %v1990_v44 = vsel %vm1958_vm7, %v1531_v28, %v1974_v6  ;;  %v1264_v28 = vadd.f32 %v7302_v17, %v1263_v30 }
 0x193   :  { %v1483_v58 = vpop.f32.mrf.mxu2  ;;  %v2070_v45 = vpack.c.bf16 %v1990_v44, %v1990_v44 }
 0x194   :  { %vm1913_vm8 = vcmp.gt.f32.partialorder %v1308_v38, 0.0  ;;  %v1929_v62 = vmul.f32 0.01, %v1308_v38  ;;  %v1484_v24 = vadd.f32 %v7344_v9, %v1483_v58 }
 0x195   :  { %v1266_v54 = vpop.f32.mrf.mxu0  ;;  %v2361_v4 = vunpack.c.l.b16 %v2070_v45 }
 0x196   :  { %v1945_v11 = vsel %vm1913_vm8, %v1308_v38, %v1929_v62  ;;  %v1533_v37 = vadd.f32 %v1532_v61, %v1484_v24  ;;  %v1082_v38 = vunpack.c.l.b16 %v1002_v51  ;;  %v1267_v44 = vadd.f32 %v7302_v17, %v1266_v54 }
 0x197   :  { %v2057_v26 = vpack.c.bf16 %v1945_v11, %v1945_v11 }
 0x198   :  { %vm1959_vm9 = vcmp.gt.f32.partialorder %v1533_v37, 0.0  ;;  %v1975_v7 = vmul.f32 0.01, %v1533_v37  ;;  %1789 = vmatmul.bf16.gmra.mxu0 %v1045_v22  ;;  %1877 = vmatmul.bf16.gmra.mxu2 %v6530_v31 }
 0x199   :  { %v1310_v23 = vpop.f32.mrf.mxu1  ;;  %v2267_v46 = vunpack.c.l.b16 %v2057_v26  ;;  %v1093_v26 = vpack.c.b16 %v1082_v38, %v1081_v52 }
 0x19a   :  { %v1991_v48 = vsel %vm1959_vm9, %v1533_v37, %v1975_v7  ;;  %v1311_v36 = vadd.f32 %v1310_v23, %v1262_v25  ;;  %v1537_v8 = vpop.f32.mrf.mxu3  ;;  %v6531_v37 = vld [vmem:[#allocation2 + $0x18] sm:$0xff] }
 0x19b   :  { %v1486_v60 = vpop.f32.mrf.mxu2  ;;  %v7374_v61 = vpack.c.b16 %v2267_v46, %v2266_v41  ;;  %v2071_v35 = vpack.c.bf16 %v1991_v48, %v1991_v48 }
 0x19c   :  { %v1487_v15 = vadd.f32 %v7344_v9, %v1486_v60  ;;  %1833 = vmatmul.bf16.gmra.mxu1 %v1092_v3  ;;  %v1930_v42 = vmul.f32 0.01, %v1311_v36  ;;  %vm1914_vm10 = vcmp.gt.f32.partialorder %v1311_v36, 0.0 }
 0x19d   :  { %v7380_v13 = vpop.f32.mrf.mxu0  ;;  %v2362_v22 = vunpack.c.l.b16 %v2071_v35 }
 0x19e   :  { %v1536_v47 = vadd.f32 %v1535_v32, %v1487_v15  ;;  %v1946_v40 = vsel %vm1914_vm10, %v1311_v36, %v1930_v42  ;;  %v1003_v15 = vpack.c.bf16 %v7255_v34, %v7255_v34  ;;  %v6532_v34 = vld [vmem:[#allocation2 + $0x20] sm:$0xff] }
 0x19f   :  { %v7384_v27 = vpack.c.b16 %v2362_v22, %v2361_v4  ;;  %v2058_v58 = vpack.c.bf16 %v1946_v40, %v1946_v40  ;;  %v1004_v4 = vpack.c.bf16 %v7262_v18, %v7262_v18 }
 0x1a0   :  { %v1976_v43 = vmul.f32 0.01, %v1536_v47  ;;  %vm1960_vm11 = vcmp.gt.f32.partialorder %v1536_v47, 0.0  ;;  %v1083_v51 = vunpack.c.l.b16 %v1003_v15 }
 0x1a1   :  { %v1312_v19 = vpop.f32.mrf.mxu1  ;;  %v2268_v25 = vunpack.c.l.b16 %v2058_v58 }
 0x1a2   :  { %v1313_v3 = vadd.f32 %v1312_v19, %v1264_v28  ;;  %v1540_v29 = vpop.f32.mrf.mxu3  ;;  %v1992_v24 = vsel %vm1960_vm11, %v1536_v47, %v1976_v43  ;;  %v1084_v28 = vunpack.c.l.b16 %v1004_v4 }
 0x1a3   :  { %v1488_v6 = vpop.f32.mrf.mxu2  ;;  %v2072_v7 = vpack.c.bf16 %v1992_v24, %v1992_v24 }
 0x1a4   :  { %vm1915_vm12 = vcmp.gt.f32.partialorder %v1313_v3, 0.0  ;;  %v1931_v32 = vmul.f32 0.01, %v1313_v3  ;;  %v1489_v56 = vadd.f32 %v7344_v9, %v1488_v6  ;;  %v1094_v18 = vpack.c.b16 %v1084_v28, %v1083_v51 }
 0x1a5   :  { %v7390_v62 = vpop.f32.mrf.mxu0  ;;  %v2363_v55 = vunpack.c.l.b16 %v2072_v7 }
 0x1a6   :  { %v1947_v10 = vsel %vm1915_vm12, %v1313_v3, %v1931_v32  ;;  %v1538_v1 = vadd.f32 %v1537_v8, %v1489_v56 }
 0x1a7   :  { %v2059_v30 = vpack.c.bf16 %v1947_v10, %v1947_v10 }
 0x1a8   :  { %vm1961_vm13 = vcmp.gt.f32.partialorder %v1538_v1, 0.0  ;;  %v1977_v11 = vmul.f32 0.01, %v1538_v1  ;;  %1794 = vmatmul.bf16.gmra.mxu0 %v1046_v0  ;;  %1882 = vmatmul.bf16.gmra.mxu2 %v6531_v37 }
 0x1a9   :  { %v1315_v31 = vpop.f32.mrf.mxu1  ;;  %v2269_v41 = vunpack.c.l.b16 %v2059_v30 }
 0x1aa   :  { %v1993_v45 = vsel %vm1961_vm13, %v1538_v1, %v1977_v11  ;;  %v7396_v23 = vadd.f32 %v1315_v31, %v1267_v44  ;;  %v1542_v46 = vpop.f32.mrf.mxu3 }
 0x1ab   :  { %v1491_v48 = vpop.f32.mrf.mxu2  ;;  %v7398_v36 = vpack.c.b16 %v2269_v41, %v2268_v25  ;;  %v2073_v54 = vpack.c.bf16 %v1993_v45, %v1993_v45  ;;  %v1085_v25 = vunpack.c.l.b16 %v1005_v16  ;;  %v6533_v41 = vld [vmem:[#allocation2 + $0x28] sm:$0xff]  ;;  %v7463_v16 = vld [vmem:[%s8369_s12] ss:$0 sm:$0xff] }
 0x1ac   :  { %v1492_v8 = vadd.f32 %v7344_v9, %v1491_v48  ;;  %1838 = vmatmul.bf16.gmra.mxu1 %v1093_v26  ;;  %vm1916_vm7 = vcmp.gt.f32.partialorder %v7396_v23, 0.0 }
 0x1ad   :  { %v7401_v63 = vpop.f32.mrf.mxu0  ;;  %v2364_v0 = vunpack.c.l.b16 %v2073_v54  ;;  %v1007_v54 = vpack.c.bf16 %v7304_v53, %v7304_v53 }
 0x1ae   :  { %v1541_v60 = vadd.f32 %v1540_v29, %v1492_v8  ;;  %v1008_v8 = vpack.c.bf16 %v7316_v14, %v7316_v14 }
 0x1af   :  { %v7403_v35 = vpack.c.b16 %v2364_v0, %v2363_v55  ;;  %v1087_v20 = vunpack.c.l.b16 %v1007_v54 }
 0x1b0   :  { %v1978_v42 = vmul.f32 0.01, %v1541_v60  ;;  %vm1962_vm14 = vcmp.gt.f32.partialorder %v1541_v60, 0.0  ;;  %v1088_v21 = vunpack.c.l.b16 %v1008_v8 }
 0x1b1   :  { %v7409_v22 = vpop.f32.mrf.mxu1 }
 0x1b2   :  { %v1545_v47 = vpop.f32.mrf.mxu3  ;;  %v1994_v43 = vsel %vm1962_vm14, %v1541_v60, %v1978_v42  ;;  %v6534_v42 = vld [vmem:[#allocation2 + $0x30] sm:$0xff] }
 0x1b3   :  { %v1493_v33 = vpop.f32.mrf.mxu2  ;;  %v2074_v52 = vpack.c.bf16 %v1994_v43, %v1994_v43 }
 0x1b4   :  { %v1494_v19 = vadd.f32 %v7344_v9, %v1493_v33 }
 0x1b5   :  { %v1276_v40 = vpop.f32.mrf.mxu0  ;;  %v2365_v10 = vunpack.c.l.b16 %v2074_v52  ;;  %v1272_v52 = vadd.f32 %v7302_v17, %v7390_v62 }
 0x1b6   :  { %v1543_v3 = vadd.f32 %v1542_v46, %v1494_v19  ;;  %v1277_v53 = vadd.f32 %v7302_v17, %v1276_v40  ;;  %v1274_v19 = vadd.f32 %v7302_v17, %v7401_v63 }
 0x1b8   :  { %vm1963_vm15 = vcmp.gt.f32.partialorder %v1543_v3, 0.0  ;;  %v1979_v29 = vmul.f32 0.01, %v1543_v3  ;;  %1799 = vmatmul.bf16.gmra.mxu0 %v1047_v39  ;;  %1887 = vmatmul.bf16.gmra.mxu2 %v6532_v34  ;;  %v1006_v39 = vpack.c.bf16 %v7285_v49, %v7285_v49 }
 0x1b9   :  { %v1320_v6 = vpop.f32.mrf.mxu1 }
 0x1ba   :  { %v1995_v38 = vsel %vm1963_vm15, %v1543_v3, %v1979_v29  ;;  %v7415_v32 = vpop.f32.mrf.mxu3  ;;  %v1086_v7 = vunpack.c.l.b16 %v1006_v39 }
 0x1bb   :  { %v1496_v56 = vpop.f32.mrf.mxu2  ;;  %v2075_v58 = vpack.c.bf16 %v1995_v38, %v1995_v38 }
 0x1bc   :  { %v1497_v24 = vadd.f32 %v7344_v9, %v1496_v56  ;;  %1843 = vmatmul.bf16.gmra.mxu1 %v1094_v18  ;;  %v1095_v45 = vpack.c.b16 %v1086_v7, %v1085_v25  ;;  %v1269_v56 = vadd.f32 %v7302_v17, %v7380_v13 }
 0x1bd   :  { %v1278_v1 = vpop.f32.mrf.mxu0  ;;  %v2366_v30 = vunpack.c.l.b16 %v2075_v58 }
 0x1be   :  { %v7418_v44 = vadd.f32 %v1545_v47, %v1497_v24  ;;  %v1279_v4 = vadd.f32 %v7302_v17, %v1278_v1  ;;  %v1096_v47 = vpack.c.b16 %v1088_v21, %v1087_v20  ;;  %v1321_v24 = vadd.f32 %v1320_v6, %v1272_v52 }
 0x1bf   :  { %v7420_v5 = vpack.c.b16 %v2366_v30, %v2365_v10  ;;  %v1318_v30 = vadd.f32 %v7409_v22, %v1269_v56 }
 0x1c0   :  { %v1934_v13 = vmul.f32 0.01, %v1321_v24  ;;  %vm1918_vm5 = vcmp.gt.f32.partialorder %v1321_v24, 0.0  ;;  %vm1964_vm15 = vcmp.gt.f32.partialorder %v7418_v44, 0.0 }
 0x1c1   :  { %v1322_v11 = vpop.f32.mrf.mxu1  ;;  %vm1917_vm6 = vcmp.gt.f32.partialorder %v1318_v30, 0.0 }
 0x1c2   :  { %v7426_v37 = vpop.f32.mrf.mxu3  ;;  %v1323_v40 = vadd.f32 %v1322_v11, %v1274_v19 }
 0x1c3   :  { %v7428_v26 = vpop.f32.mrf.mxu2 }
 0x1c4   :  { %v1935_v39 = vmul.f32 0.01, %v1323_v40  ;;  %vm1919_vm4 = vcmp.gt.f32.partialorder %v1323_v40, 0.0 }
 0x1c5   :  { %v1281_v31 = vpop.f32.mrf.mxu0 }
 0x1c6   :  { %v1282_v15 = vadd.f32 %v7302_v17, %v1281_v31  ;;  %v1933_v31 = vmul.f32 0.01, %v1318_v30 }
 0x1c8   :  { %1804 = vmatmul.bf16.gmra.mxu0 %v1048_v59  ;;  %1892 = vmatmul.bf16.gmra.mxu2 %v6533_v41 }
 0x1c9   :  { %v1325_v46 = vpop.f32.mrf.mxu1 }
 0x1ca   :  { %v7433_v57 = vpop.f32.mrf.mxu3  ;;  %v1326_v43 = vadd.f32 %v1325_v46, %v1277_v53 }
 0x1cb   :  { %v7435_v48 = vpop.f32.mrf.mxu2 }
 0x1cc   :  { %1848 = vmatmul.bf16.gmra.mxu1 %v1095_v45  ;;  %v1936_v63 = vmul.f32 0.01, %v1326_v43  ;;  %vm1920_vm2 = vcmp.gt.f32.partialorder %v1326_v43, 0.0  ;;  %v1951_v45 = vsel %vm1919_vm4, %v1323_v40, %v1935_v39 }
 0x1cd   :  { %v1283_v49 = vpop.f32.mrf.mxu0 }
 0x1ce   :  { %v1284_v3 = vadd.f32 %v7302_v17, %v1283_v49  ;;  %v1952_v6 = vsel %vm1920_vm2, %v1326_v43, %v1936_v63  ;;  %v6535_v49 = vld [vmem:[#allocation2 + $0x38] sm:$0xff] }
 0x1cf   :  { %v2064_v8 = vpack.c.bf16 %v1952_v6, %v1952_v6 }
 0x1d1   :  { %v1327_v55 = vpop.f32.mrf.mxu1 }
 0x1d2   :  { %v7443_v59 = vpop.f32.mrf.mxu3  ;;  %v1328_v28 = vadd.f32 %v1327_v55, %v1279_v4  ;;  %v1932_v4 = vmul.f32 0.01, %v7396_v23 }
 0x1d3   :  { %v7441_v0 = vpop.f32.mrf.mxu2 }
 0x1d4   :  { %v1937_v38 = vmul.f32 0.01, %v1328_v28  ;;  %vm1921_vm1 = vcmp.gt.f32.partialorder %v1328_v28, 0.0  ;;  %v1948_v52 = vsel %vm1916_vm7, %v7396_v23, %v1932_v4  ;;  %v1502_v23 = vadd.f32 %v7344_v9, %v7435_v48 }
 0x1d5   :  { %v1770_v60 = vpop.f32.mrf.mxu0 }
 0x1d6   :  { %v1953_v11 = vsel %vm1921_vm1, %v1328_v28, %v1937_v38  ;;  %v1771_v46 = vadd.f32 %v7463_v16, %v1770_v60  ;;  %v2063_v28 = vpack.c.bf16 %v1951_v45, %v1951_v45 }
 0x1d7   :  { %v2065_v22 = vpack.c.bf16 %v1953_v11, %v1953_v11 }
 0x1d8   :  { %1897 = vmatmul.bf16.gmra.mxu2 %v6534_v42  ;;  %v1950_v42 = vsel %vm1918_vm5, %v1321_v24, %v1934_v13  ;;  %v2273_v63 = vunpack.c.l.b16 %v2063_v28 }
 0x1d9   :  { %v1330_v33 = vpop.f32.mrf.mxu1  ;;  %v2275_v60 = vunpack.c.l.b16 %v2065_v22 }
 0x1da   :  { %v1331_v51 = vadd.f32 %v1330_v33, %v1282_v15  ;;  %v1557_v34 = vpop.f32.mrf.mxu3  ;;  %v1949_v33 = vsel %vm1917_vm6, %v1318_v30, %v1933_v31 }
 0x1db   :  { %v7448_v14 = vpop.f32.mrf.mxu2  ;;  %v2061_v56 = vpack.c.bf16 %v1949_v33, %v1949_v33 }
 0x1dc   :  { %1853 = vmatmul.bf16.gmra.mxu1 %v1096_v47  ;;  %v1938_v29 = vmul.f32 0.01, %v1331_v51  ;;  %vm1922_vm0 = vcmp.gt.f32.partialorder %v1331_v51, 0.0  ;;  %v1507_v40 = vadd.f32 %v7344_v9, %v7448_v14 }
 0x1dd   :  { %v7453_v18 = vpop.f32.mrf.mxu0 }
 0x1de   :  { %v1954_v10 = vsel %vm1922_vm0, %v1331_v51, %v1938_v29  ;;  %v2274_v29 = vunpack.c.l.b16 %v2064_v8  ;;  %v1556_v14 = vadd.f32 %v7443_v59, %v1507_v40  ;;  %v1551_v59 = vadd.f32 %v7426_v37, %v1502_v23 }
 0x1df   :  { %v2066_v17 = vpack.c.bf16 %v1954_v10, %v1954_v10 }
 0x1e0   :  { %v7481_v24 = vpack.c.b16 %v2275_v60, %v2274_v29  ;;  %vm1968_vm10 = vcmp.gt.f32.partialorder %v1556_v14, 0.0  ;;  %v1982_v37 = vmul.f32 0.01, %v1551_v59  ;;  %vm1966_vm13 = vcmp.gt.f32.partialorder %v1551_v59, 0.0 }
 0x1e1   :  { %v1332_v58 = vpop.f32.mrf.mxu1  ;;  %v2276_v55 = vunpack.c.l.b16 %v2066_v17  ;;  %v1980_v29 = vmul.f32 0.01, %v7418_v44 }
 0x1e2   :  { %v1333_v1 = vadd.f32 %v1332_v58, %v1284_v3  ;;  %v1560_v54 = vpop.f32.mrf.mxu3  ;;  %v2062_v3 = vpack.c.bf16 %v1950_v42, %v1950_v42  ;;  %v1504_v58 = vadd.f32 %v7344_v9, %v7441_v0  ;;  %8380 = vst [vmem:[#allocation32_spill] sm:$0xff] %v7481_v24  ;;  %v1499_v0 = vadd.f32 %v7344_v9, %v7428_v26 }
 0x1e3   :  { %v1508_v62 = vpop.f32.mrf.mxu2 }
 0x1e4   :  { %vm1923_vm3 = vcmp.gt.f32.partialorder %v1333_v1, 0.0  ;;  %v1939_v25 = vmul.f32 0.01, %v1333_v1  ;;  %v1509_v19 = vadd.f32 %v7344_v9, %v1508_v62  ;;  %v2272_v30 = vunpack.c.l.b16 %v2062_v3 }
 0x1e5   :  { %v1775_v21 = vpop.f32.mrf.mxu0  ;;  %v1553_v17 = vadd.f32 %v7433_v57, %v1504_v58  ;;  %v1548_v57 = vadd.f32 %v7415_v32, %v1499_v0 }
 0x1e6   :  { %v1955_v7 = vsel %vm1923_vm3, %v1333_v1, %v1939_v25  ;;  %v1558_v10 = vadd.f32 %v1557_v34, %v1509_v19  ;;  %v2060_v1 = vpack.c.bf16 %v1948_v52, %v1948_v52  ;;  %v2271_v25 = vunpack.c.l.b16 %v2061_v56 }
 0x1e7   :  { %v2067_v41 = vpack.c.bf16 %v1955_v7, %v1955_v7  ;;  %v7494_v6 = vpack.c.b16 %v2273_v63, %v2272_v30  ;;  %v1983_v45 = vmul.f32 0.01, %v1553_v17  ;;  %vm1967_vm12 = vcmp.gt.f32.partialorder %v1553_v17, 0.0 }
 0x1e8   :  { %1902 = vmatmul.bf16.gmra.mxu2 %v6535_v49  ;;  %v1985_v7 = vmul.f32 0.01, %v1558_v10  ;;  %v2270_v48 = vunpack.c.l.b16 %v2060_v1  ;;  %vm1969_vm9 = vcmp.gt.f32.partialorder %v1558_v10, 0.0  ;;  %vm1965_vm14 = vcmp.gt.f32.partialorder %v1548_v57, 0.0 }
 0x1e9   :  { %v2277_v20 = vunpack.c.l.b16 %v2067_v41  ;;  %v1819_v15 = vpop.f32.mrf.mxu1  ;;  %8381 = vst [vmem:[#allocation33_spill] sm:$0xff] %v7494_v6  ;;  %v1984_v41 = vmul.f32 0.01, %v1556_v14  ;;  %v1999_v60 = vsel %vm1967_vm12, %v1553_v17, %v1983_v45  ;;  %v1998_v52 = vsel %vm1966_vm13, %v1551_v59, %v1982_v37 }
 0x1ea   :  { %v7469_v47 = vadd.f32 %v1819_v15, %v1771_v46  ;;  %v1562_v11 = vpop.f32.mrf.mxu3  ;;  %v7500_v46 = vpack.c.b16 %v2271_v25, %v2270_v48  ;;  %v2001_v49 = vsel %vm1969_vm9, %v1558_v10, %v1985_v7  ;;  %v2079_v56 = vpack.c.bf16 %v1999_v60, %v1999_v60 }
 0x1eb   :  { %v1511_v53 = vpop.f32.mrf.mxu2  ;;  %v7471_v51 = vpack.c.b16 %v2277_v20, %v2276_v55  ;;  %v2000_v20 = vsel %vm1968_vm10, %v1556_v14, %v1984_v41  ;;  %v2081_v33 = vpack.c.bf16 %v2001_v49, %v2001_v49  ;;  %v2078_v63 = vpack.c.bf16 %v1998_v52, %v1998_v52 }
 0x1ec   :  { %v1512_v43 = vadd.f32 %v7344_v9, %v1511_v53  ;;  %v1981_v53 = vmul.f32 0.01, %v1548_v57  ;;  %v1996_v1 = vsel %vm1964_vm15, %v7418_v44, %v1980_v29  ;;  %v2370_v14 = vunpack.c.l.b16 %v2079_v56  ;;  %v6540_v29 = vld [vmem:[#allocation13 + $0x8] sm:$0xff] }
 0x1ed   :  { %8379 = vst [vmem:[#allocation31_spill] sm:$0xff] %v7471_v51  ;;  %2294 = vmatpush.bf16.msra.mxu1 %v7471_v51  ;;  %v7492_v34 = vpop.f32.mrf.mxu0  ;;  %v2369_v25 = vunpack.c.l.b16 %v2078_v63 }
 0x1ee   :  { %v1561_v38 = vadd.f32 %v1560_v54, %v1512_v43  ;;  %v1776_v54 = vadd.f32 %v7463_v16, %v1775_v21  ;;  %v2080_v21 = vpack.c.bf16 %v2000_v20, %v2000_v20  ;;  %v1997_v58 = vsel %vm1965_vm14, %v1548_v57, %v1981_v53 }
 0x1ef   :  { %v7525_v17 = vpack.c.b16 %v2370_v14, %v2369_v25 }
 0x1f0   :  { %v1986_v39 = vmul.f32 0.01, %v1561_v38  ;;  %vm1970_vm8 = vcmp.gt.f32.partialorder %v1561_v38, 0.0 }
 0x1f1   :  { %v7483_v62 = vpop.f32.mrf.mxu1  ;;  %2295 = vmatpush.bf16.msra.mxu1 %v7481_v24  ;;  %v6394_v24 = vld [vmem:[#allocation16 + $0xd8] sm:$0xff] }
 0x1f2   :  { %v2002_v22 = vsel %vm1970_vm8, %v1561_v38, %v1986_v39  ;;  %v2372_v38 = vunpack.c.l.b16 %v2081_v33  ;;  %v2077_v39 = vpack.c.bf16 %v1997_v58, %v1997_v58 }
 0x1f3   :  { %v1513_v13 = vpop.f32.mrf.mxu2  ;;  %v2082_v8 = vpack.c.bf16 %v2002_v22, %v2002_v22 }
 0x1f4   :  { %v1514_v31 = vadd.f32 %v7344_v9, %v1513_v13  ;;  %v2368_v13 = vunpack.c.l.b16 %v2077_v39  ;;  %v6542_v39 = vld [vmem:[#allocation13 + $0x10] sm:$0xff] }
 0x1f5   :  { %2296 = vmatpush.bf16.msra.mxu1 %v7494_v6  ;;  %v2373_v19 = vunpack.c.l.b16 %v2082_v8  ;;  %v1780_v3 = vpop.f32.mrf.mxu0 }
 0x1f6   :  { %v1563_v26 = vadd.f32 %v1562_v11, %v1514_v31  ;;  %v2076_v11 = vpack.c.bf16 %v1996_v1, %v1996_v1  ;;  %v1781_v7 = vadd.f32 %v7463_v16, %v1780_v3  ;;  %v6539_v3 = vld [vmem:[#allocation11 + $0x10] sm:$0xff]  ;;  %v6541_v1 = vld [vmem:[#allocation11 + $0x18] sm:$0xff] }
 0x1f8   :  { %vm1971_vm11 = vcmp.gt.f32.partialorder %v1563_v26, 0.0  ;;  %v1987_v9 = vmul.f32 0.01, %v1563_v26  ;;  %v2367_v44 = vunpack.c.l.b16 %v2076_v11 }
 0x1f9   :  { %v1824_v55 = vpop.f32.mrf.mxu1  ;;  %2297 = vmatpush.bf16.msra.mxu1 %v7500_v46 }
 0x1fa   :  { %v2003_v15 = vsel %vm1971_vm11, %v1563_v26, %v1987_v9  ;;  %v1825_v4 = vadd.f32 %v1824_v55, %v1776_v54  ;;  %v7530_v41 = vpack.c.b16 %v2368_v13, %v2367_v44  ;;  %v6536_v26 = vld [vmem:[#allocation11] sm:$0xff] }
 0x1fb   :  { %v2083_v32 = vpack.c.bf16 %v2003_v15, %v2003_v15  ;;  %v1868_v42 = vpop.f32.mrf.mxu2  ;;  %v6537_v15 = vld [vmem:[#allocation11 + $0x8] sm:$0xff]  ;;  %v6543_v44 = vld [vmem:[#allocation11 + $0x20] sm:$0xff] }
 0x1fc   :  { %v7505_v28 = vadd.f32 %v1868_v42, %v7469_v47  ;;  %v2371_v47 = vunpack.c.l.b16 %v2080_v21 }
 0x1fd   :  { %v2374_v43 = vunpack.c.l.b16 %v2083_v32  ;;  %2298 = vmatpush.bf16.msra.mxu1 %v7398_v36  ;;  %v7523_v0 = vpop.f32.mrf.mxu0 }
 0x1fe   :  { %v7519_v23 = vpack.c.b16 %v2372_v38, %v2371_v47  ;;  %vm2004_vm15 = vcmp.gt.f32.partialorder %v7505_v28, 0.0 }
 0x1ff   :  { %v7510_v40 = vpack.c.b16 %v2374_v43, %v2373_v19 }
 0x201   :  { %v7512_v10 = vpop.f32.mrf.mxu1  ;;  %2299 = vmatpush.bf16.msra.mxu1 %v7374_v61  ;;  %2391 = vmatpush.bf16.msra.mxu2 %v7510_v40 }
 0x203   :  { %v7517_v30 = vpop.f32.mrf.mxu2 }
 0x205   :  { %2300 = vmatpush.bf16.msra.mxu1 %v7360_v12  ;;  %2392 = vmatpush.bf16.msra.mxu2 %v7519_v23  ;;  %v1785_v57 = vpop.f32.mrf.mxu0 }
 0x206   :  { %v1786_v54 = vadd.f32 %v7463_v16, %v1785_v57 }
 0x209   :  { %v1829_v31 = vpop.f32.mrf.mxu1  ;;  %2301 = vmatpush.bf16.msra.mxu1 %v7348_v2  ;;  %2393 = vmatpush.bf16.msra.mxu2 %v7525_v17 }
 0x20a   :  { %v1830_v48 = vadd.f32 %v1829_v31, %v1781_v7 }
 0x20b   :  { %v1873_v59 = vpop.f32.mrf.mxu2 }
 0x20c   :  { %v7532_v22 = vadd.f32 %v1873_v59, %v1825_v4  ;;  %2302 = vmatmul.bf16.vlgmr.msra.gmra.mxu1 %v6536_v26  ;;  %v6538_v4 = vld [vmem:[#allocation13] sm:$0xff] }
 0x20d   :  { %2394 = vmatpush.bf16.msra.mxu2 %v7530_v41  ;;  %v7543_v55 = vpop.f32.mrf.mxu0 }
 0x20e   :  { %vm2006_vm13 = vcmp.gt.f32.partialorder %v7532_v22, 0.0 }
 0x211   :  { %v7535_v45 = vpop.f32.mrf.mxu1  ;;  %2395 = vmatpush.bf16.msra.mxu2 %v7420_v5 }
 0x213   :  { %v7538_v49 = vpop.f32.mrf.mxu2 }
 0x215   :  { %2396 = vmatpush.bf16.msra.mxu2 %v7403_v35  ;;  %v1790_v33 = vpop.f32.mrf.mxu0 }
 0x216   :  { %v1791_v53 = vadd.f32 %v7463_v16, %v1790_v33 }
 0x219   :  { %v1834_v9 = vpop.f32.mrf.mxu1  ;;  %2397 = vmatpush.bf16.msra.mxu2 %v7384_v27 }
 0x21a   :  { %v1835_v8 = vadd.f32 %v1834_v9, %v1786_v54 }
 0x21b   :  { %v1878_v37 = vpop.f32.mrf.mxu2 }
 0x21c   :  { %v7545_v20 = vadd.f32 %v1878_v37, %v1830_v48  ;;  %2307 = vmatmul.bf16.gmra.mxu1 %v6537_v15  ;;  %v6544_v48 = vld [vmem:[#allocation13 + $0x18] sm:$0xff]  ;;  %v6546_v15 = vld [vmem:[#allocation13 + $0x20] sm:$0xff] }
 0x21d   :  { %2398 = vmatpush.bf16.msra.mxu2 %v7366_v50  ;;  %v1792_v52 = vpop.f32.mrf.mxu0  ;;  %v6398_v37 = vld [vmem:[#allocation16 + $0xf8] sm:$0xff] }
 0x21e   :  { %vm2008_vm11 = vcmp.gt.f32.partialorder %v7545_v20, 0.0 }
 0x220   :  { %2399 = vmatmul.bf16.vlgmr.msra.gmra.mxu2 %v6538_v4 }
 0x221   :  { %v7548_v32 = vpop.f32.mrf.mxu1  ;;  %3111 = vmatpush.bf16.msrb.mxu2 %v6398_v37 }
 0x223   :  { %v7550_v42 = vpop.f32.mrf.mxu2 }
 0x225   :  { %v1795_v58 = vpop.f32.mrf.mxu0 }
 0x229   :  { %v1839_v60 = vpop.f32.mrf.mxu1 }
 0x22a   :  { %v1840_v21 = vadd.f32 %v1839_v60, %v1791_v53  ;;  %v6397_v53 = vld [vmem:[#allocation16 + $0xf0] sm:$0xff] }
 0x22b   :  { %v1883_v19 = vpop.f32.mrf.mxu2  ;;  %3112 = vmatpush.bf16.msrb.mxu2 %v6397_v53 }
 0x22c   :  { %v7553_v43 = vadd.f32 %v1883_v19, %v1835_v8  ;;  %2312 = vmatmul.bf16.gmra.mxu1 %v6539_v3  ;;  %v6545_v8 = vld [vmem:[#allocation11 + $0x28] sm:$0xff] }
 0x22d   :  { %v1797_v25 = vpop.f32.mrf.mxu0 }
 0x22e   :  { %vm2010_vm9 = vcmp.gt.f32.partialorder %v7553_v43, 0.0 }
 0x230   :  { %2404 = vmatmul.bf16.gmra.mxu2 %v6540_v29 }
 0x231   :  { %v7555_v38 = vpop.f32.mrf.mxu1 }
 0x233   :  { %v7557_v56 = vpop.f32.mrf.mxu2 }
 0x235   :  { %v1800_v31 = vpop.f32.mrf.mxu0 }
 0x239   :  { %v1844_v14 = vpop.f32.mrf.mxu1 }
 0x23b   :  { %v1888_v63 = vpop.f32.mrf.mxu2 }
 0x23c   :  { %v7559_v47 = vadd.f32 %v1888_v63, %v1840_v21  ;;  %2317 = vmatmul.bf16.gmra.mxu1 %v6541_v1  ;;  %v6396_v21 = vld [vmem:[#allocation16 + $0xe8] sm:$0xff]  ;;  %v6395_v1 = vld [vmem:[#allocation16 + $0xe0] sm:$0xff] }
 0x23d   :  { %v1802_v57 = vpop.f32.mrf.mxu0  ;;  %3113 = vmatpush.bf16.msrb.mxu2 %v6396_v21 }
 0x23e   :  { %v1803_v3 = vadd.f32 %v7463_v16, %v1802_v57  ;;  %vm2012_vm7 = vcmp.gt.f32.partialorder %v7559_v47, 0.0 }
 0x240   :  { %2409 = vmatmul.bf16.gmra.mxu2 %v6542_v39  ;;  %v1801_v39 = vadd.f32 %v7463_v16, %v1800_v31  ;;  %v6548_v31 = vld [vmem:[#allocation13 + $0x28] sm:$0xff] }
 0x241   :  { %v1846_v13 = vpop.f32.mrf.mxu1  ;;  %3114 = vmatpush.bf16.msrb.mxu2 %v6395_v1 }
 0x243   :  { %v7561_v11 = vpop.f32.mrf.mxu2 }
 0x245   :  { %v1805_v4 = vpop.f32.mrf.mxu0  ;;  %3115 = vmatpush.bf16.msrb.mxu2 %v6394_v24 }
 0x246   :  { %v1806_v19 = vadd.f32 %v7463_v16, %v1805_v4  ;;  %v1796_v4 = vadd.f32 %v7463_v16, %v1795_v58 }
 0x249   :  { %v1849_v59 = vpop.f32.mrf.mxu1 }
 0x24a   :  { %v1850_v53 = vadd.f32 %v1849_v59, %v1801_v39 }
 0x24b   :  { %v1893_v7 = vpop.f32.mrf.mxu2 }
 0x24c   :  { %2322 = vmatmul.bf16.gmra.mxu1 %v6543_v44 }
 0x24d   :  { %v1807_v37 = vpop.f32.mrf.mxu0 }
 0x250   :  { %2414 = vmatmul.bf16.gmra.mxu2 %v6544_v48 }
 0x251   :  { %v1851_v54 = vpop.f32.mrf.mxu1 }
 0x252   :  { %v1852_v44 = vadd.f32 %v1851_v54, %v1803_v3  ;;  %v1793_v54 = vadd.f32 %v7463_v16, %v1792_v52  ;;  %v1845_v3 = vadd.f32 %v1844_v14, %v1796_v4 }
 0x253   :  { %v1895_v26 = vpop.f32.mrf.mxu2 }
 0x259   :  { %v1854_v60 = vpop.f32.mrf.mxu1 }
 0x25a   :  { %v1855_v29 = vadd.f32 %v1854_v60, %v1806_v19  ;;  %v1808_v60 = vadd.f32 %v7463_v16, %v1807_v37 }
 0x25b   :  { %v1898_v9 = vpop.f32.mrf.mxu2 }
 0x25c   :  { %2327 = vmatmul.bf16.gmra.mxu1 %v6545_v8  ;;  %v6547_v8 = vld [vmem:[#allocation11 + $0x30] sm:$0xff]  ;;  %v1899_v19 = vadd.f32 %v1898_v9, %v1850_v53 }
 0x25e   :  { %v2032_v1 = vmul.f32 0.01, %v1899_v19  ;;  %vm2016_vm2 = vcmp.gt.f32.partialorder %v1899_v19, 0.0 }
 0x260   :  { %2419 = vmatmul.bf16.gmra.mxu2 %v6546_v15  ;;  %v1798_v15 = vadd.f32 %v7463_v16, %v1797_v25 }
 0x261   :  { %v1856_v21 = vpop.f32.mrf.mxu1 }
 0x262   :  { %v1847_v57 = vadd.f32 %v1846_v13, %v1798_v15  ;;  %v1857_v25 = vadd.f32 %v1856_v21, %v1808_v60  ;;  %v1894_v13 = vadd.f32 %v1893_v7, %v1845_v3  ;;  %v2048_v15 = vsel %vm2016_vm2, %v1899_v19, %v2032_v1  ;;  %v6549_v3 = vld [vmem:[#allocation11 + $0x38] sm:$0xff] }
 0x263   :  { %v1900_v33 = vpop.f32.mrf.mxu2  ;;  %v2096_v21 = vpack.c.bf16 %v2048_v15, %v2048_v15  ;;  %v2028_v19 = vmul.f32 0.01, %v7559_v47  ;;  %v2026_v1 = vmul.f32 0.01, %v7553_v43 }
 0x264   :  { %v1901_v51 = vadd.f32 %v1900_v33, %v1852_v44  ;;  %v1842_v33 = vadd.f32 %v7555_v38, %v1793_v54  ;;  %v1788_v44 = vadd.f32 %v7463_v16, %v7543_v55  ;;  %v2030_v7 = vmul.f32 0.01, %v1894_v13 }
 0x265   :  { %vm2014_vm5 = vcmp.gt.f32.partialorder %v1894_v13, 0.0  ;;  %v1783_v55 = vadd.f32 %v7463_v16, %v7523_v0 }
 0x266   :  { %v2033_v59 = vmul.f32 0.01, %v1901_v51  ;;  %vm2017_vm1 = vcmp.gt.f32.partialorder %v1901_v51, 0.0  ;;  %v1891_v52 = vadd.f32 %v7561_v11, %v1842_v33  ;;  %v1837_v37 = vadd.f32 %v7548_v32, %v1788_v44 }
 0x267   :  { %v1832_v32 = vadd.f32 %v7535_v45, %v1783_v55  ;;  %v2046_v54 = vsel %vm2014_vm5, %v1894_v13, %v2030_v7 }
 0x268   :  { %v2049_v14 = vsel %vm2017_vm1, %v1901_v51, %v2033_v59  ;;  %v1886_v11 = vadd.f32 %v7557_v56, %v1837_v37  ;;  %v2029_v51 = vmul.f32 0.01, %v1891_v52  ;;  %vm2013_vm6 = vcmp.gt.f32.partialorder %v1891_v52, 0.0 }
 0x269   :  { %v2097_v53 = vpack.c.bf16 %v2049_v14, %v2049_v14  ;;  %v1881_v59 = vadd.f32 %v7550_v42, %v1832_v32  ;;  %v2042_v37 = vsel %vm2010_vm9, %v7553_v43, %v2026_v1 }
 0x26a   :  { %v2027_v33 = vmul.f32 0.01, %v1886_v11  ;;  %v2045_v45 = vsel %vm2013_vm6, %v1891_v52, %v2029_v51  ;;  %vm2011_vm8 = vcmp.gt.f32.partialorder %v1886_v11, 0.0  ;;  %v1773_v52 = vadd.f32 %v7463_v16, %v7453_v18 }
 0x26b   :  { %v1903_v63 = vpop.f32.mrf.mxu2  ;;  %v2129_v0 = vunpack.c.l.b16 %v2097_v53  ;;  %v2093_v44 = vpack.c.bf16 %v2045_v45, %v2045_v45  ;;  %vm2009_vm10 = vcmp.gt.f32.partialorder %v1881_v59, 0.0 }
 0x26c   :  { %v1904_v48 = vadd.f32 %v1903_v63, %v1855_v29  ;;  %2332 = vmatmul.bf16.gmra.mxu1 %v6547_v8  ;;  %v1896_v29 = vadd.f32 %v1895_v26, %v1847_v57  ;;  %v6393_v63 = vld [vmem:[#allocation16 + $0xd0] sm:$0xff]  ;;  %v6392_v8 = vld [vmem:[#allocation16 + $0xc8] sm:$0xff]  ;;  %v2043_v14 = vsel %vm2011_vm8, %v1886_v11, %v2027_v33 }
 0x26d   :  { %3116 = vmatpush.bf16.msrb.mxu2 %v6393_v63  ;;  %v2128_v63 = vunpack.c.l.b16 %v2096_v21 }
 0x26e   :  { %v2034_v6 = vmul.f32 0.01, %v1904_v48  ;;  %vm2018_vm0 = vcmp.gt.f32.partialorder %v1904_v48, 0.0  ;;  %v2031_v24 = vmul.f32 0.01, %v1896_v29  ;;  %vm2015_vm4 = vcmp.gt.f32.partialorder %v1896_v29, 0.0 }
 0x26f   :  { %v7595_v42 = vpack.c.b16 %v2129_v0, %v2128_v63 }
 0x270   :  { %2424 = vmatmul.bf16.gmra.mxu2 %v6548_v31  ;;  %v2050_v39 = vsel %vm2018_vm0, %v1904_v48, %v2034_v6  ;;  %v2047_v4 = vsel %vm2015_vm4, %v1896_v29, %v2031_v24  ;;  %v6391_v31 = vld [vmem:[#allocation16 + $0xc0] sm:$0xff]  ;;  %v1778_v29 = vadd.f32 %v7463_v16, %v7492_v34  ;;  %v2044_v34 = vsel %vm2012_vm7, %v7559_v47, %v2028_v19 }
 0x271   :  { %v2098_v38 = vpack.c.bf16 %v2050_v39, %v2050_v39  ;;  %3117 = vmatpush.bf16.msrb.mxu2 %v6392_v8  ;;  %v2095_v56 = vpack.c.bf16 %v2047_v4, %v2047_v4  ;;  %v6550_v39 = vld [vmem:[#allocation13 + $0x30] sm:$0xff]  ;;  %v1822_v47 = vadd.f32 %v7483_v62, %v1773_v52  ;;  %v2024_v8 = vmul.f32 0.01, %v7545_v20 }
 0x272   :  { %v1827_v13 = vadd.f32 %v7512_v10, %v1778_v29  ;;  %v2025_v10 = vmul.f32 0.01, %v1881_v59  ;;  %v2125_v16 = vunpack.c.l.b16 %v2093_v44  ;;  %v2022_v62 = vmul.f32 0.01, %v7532_v22  ;;  %v6551_v29 = vld [vmem:[#allocation13 + $0x38] sm:$0xff] }
 0x273   :  { %v1905_v58 = vpop.f32.mrf.mxu2  ;;  %v2130_v57 = vunpack.c.l.b16 %v2098_v38  ;;  %v1871_v7 = vadd.f32 %v7517_v30, %v1822_v47  ;;  %v2040_v43 = vsel %vm2008_vm11, %v7545_v20, %v2024_v8  ;;  %v6556_v8 = vld [vmem:[#allocation8 + $0x10] sm:$0xff] }
 0x274   :  { %v1906_v9 = vadd.f32 %v1905_v58, %v1857_v25  ;;  %v2094_v58 = vpack.c.bf16 %v2046_v54, %v2046_v54  ;;  %v1876_v24 = vadd.f32 %v7538_v49, %v1827_v13  ;;  %v2091_v49 = vpack.c.bf16 %v2043_v14, %v2043_v14 }
 0x275   :  { %3118 = vmatpush.bf16.msrb.mxu2 %v6391_v31  ;;  %v2021_v30 = vmul.f32 0.01, %v1871_v7  ;;  %vm2005_vm14 = vcmp.gt.f32.partialorder %v1871_v7, 0.0  ;;  %v2088_v21 = vpack.c.bf16 %v2040_v43, %v2040_v43  ;;  %v2038_v31 = vsel %vm2006_vm13, %v7532_v22, %v2022_v62  ;;  %v6390_v62 = vld [vmem:[#allocation16 + $0xb8] sm:$0xff]  ;;  %v6389_v43 = vld [vmem:[#allocation16 + $0xb0] sm:$0xff] }
 0x276   :  { %vm2019_vm3 = vcmp.gt.f32.partialorder %v1906_v9, 0.0  ;;  %v2035_v26 = vmul.f32 0.01, %v1906_v9  ;;  %v2126_v38 = vunpack.c.l.b16 %v2094_v58  ;;  %v2023_v15 = vmul.f32 0.01, %v1876_v24  ;;  %3062 = vmatpush.bf16.msrb.mxu1 %v6390_v62 }
 0x277   :  { %vm2007_vm12 = vcmp.gt.f32.partialorder %v1876_v24, 0.0  ;;  %v2123_v11 = vunpack.c.l.b16 %v2091_v49  ;;  %v2037_v54 = vsel %vm2005_vm14, %v1871_v7, %v2021_v30  ;;  %v2120_v0 = vunpack.c.l.b16 %v2088_v21  ;;  %v6382_v49 = vld [vmem:[#allocation14 + $0xf8] sm:$0xff] }
 0x278   :  { %v2051_v6 = vsel %vm2019_vm3, %v1906_v9, %v2035_v26  ;;  %v2127_v9 = vunpack.c.l.b16 %v2095_v56  ;;  %v2092_v26 = vpack.c.bf16 %v2044_v34, %v2044_v34  ;;  %v2039_v4 = vsel %vm2007_vm12, %v1876_v24, %v2023_v15  ;;  %v6552_v34 = vld [vmem:[#allocation8] sm:$0xff]  ;;  %v6374_v30 = vld [vmem:[#allocation14 + $0xb8] sm:$0xff] }
 0x279   :  { %v2099_v48 = vpack.c.bf16 %v2051_v6, %v2051_v6  ;;  %v2041_v6 = vsel %vm2009_vm10, %v1881_v59, %v2025_v10  ;;  %v2087_v19 = vpack.c.bf16 %v2039_v4, %v2039_v4  ;;  %v2085_v33 = vpack.c.bf16 %v2037_v54, %v2037_v54  ;;  %v6560_v15 = vld [vmem:[#allocation8 + $0x20] sm:$0xff]  ;;  %v6388_v4 = vld [vmem:[#allocation16 + $0xa8] sm:$0xff]  ;;  %v6386_v54 = vld [vmem:[#allocation16 + $0x98] sm:$0xff] }
 0x27a   :  { %v7607_v18 = vpack.c.b16 %v2127_v9, %v2126_v38  ;;  %v2124_v53 = vunpack.c.l.b16 %v2092_v26  ;;  %v2089_v51 = vpack.c.bf16 %v2041_v6, %v2041_v6  ;;  %v6554_v26 = vld [vmem:[#allocation8 + $0x8] sm:$0xff]  ;;  %v6561_v6 = vld [vmem:[#allocation10 + $0x20] sm:$0xff]  ;;  %3063 = vmatpush.bf16.msrb.mxu1 %v6389_v43 }
 0x27b   :  { %v2131_v60 = vunpack.c.l.b16 %v2099_v48  ;;  %v2090_v48 = vpack.c.bf16 %v2042_v37, %v2042_v37  ;;  %v2119_v22 = vunpack.c.l.b16 %v2087_v19  ;;  %v2117_v13 = vunpack.c.l.b16 %v2085_v33  ;;  %v6555_v38 = vld [vmem:[#allocation10 + $0x8] sm:$0xff]  ;;  %v6558_v37 = vld [vmem:[#allocation8 + $0x18] sm:$0xff]  ;;  %v6375_v19 = vld [vmem:[#allocation14 + $0xc0] sm:$0xff] }
 0x27c   :  { %2337 = vmatmul.bf16.gmra.mxu1 %v6549_v3  ;;  %v7615_v55 = vpack.c.b16 %v2125_v16, %v2124_v53  ;;  %v2121_v32 = vunpack.c.l.b16 %v2089_v51  ;;  %v2086_v3 = vpack.c.bf16 %v2038_v31, %v2038_v31  ;;  %v6559_v16 = vld [vmem:[#allocation10 + $0x18] sm:$0xff]  ;;  %v6379_v53 = vld [vmem:[#allocation14 + $0xe0] sm:$0xff]  ;;  %v6563_v51 = vld [vmem:[#allocation10 + $0x28] sm:$0xff] }
 0x27d   :  { %v7581_v25 = vpack.c.b16 %v2131_v60, %v2130_v57  ;;  %v2122_v57 = vunpack.c.l.b16 %v2090_v48  ;;  %v2020_v60 = vmul.f32 0.01, %v7505_v28  ;;  %v6380_v48 = vld [vmem:[#allocation14 + $0xe8] sm:$0xff]  ;;  %v6387_v31 = vld [vmem:[#allocation16 + $0xa0] sm:$0xff] }
 0x27e   :  { %v7627_v59 = vpack.c.b16 %v2121_v32, %v2120_v0  ;;  %v2118_v58 = vunpack.c.l.b16 %v2086_v3  ;;  %3064 = vmatpush.bf16.msrb.mxu1 %v6388_v4  ;;  %v6372_v32 = vld [vmem:[#allocation14 + $0xa8] sm:$0xff]  ;;  %v6385_v0 = vld [vmem:[#allocation16 + $0x90] sm:$0xff] }
 0x27f   :  { %2148 = vmatpush.bf16.msrb.mxu3 %v7581_v25  ;;  %2197 = vmatpush.bf16.msrb.mxu0 %v7581_v25  ;;  %v7622_v20 = vpack.c.b16 %v2123_v11, %v2122_v57  ;;  %v2036_v56 = vsel %vm2004_vm15, %v7505_v28, %v2020_v60  ;;  %v6562_v11 = vld [vmem:[#allocation8 + $0x28] sm:$0xff]  ;;  %v6373_v57 = vld [vmem:[#allocation14 + $0xb0] sm:$0xff] }
 0x280   :  { %2429 = vmatmul.bf16.gmra.mxu2 %v6550_v39  ;;  %v2084_v45 = vpack.c.bf16 %v2036_v56, %v2036_v56  ;;  %v7631_v63 = vpack.c.b16 %v2119_v22, %v2118_v58  ;;  %v6553_v39 = vld [vmem:[#allocation10] sm:$0xff]  ;;  %v6376_v60 = vld [vmem:[#allocation14 + $0xc8] sm:$0xff]  ;;  %v6564_v56 = vld [vmem:[#allocation8 + $0x30] sm:$0xff] }
 0x281   :  { %v6370_v22 = vld [vmem:[#allocation14 + $0x98] sm:$0xff]  ;;  %v6384_v33 = vld [vmem:[#allocation16 + $0x88] sm:$0xff]  ;;  %v6383_v58 = vld [vmem:[#allocation16 + $0x80] sm:$0xff] }
 0x282   :  { %v2116_v1 = vunpack.c.l.b16 %v2084_v45  ;;  %3065 = vmatpush.bf16.msrb.mxu1 %v6387_v31  ;;  %v6369_v45 = vld [vmem:[#allocation14 + $0x90] sm:$0xff] }
 0x283   :  { %2149 = vmatpush.bf16.msrb.mxu3 %v7595_v42  ;;  %2198 = vmatpush.bf16.msrb.mxu0 %v7595_v42 }
 0x284   :  { %v7635_v28 = vpack.c.b16 %v2117_v13, %v2116_v1 }
 0x286   :  { %3066 = vmatpush.bf16.msrb.mxu1 %v6386_v54 }
 0x287   :  { %2150 = vmatpush.bf16.msrb.mxu3 %v7607_v18  ;;  %2199 = vmatpush.bf16.msrb.mxu0 %v7607_v18 }
 0x289   :  { %v7662_v1 = vpop.f32.mrf.mxu1 }
 0x28a   :  { %3067 = vmatpush.bf16.msrb.mxu1 %v6385_v0 }
 0x28b   :  { %2151 = vmatpush.bf16.msrb.mxu3 %v7615_v55  ;;  %2200 = vmatpush.bf16.msrb.mxu0 %v7615_v55 }
 0x28e   :  { %3068 = vmatpush.bf16.msrb.mxu1 %v6384_v33 }
 0x28f   :  { %2152 = vmatpush.bf16.msrb.mxu3 %v7622_v20  ;;  %2201 = vmatpush.bf16.msrb.mxu0 %v7622_v20 }
 0x290   :  { %2434 = vmatmul.bf16.gmra.mxu2 %v6551_v29  ;;  %v6565_v29 = vld [vmem:[#allocation10 + $0x30] sm:$0xff] }
 0x292   :  { %3069 = vmatpush.bf16.msrb.mxu1 %v6383_v58 }
 0x293   :  { %2153 = vmatpush.bf16.msrb.mxu3 %v7627_v59  ;;  %2202 = vmatpush.bf16.msrb.mxu0 %v7627_v59 }
 0x297   :  { %2154 = vmatpush.bf16.msrb.mxu3 %v7631_v63  ;;  %2203 = vmatpush.bf16.msrb.mxu0 %v7631_v63 }
 0x29b   :  { %2155 = vmatpush.bf16.msrb.mxu3 %v7635_v28  ;;  %2204 = vmatpush.bf16.msrb.mxu0 %v7635_v28 }
 0x29e   :  { %2156 = vmatmul.bf16.vlgmr.msrb.gmra.mxu3 %v6552_v34  ;;  %2205 = vmatmul.bf16.vlgmr.msrb.gmra.mxu0 %v6553_v39  ;;  %v6368_v34 = vld [vmem:[#allocation14 + $0x88] sm:$0xff]  ;;  %v6367_v39 = vld [vmem:[#allocation14 + $0x80] sm:$0xff] }
 0x29f   :  { %2879 = vmatpush.bf16.msra.mxu0 %v6382_v49  ;;  %2830 = vmatpush.bf16.msra.mxu3 %v6374_v30 }
 0x2a0   :  { %3119 = vmatmul.bf16.vlgmr.msrb.gmra.mxu2 %v7366_v50  ;;  %v6557_v50 = vld [vmem:[#allocation10 + $0x10] sm:$0xff] }
 0x2a3   :  { %v2400_v9 = vpop.f32.mrf.mxu2  ;;  %2831 = vmatpush.bf16.msra.mxu3 %v6373_v57 }
 0x2a4   :  { %v2584_v44 = vpack.c.bf16 %v2400_v9, %v2400_v9  ;;  %v6566_v9 = vld [vmem:[#allocation8 + $0x38] sm:$0xff] }
 0x2a6   :  { %v7640_v24 = vunpack.c.l.b16 %v2584_v44  ;;  %v6567_v44 = vld [vmem:[#allocation10 + $0x38] sm:$0xff] }
 0x2a7   :  { %2832 = vmatpush.bf16.msra.mxu3 %v6372_v32 }
 0x2ab   :  { %v2402_v52 = vpop.f32.mrf.mxu2 }
 0x2ac   :  { %v2585_v10 = vpack.c.bf16 %v2402_v52, %v2402_v52  ;;  %v7667_v52 = vpop.f32.mrf.mxu1 }
 0x2ae   :  { %v7642_v14 = vunpack.c.l.b16 %v2585_v10  ;;  %2161 = vmatmul.bf16.gmra.mxu3 %v6554_v26  ;;  %2210 = vmatmul.bf16.gmra.mxu0 %v6555_v38 }
 0x2b0   :  { %v2680_v47 = vpack.c.b16 %v7642_v14, %v7640_v24  ;;  %3124 = vmatmul.bf16.gmra.mxu2 %v7384_v27  ;;  %v6381_v27 = vld [vmem:[#allocation14 + $0xf0] sm:$0xff] }
 0x2b1   :  { %2880 = vmatpush.bf16.msra.mxu0 %v6381_v27 }
 0x2b3   :  { %v7649_v7 = vpop.f32.mrf.mxu2 }
 0x2b4   :  { %v7669_v26 = vpop.f32.mrf.mxu1 }
 0x2b5   :  { %2881 = vmatpush.bf16.msra.mxu0 %v6380_v48 }
 0x2b9   :  { %2882 = vmatpush.bf16.msra.mxu0 %v6379_v53 }
 0x2bc   :  { %v7672_v49 = vpop.f32.mrf.mxu1 }
 0x2be   :  { %2166 = vmatmul.bf16.gmra.mxu3 %v6556_v8  ;;  %2215 = vmatmul.bf16.gmra.mxu0 %v6557_v50 }
 0x2c0   :  { %3129 = vmatmul.bf16.gmra.mxu2 %v7403_v35  ;;  %v7652_v35 = vpop.f32.mrf.mxu2 }
 0x2c8   :  { %v7655_v21 = vpop.f32.mrf.mxu2 }
 0x2ce   :  { %2171 = vmatmul.bf16.gmra.mxu3 %v6558_v37  ;;  %2220 = vmatmul.bf16.gmra.mxu0 %v6559_v16 }
 0x2d0   :  { %3134 = vmatmul.bf16.gmra.mxu2 %v7420_v5  ;;  %v6378_v5 = vld [vmem:[#allocation14 + $0xd8] sm:$0xff]  ;;  %v7657_v3 = vpop.f32.mrf.mxu2 }
 0x2d1   :  { %2883 = vmatpush.bf16.msra.mxu0 %v6378_v5 }
 0x2d8   :  { %v7660_v13 = vpop.f32.mrf.mxu2 }
 0x2de   :  { %2176 = vmatmul.bf16.gmra.mxu3 %v6560_v15  ;;  %2225 = vmatmul.bf16.gmra.mxu0 %v6561_v6 }
 0x2e0   :  { %3139 = vmatmul.bf16.gmra.mxu2 %v7530_v41  ;;  %v6377_v41 = vld [vmem:[#allocation14 + $0xd0] sm:$0xff] }
 0x2e1   :  { %2884 = vmatpush.bf16.msra.mxu0 %v6377_v41 }
 0x2e5   :  { %2885 = vmatpush.bf16.msra.mxu0 %v6376_v60 }
 0x2e9   :  { %2886 = vmatpush.bf16.msra.mxu0 %v6375_v19 }
 0x2ee   :  { %2181 = vmatmul.bf16.gmra.mxu3 %v6562_v11  ;;  %2230 = vmatmul.bf16.gmra.mxu0 %v6563_v51 }
 0x2f0   :  { %3144 = vmatmul.bf16.gmra.mxu2 %v7525_v17  ;;  %v6371_v17 = vld [vmem:[#allocation14 + $0xa0] sm:$0xff] }
 0x2f1   :  { %2833 = vmatpush.bf16.msra.mxu3 %v6371_v17 }
 0x2f5   :  { %2834 = vmatpush.bf16.msra.mxu3 %v6370_v22 }
 0x2f9   :  { %2835 = vmatpush.bf16.msra.mxu3 %v6369_v45 }
 0x2fd   :  { %2836 = vmatpush.bf16.msra.mxu3 %v6368_v34 }
 0x2fe   :  { %2186 = vmatmul.bf16.gmra.mxu3 %v6564_v56  ;;  %2235 = vmatmul.bf16.gmra.mxu0 %v6565_v29 }
 0x300   :  { %3149 = vmatmul.bf16.gmra.mxu2 %v7519_v23  ;;  %v7664_v23 = vpop.f32.mrf.mxu2 }
 0x301   :  { %2837 = vmatpush.bf16.msra.mxu3 %v6367_v39 }
 0x308   :  { %v7679_v54 = vpop.f32.mrf.mxu2 }
 0x30e   :  { %2191 = vmatmul.bf16.gmra.mxu3 %v6566_v9  ;;  %2240 = vmatmul.bf16.gmra.mxu0 %v6567_v44 }
 0x310   :  { %3154 = vmatmul.bf16.gmra.mxu2 %v7510_v40  ;;  %v7684_v34 = vpop.f32.mrf.mxu2 }
 0x31b   :  { %v2206_v10 = vpop.f32.mrf.mxu0 }
 0x31c   :  { %v2504_v38 = vpack.c.bf16 %v2206_v10, %v2206_v10 }
 0x31e   :  { %2887 = vmatmul.bf16.vlgmr.msra.gmra.mxu0 %v7348_v2  ;;  %v2536_v37 = vunpack.c.l.b16 %v2504_v38  ;;  %v7675_v2 = vpop.f32.mrf.mxu1 }
 0x321   :  { %v2157_v8 = vpop.f32.mrf.mxu3 }
 0x322   :  { %v2440_v6 = vpack.c.bf16 %v2157_v8, %v2157_v8 }
 0x323   :  { %v2208_v50 = vpop.f32.mrf.mxu0 }
 0x324   :  { %v2505_v16 = vpack.c.bf16 %v2208_v50, %v2208_v50  ;;  %v2472_v62 = vunpack.c.l.b16 %v2440_v6  ;;  %v7688_v6 = vpop.f32.mrf.mxu2 }
 0x326   :  { %v2537_v15 = vunpack.c.l.b16 %v2505_v16  ;;  %v7677_v19 = vpop.f32.mrf.mxu1 }
 0x328   :  { %v2552_v27 = vpack.c.b16 %v2537_v15, %v2536_v37 }
 0x329   :  { %v2159_v48 = vpop.f32.mrf.mxu3 }
 0x32a   :  { %v2441_v53 = vpack.c.bf16 %v2159_v48, %v2159_v48  ;;  %3070 = vmatmul.bf16.vlgmr.msrb.gmra.mxu1 %v2552_v27 }
 0x32b   :  { %v2211_v40 = vpop.f32.mrf.mxu0 }
 0x32c   :  { %v2473_v5 = vunpack.c.l.b16 %v2441_v53  ;;  %v2506_v11 = vpack.c.bf16 %v2211_v40, %v2211_v40 }
 0x32e   :  { %v2488_v43 = vpack.c.b16 %v2473_v5, %v2472_v62  ;;  %2892 = vmatmul.bf16.gmra.mxu0 %v7360_v12  ;;  %v2538_v41 = vunpack.c.l.b16 %v2506_v11  ;;  %v7682_v58 = vpop.f32.mrf.mxu1 }
 0x330   :  { %2838 = vmatmul.bf16.vlgmr.msra.gmra.mxu3 %v2488_v43 }
 0x331   :  { %v2162_v51 = vpop.f32.mrf.mxu3 }
 0x332   :  { %v2442_v60 = vpack.c.bf16 %v2162_v51, %v2162_v51  ;;  %v7693_v51 = vpop.f32.mrf.mxu2 }
 0x333   :  { %v2213_v30 = vpop.f32.mrf.mxu0 }
 0x334   :  { %v2507_v4 = vpack.c.bf16 %v2213_v30, %v2213_v30  ;;  %v2474_v12 = vunpack.c.l.b16 %v2442_v60 }
 0x336   :  { %v2539_v57 = vunpack.c.l.b16 %v2507_v4  ;;  %v7686_v15 = vpop.f32.mrf.mxu1 }
 0x338   :  { %v2553_v31 = vpack.c.b16 %v2539_v57, %v2538_v41 }
 0x339   :  { %v2164_v32 = vpop.f32.mrf.mxu3 }
 0x33a   :  { %v2443_v17 = vpack.c.bf16 %v2164_v32, %v2164_v32  ;;  %3075 = vmatmul.bf16.gmra.mxu1 %v2553_v31 }
 0x33b   :  { %v2216_v0 = vpop.f32.mrf.mxu0 }
 0x33c   :  { %v2475_v56 = vunpack.c.l.b16 %v2443_v17  ;;  %v2508_v22 = vpack.c.bf16 %v2216_v0, %v2216_v0 }
 0x33e   :  { %2897 = vmatmul.bf16.gmra.mxu0 %v7374_v61  ;;  %v2489_v29 = vpack.c.b16 %v2475_v56, %v2474_v12  ;;  %v2540_v39 = vunpack.c.l.b16 %v2508_v22  ;;  %v7691_v11 = vpop.f32.mrf.mxu1  ;;  %v7698_v56 = vpop.f32.mrf.mxu2 }
 0x340   :  { %2843 = vmatmul.bf16.gmra.mxu3 %v2489_v29 }
 0x341   :  { %v2167_v33 = vpop.f32.mrf.mxu3 }
 0x342   :  { %v2444_v10 = vpack.c.bf16 %v2167_v33, %v2167_v33 }
 0x343   :  { %v2218_v45 = vpop.f32.mrf.mxu0 }
 0x344   :  { %v2509_v9 = vpack.c.bf16 %v2218_v45, %v2218_v45  ;;  %v2476_v16 = vunpack.c.l.b16 %v2444_v10 }
 0x346   :  { %v2541_v44 = vunpack.c.l.b16 %v2509_v9  ;;  %v7696_v12 = vpop.f32.mrf.mxu1 }
 0x348   :  { %v2554_v38 = vpack.c.b16 %v2541_v44, %v2540_v39  ;;  %v6414_v39 = vld [vmem:[#allocation17 + $0x138] sm:$0xff] }
 0x349   :  { %v2169_v8 = vpop.f32.mrf.mxu3  ;;  %3407 = vmatpush.bf16.msrb.mxu0 %v6414_v39 }
 0x34a   :  { %v2445_v50 = vpack.c.bf16 %v2169_v8, %v2169_v8  ;;  %3080 = vmatmul.bf16.gmra.mxu1 %v2554_v38  ;;  %v6422_v38 = vld [vmem:[#allocation17 + $0x178] sm:$0xff] }
 0x34b   :  { %v2221_v37 = vpop.f32.mrf.mxu0  ;;  %3456 = vmatpush.bf16.msra.mxu1 %v6422_v38 }
 0x34c   :  { %v2477_v61 = vunpack.c.l.b16 %v2445_v50  ;;  %v2510_v48 = vpack.c.bf16 %v2221_v37, %v2221_v37  ;;  %v6413_v37 = vld [vmem:[#allocation17 + $0x130] sm:$0xff] }
 0x34d   :  { %3408 = vmatpush.bf16.msrb.mxu0 %v6413_v37 }
 0x34e   :  { %2902 = vmatmul.bf16.gmra.mxu0 %v7398_v36  ;;  %v2490_v27 = vpack.c.b16 %v2477_v61, %v2476_v16  ;;  %v2542_v62 = vunpack.c.l.b16 %v2510_v48  ;;  %v7700_v50 = vpop.f32.mrf.mxu1  ;;  %v7702_v16 = vpop.f32.mrf.mxu2  ;;  %v6421_v48 = vld [vmem:[#allocation17 + $0x170] sm:$0xff] }
 0x34f   :  { %3457 = vmatpush.bf16.msra.mxu1 %v6421_v48  ;;  %v8383_v48 = vld [vmem:[#allocation32_spill] sm:$0xff] }
 0x350   :  { %2848 = vmatmul.bf16.gmra.mxu3 %v2490_v27 }
 0x351   :  { %v2172_v53 = vpop.f32.mrf.mxu3 }
 0x352   :  { %v2446_v30 = vpack.c.bf16 %v2172_v53, %v2172_v53  ;;  %v8382_v53 = vld [vmem:[#allocation33_spill] sm:$0xff] }
 0x353   :  { %v2223_v40 = vpop.f32.mrf.mxu0 }
 0x354   :  { %v2511_v5 = vpack.c.bf16 %v2223_v40, %v2223_v40  ;;  %v2478_v31 = vunpack.c.l.b16 %v2446_v30 }
 0x356   :  { %v2543_v43 = vunpack.c.l.b16 %v2511_v5  ;;  %v6412_v5 = vld [vmem:[#allocation17 + $0x128] sm:$0xff] }
 0x357   :  { %3409 = vmatpush.bf16.msrb.mxu0 %v6412_v5  ;;  %v6408_v5 = vld [vmem:[#allocation17 + $0x108] sm:$0xff] }
 0x358   :  { %v2555_v41 = vpack.c.b16 %v2543_v43, %v2542_v62  ;;  %v6406_v62 = vld [vmem:[#allocation17 + $0xf8] sm:$0xff] }
 0x359   :  { %v2174_v4 = vpop.f32.mrf.mxu3  ;;  %3358 = vmatpush.bf16.msrb.mxu3 %v6406_v62  ;;  %v6402_v62 = vld [vmem:[#allocation17 + $0xd8] sm:$0xff] }
 0x35a   :  { %v2447_v57 = vpack.c.bf16 %v2174_v4, %v2174_v4  ;;  %3085 = vmatmul.bf16.gmra.mxu1 %v2555_v41  ;;  %v6420_v41 = vld [vmem:[#allocation17 + $0x168] sm:$0xff] }
 0x35b   :  { %v2226_v60 = vpop.f32.mrf.mxu0  ;;  %3458 = vmatpush.bf16.msra.mxu1 %v6420_v41 }
 0x35c   :  { %v2479_v36 = vunpack.c.l.b16 %v2447_v57  ;;  %v2512_v17 = vpack.c.bf16 %v2226_v60, %v2226_v60  ;;  %v6405_v57 = vld [vmem:[#allocation17 + $0xf0] sm:$0xff]  ;;  %v6411_v60 = vld [vmem:[#allocation17 + $0x120] sm:$0xff] }
 0x35d   :  { %3359 = vmatpush.bf16.msrb.mxu3 %v6405_v57  ;;  %3410 = vmatpush.bf16.msrb.mxu0 %v6411_v60  ;;  %v6401_v60 = vld [vmem:[#allocation17 + $0xd0] sm:$0xff] }
 0x35e   :  { %2907 = vmatmul.bf16.gmra.mxu0 %v7500_v46  ;;  %v2491_v32 = vpack.c.b16 %v2479_v36, %v2478_v31  ;;  %v2544_v22 = vunpack.c.l.b16 %v2512_v17  ;;  %v6419_v17 = vld [vmem:[#allocation17 + $0x160] sm:$0xff] }
 0x35f   :  { %3459 = vmatpush.bf16.msra.mxu1 %v6419_v17 }
 0x360   :  { %2853 = vmatmul.bf16.gmra.mxu3 %v2491_v32  ;;  %v7705_v32 = vpop.f32.mrf.mxu1 }
 0x361   :  { %v2177_v0 = vpop.f32.mrf.mxu3 }
 0x362   :  { %v2448_v9 = vpack.c.bf16 %v2177_v0, %v2177_v0  ;;  %v7707_v0 = vpop.f32.mrf.mxu2 }
 0x363   :  { %v2228_v29 = vpop.f32.mrf.mxu0 }
 0x364   :  { %v2513_v33 = vpack.c.bf16 %v2228_v29, %v2228_v29  ;;  %v2480_v61 = vunpack.c.l.b16 %v2448_v9 }
 0x366   :  { %v2545_v45 = vunpack.c.l.b16 %v2513_v33  ;;  %v6410_v33 = vld [vmem:[#allocation17 + $0x118] sm:$0xff] }
 0x367   :  { %3411 = vmatpush.bf16.msrb.mxu0 %v6410_v33  ;;  %v6400_v33 = vld [vmem:[#allocation17 + $0xc8] sm:$0xff] }
 0x368   :  { %v2556_v44 = vpack.c.b16 %v2545_v45, %v2544_v22  ;;  %v6404_v22 = vld [vmem:[#allocation17 + $0xe8] sm:$0xff] }
 0x369   :  { %v2179_v10 = vpop.f32.mrf.mxu3  ;;  %3360 = vmatpush.bf16.msrb.mxu3 %v6404_v22 }
 0x36a   :  { %v2449_v8 = vpack.c.bf16 %v2179_v10, %v2179_v10  ;;  %3090 = vmatmul.bf16.gmra.mxu1 %v2556_v44  ;;  %v6418_v44 = vld [vmem:[#allocation17 + $0x158] sm:$0xff] }
 0x36b   :  { %v2231_v46 = vpop.f32.mrf.mxu0  ;;  %3460 = vmatpush.bf16.msra.mxu1 %v6418_v44 }
 0x36c   :  { %v2481_v27 = vunpack.c.l.b16 %v2449_v8  ;;  %v2514_v43 = vpack.c.bf16 %v2231_v46, %v2231_v46  ;;  %v6403_v8 = vld [vmem:[#allocation17 + $0xe0] sm:$0xff]  ;;  %v6409_v46 = vld [vmem:[#allocation17 + $0x110] sm:$0xff] }
 0x36d   :  { %3361 = vmatpush.bf16.msrb.mxu3 %v6403_v8  ;;  %3412 = vmatpush.bf16.msrb.mxu0 %v6409_v46  ;;  %v6399_v46 = vld [vmem:[#allocation17 + $0xc0] sm:$0xff] }
 0x36e   :  { %2912 = vmatmul.bf16.gmra.mxu0 %v8382_v53  ;;  %v2492_v40 = vpack.c.b16 %v2481_v27, %v2480_v61  ;;  %v2546_v31 = vunpack.c.l.b16 %v2514_v43  ;;  %v6417_v27 = vld [vmem:[#allocation17 + $0x150] sm:$0xff]  ;;  %v7712_v43 = vpop.f32.mrf.mxu2 }
 0x36f   :  { %3461 = vmatpush.bf16.msra.mxu1 %v6417_v27  ;;  %v2586_v27 = vpack.c.bf16 %v7649_v7, %v7649_v7 }
 0x370   :  { %2858 = vmatmul.bf16.gmra.mxu3 %v2492_v40  ;;  %v7710_v40 = vpop.f32.mrf.mxu1 }
 0x371   :  { %v2182_v30 = vpop.f32.mrf.mxu3  ;;  %3362 = vmatpush.bf16.msrb.mxu3 %v6402_v62  ;;  %3413 = vmatpush.bf16.msrb.mxu0 %v6408_v5 }
 0x372   :  { %v2450_v45 = vpack.c.bf16 %v2182_v30, %v2182_v30 }
 0x373   :  { %v2233_v4 = vpop.f32.mrf.mxu0 }
 0x374   :  { %v2515_v36 = vpack.c.bf16 %v2233_v4, %v2233_v4  ;;  %v2482_v37 = vunpack.c.l.b16 %v2450_v45  ;;  %v6416_v4 = vld [vmem:[#allocation17 + $0x148] sm:$0xff] }
 0x375   :  { %3462 = vmatpush.bf16.msra.mxu1 %v6416_v4  ;;  %3363 = vmatpush.bf16.msrb.mxu3 %v6401_v60 }
 0x376   :  { %v2547_v29 = vunpack.c.l.b16 %v2515_v36 }
 0x378   :  { %v2557_v39 = vpack.c.b16 %v2547_v29, %v2546_v31  ;;  %v6407_v31 = vld [vmem:[#allocation17 + $0x100] sm:$0xff]  ;;  %v7714_v44 = vpop.f32.mrf.mxu1 }
 0x379   :  { %v2184_v9 = vpop.f32.mrf.mxu3  ;;  %3414 = vmatpush.bf16.msrb.mxu0 %v6407_v31  ;;  %v6415_v29 = vld [vmem:[#allocation17 + $0x140] sm:$0xff]  ;;  %3364 = vmatpush.bf16.msrb.mxu3 %v6400_v33 }
 0x37a   :  { %v2451_v10 = vpack.c.bf16 %v2184_v9, %v2184_v9  ;;  %3095 = vmatmul.bf16.gmra.mxu1 %v2557_v39 }
 0x37b   :  { %v2236_v38 = vpop.f32.mrf.mxu0  ;;  %3463 = vmatpush.bf16.msra.mxu1 %v6415_v29 }
 0x37c   :  { %v2483_v61 = vunpack.c.l.b16 %v2451_v10  ;;  %v2516_v30 = vpack.c.bf16 %v2236_v38, %v2236_v38  ;;  %v3120_v10 = vpop.f32.mrf.mxu2 }
 0x37d   :  { %3365 = vmatpush.bf16.msrb.mxu3 %v6399_v46  ;;  %v2588_v46 = vpack.c.bf16 %v7655_v21, %v7655_v21  ;;  %v2568_v21 = vpack.c.bf16 %v7662_v1, %v7662_v1  ;;  %v2591_v1 = vpack.c.bf16 %v7664_v23, %v7664_v23 }
 0x37e   :  { %2917 = vmatmul.bf16.gmra.mxu0 %v8383_v48  ;;  %v2493_v53 = vpack.c.b16 %v2483_v61, %v2482_v37  ;;  %v2548_v36 = vunpack.c.l.b16 %v2516_v30  ;;  %v2587_v48 = vpack.c.bf16 %v7652_v35, %v7652_v35 }
 0x37f   :  { %v2616_v14 = vunpack.c.l.b16 %v2568_v21 }
 0x380   :  { %2863 = vmatmul.bf16.gmra.mxu3 %v2493_v53  ;;  %v8384_v53 = vld [vmem:[#allocation31_spill] sm:$0xff]  ;;  %v2667_v4 = vunpack.c.l.b16 %v2587_v48  ;;  %v7721_v60 = vpop.f32.mrf.mxu1  ;;  %v2668_v48 = vunpack.c.l.b16 %v2588_v46 }
 0x381   :  { %v2187_v41 = vpop.f32.mrf.mxu3 }
 0x382   :  { %v2452_v45 = vpack.c.bf16 %v2187_v41, %v2187_v41  ;;  %v2666_v41 = vunpack.c.l.b16 %v2586_v27 }
 0x383   :  { %v2238_v57 = vpop.f32.mrf.mxu0 }
 0x384   :  { %v2517_v17 = vpack.c.bf16 %v2238_v57, %v2238_v57  ;;  %v2484_v37 = vunpack.c.l.b16 %v2452_v45  ;;  %v3122_v31 = vpop.f32.mrf.mxu2 }
 0x386   :  { %v2549_v22 = vunpack.c.l.b16 %v2517_v17 }
 0x388   :  { %v2558_v39 = vpack.c.b16 %v2549_v22, %v2548_v36  ;;  %v2681_v22 = vpack.c.b16 %v2667_v4, %v2666_v41 }
 0x389   :  { %v2189_v9 = vpop.f32.mrf.mxu3 }
 0x38a   :  { %v2453_v38 = vpack.c.bf16 %v2189_v9, %v2189_v9  ;;  %3100 = vmatmul.bf16.gmra.mxu1 %v2558_v39 }
 0x38b   :  { %v2241_v8 = vpop.f32.mrf.mxu0 }
 0x38c   :  { %v2485_v61 = vunpack.c.l.b16 %v2453_v38  ;;  %v2518_v5 = vpack.c.bf16 %v2241_v8, %v2241_v8  ;;  %v7723_v8 = vpop.f32.mrf.mxu1 }
 0x38e   :  { %2922 = vmatmul.bf16.gmra.mxu0 %v8384_v53  ;;  %v2494_v62 = vpack.c.b16 %v2485_v61, %v2484_v37  ;;  %v2550_v36 = vunpack.c.l.b16 %v2518_v5  ;;  %v2589_v37 = vpack.c.bf16 %v7657_v3, %v7657_v3  ;;  %v3125_v61 = vpop.f32.mrf.mxu2  ;;  %v7735_v5 = vld [vmem:[%s8368_s11 + $0x1] ss:$0 sm:$0xff]  ;;  %v2569_v3 = vpack.c.bf16 %v7667_v52, %v7667_v52 }
 0x390   :  { %2868 = vmatmul.bf16.gmra.mxu3 %v2494_v62  ;;  %v2669_v53 = vunpack.c.l.b16 %v2589_v37  ;;  %v2570_v37 = vpack.c.bf16 %v7669_v26, %v7669_v26 }
 0x391   :  { %v2192_v30 = vpop.f32.mrf.mxu3 }
 0x392   :  { %v2454_v7 = vpack.c.bf16 %v2192_v30, %v2192_v30  ;;  %v2682_v30 = vpack.c.b16 %v2669_v53, %v2668_v48  ;;  %v2571_v48 = vpack.c.bf16 %v7672_v49, %v7672_v49 }
 0x393   :  { %v2243_v57 = vpop.f32.mrf.mxu0 }
 0x394   :  { %v2519_v17 = vpack.c.bf16 %v2243_v57, %v2243_v57  ;;  %v2486_v9 = vunpack.c.l.b16 %v2454_v7 }
 0x396   :  { %v2551_v29 = vunpack.c.l.b16 %v2519_v17  ;;  %v3127_v4 = vpop.f32.mrf.mxu2  ;;  %v2590_v17 = vpack.c.bf16 %v7660_v13, %v7660_v13 }
 0x398   :  { %v2559_v33 = vpack.c.b16 %v2551_v29, %v2550_v36 }
 0x399   :  { %v2194_v45 = vpop.f32.mrf.mxu3 }
 0x39a   :  { %v2455_v35 = vpack.c.bf16 %v2194_v45, %v2194_v45  ;;  %3105 = vmatmul.bf16.gmra.mxu1 %v2559_v33  ;;  %v7757_v45 = vunpack.c.l.b16 %v2591_v1 }
 0x39b   :  { %v2888_v39 = vpop.f32.mrf.mxu0 }
 0x39c   :  { %v2487_v38 = vunpack.c.l.b16 %v2455_v35 }
 0x39e   :  { %v2495_v27 = vpack.c.b16 %v2487_v38, %v2486_v9  ;;  %3415 = vmatmul.bf16.vlgmr.msrb.gmra.mxu0 %v2680_v47  ;;  %v2617_v47 = vunpack.c.l.b16 %v2569_v3  ;;  %v7759_v13 = vpop.f32.mrf.mxu2 }
 0x3a0   :  { %2873 = vmatmul.bf16.gmra.mxu3 %v2495_v27  ;;  %v2632_v29 = vpack.c.b16 %v2617_v47, %v2616_v14 }
 0x3a3   :  { %v2890_v62 = vpop.f32.mrf.mxu0 }
 0x3a7   :  { %v3071_v41 = vpop.f32.mrf.mxu1 }
 0x3a8   :  { %v3072_v24 = vadd.f32 %v7735_v5, %v3071_v41 }
 0x3aa   :  { %v3121_v57 = vadd.f32 %v3120_v10, %v3072_v24  ;;  %3464 = vmatmul.bf16.vlgmr.msra.gmra.mxu1 %v7635_v28  ;;  %v7753_v28 = vld [vmem:[%s8367_s10 + $0x1] ss:$0 sm:$0xff]  ;;  %v7755_v10 = vunpack.c.l.b16 %v2590_v17  ;;  %v2619_v17 = vunpack.c.l.b16 %v2571_v48 }
 0x3ab   :  { %v7743_v36 = vpop.f32.mrf.mxu0 }
 0x3ac   :  { %v3569_v52 = vmul.f32 0.01, %v3121_v57  ;;  %vm3553_vm0 = vcmp.gt.f32.partialorder %v3121_v57, 0.0  ;;  %v2683_v21 = vpack.c.b16 %v7757_v45, %v7755_v10 }
 0x3ae   :  { %3420 = vmatmul.bf16.gmra.mxu0 %v2681_v22  ;;  %v3585_v35 = vsel %vm3553_vm0, %v3121_v57, %v3569_v52  ;;  %v2618_v57 = vunpack.c.l.b16 %v2570_v37  ;;  %v3132_v52 = vpop.f32.mrf.mxu2 }
 0x3af   :  { %v3073_v7 = vpop.f32.mrf.mxu1  ;;  %v3665_v27 = vpack.c.bf16 %v3585_v35, %v3585_v35 }
 0x3b0   :  { %v3074_v33 = vadd.f32 %v7735_v5, %v3073_v7  ;;  %3366 = vmatmul.bf16.vlgmr.msrb.gmra.mxu3 %v2632_v29  ;;  %v2633_v35 = vpack.c.b16 %v2619_v17, %v2618_v57  ;;  %v2573_v57 = vpack.c.bf16 %v7677_v19, %v7677_v19 }
 0x3b1   :  { %v3956_v14 = vunpack.c.l.b16 %v3665_v27 }
 0x3b2   :  { %v3123_v23 = vadd.f32 %v3122_v31, %v3074_v33 }
 0x3b3   :  { %v2839_v9 = vpop.f32.mrf.mxu3  ;;  %v7761_v22 = vpop.f32.mrf.mxu0 }
 0x3b4   :  { %vm3554_vm1 = vcmp.gt.f32.partialorder %v3123_v23, 0.0  ;;  %v3570_v38 = vmul.f32 0.01, %v3123_v23  ;;  %v2840_v46 = vadd.f32 %v7753_v28, %v2839_v9 }
 0x3b6   :  { %v2889_v53 = vadd.f32 %v2888_v39, %v2840_v46  ;;  %v3586_v31 = vsel %vm3554_vm1, %v3123_v23, %v3570_v38 }
 0x3b7   :  { %v3076_v3 = vpop.f32.mrf.mxu1  ;;  %v3666_v41 = vpack.c.bf16 %v3586_v31, %v3586_v31 }
 0x3b8   :  { %v3077_v24 = vadd.f32 %v7735_v5, %v3076_v3  ;;  %v3521_v1 = vmul.f32 0.01, %v2889_v53  ;;  %vm3505_vm2 = vcmp.gt.f32.partialorder %v2889_v53, 0.0 }
 0x3b9   :  { %v3957_v47 = vunpack.c.l.b16 %v3666_v41 }
 0x3ba   :  { %v3126_v29 = vadd.f32 %v3125_v61, %v3077_v24  ;;  %3469 = vmatmul.bf16.gmra.mxu1 %v7631_v63  ;;  %v3537_v9 = vsel %vm3505_vm2, %v2889_v53, %v3521_v1 }
 0x3bb   :  { %v2841_v26 = vpop.f32.mrf.mxu3  ;;  %v7772_v49 = vpop.f32.mrf.mxu0  ;;  %v7774_v39 = vpack.c.b16 %v3957_v47, %v3956_v14  ;;  %v3649_v46 = vpack.c.bf16 %v3537_v9, %v3537_v9  ;;  %v2572_v47 = vpack.c.bf16 %v7675_v2, %v7675_v2 }
 0x3bc   :  { %v2842_v7 = vadd.f32 %v7753_v28, %v2841_v26  ;;  %v3571_v33 = vmul.f32 0.01, %v3126_v29  ;;  %vm3555_vm3 = vcmp.gt.f32.partialorder %v3126_v29, 0.0 }
 0x3bd   :  { %v3859_v24 = vunpack.c.l.b16 %v3649_v46  ;;  %v2620_v9 = vunpack.c.l.b16 %v2572_v47 }
 0x3be   :  { %v2891_v23 = vadd.f32 %v2890_v62, %v2842_v7  ;;  %3425 = vmatmul.bf16.gmra.mxu0 %v2682_v30  ;;  %v3587_v27 = vsel %vm3555_vm3, %v3126_v29, %v3571_v33 }
 0x3bf   :  { %v3078_v38 = vpop.f32.mrf.mxu1  ;;  %v3667_v53 = vpack.c.bf16 %v3587_v27, %v3587_v27 }
 0x3c0   :  { %vm3506_vm4 = vcmp.gt.f32.partialorder %v2891_v23, 0.0  ;;  %v3522_v61 = vmul.f32 0.01, %v2891_v23  ;;  %v3079_v63 = vadd.f32 %v7735_v5, %v3078_v38  ;;  %3371 = vmatmul.bf16.gmra.mxu3 %v2633_v35  ;;  %v2621_v38 = vunpack.c.l.b16 %v2573_v57 }
 0x3c2   :  { %v3128_v37 = vadd.f32 %v3127_v4, %v3079_v63  ;;  %v3538_v48 = vsel %vm3506_vm4, %v2891_v23, %v3522_v61  ;;  %v3135_v4 = vpop.f32.mrf.mxu2  ;;  %v3958_v23 = vunpack.c.l.b16 %v3667_v53 }
 0x3c3   :  { %v2844_v31 = vpop.f32.mrf.mxu3  ;;  %v7778_v3 = vpop.f32.mrf.mxu0  ;;  %v3650_v41 = vpack.c.bf16 %v3538_v48, %v3538_v48  ;;  %v2634_v48 = vpack.c.b16 %v2621_v38, %v2620_v9 }
 0x3c4   :  { %vm3556_vm5 = vcmp.gt.f32.partialorder %v3128_v37, 0.0  ;;  %v3572_v62 = vmul.f32 0.01, %v3128_v37  ;;  %v2845_v30 = vadd.f32 %v7753_v28, %v2844_v31 }
 0x3c5   :  { %v3860_v14 = vunpack.c.l.b16 %v3650_v41 }
 0x3c6   :  { %v2894_v17 = vadd.f32 %v7743_v36, %v2845_v30  ;;  %v3588_v1 = vsel %vm3556_vm5, %v3128_v37, %v3572_v62 }
 0x3c7   :  { %v3081_v29 = vpop.f32.mrf.mxu1  ;;  %v3668_v26 = vpack.c.bf16 %v3588_v1, %v3588_v1  ;;  %v7786_v7 = vpack.c.b16 %v3860_v14, %v3859_v24  ;;  %v2574_v1 = vpack.c.bf16 %v7682_v58, %v7682_v58 }
 0x3c8   :  { %v3082_v33 = vadd.f32 %v7735_v5, %v3081_v29  ;;  %v3523_v61 = vmul.f32 0.01, %v2894_v17  ;;  %vm3507_vm6 = vcmp.gt.f32.partialorder %v2894_v17, 0.0 }
 0x3c9   :  { %v3959_v35 = vunpack.c.l.b16 %v3668_v26 }
 0x3ca   :  { %v3131_v2 = vadd.f32 %v7759_v13, %v3082_v33  ;;  %3474 = vmatmul.bf16.gmra.mxu1 %v7627_v59  ;;  %v3539_v31 = vsel %vm3507_vm6, %v2894_v17, %v3523_v61  ;;  %v2592_v59 = vpack.c.bf16 %v7679_v54, %v7679_v54  ;;  %v3137_v41 = vpop.f32.mrf.mxu2 }
 0x3cb   :  { %v2846_v19 = vpop.f32.mrf.mxu3  ;;  %v7791_v63 = vpop.f32.mrf.mxu0  ;;  %v7793_v36 = vpack.c.b16 %v3959_v35, %v3958_v23  ;;  %v3651_v53 = vpack.c.bf16 %v3539_v31, %v3539_v31 }
 0x3cc   :  { %v2847_v46 = vadd.f32 %v7753_v28, %v2846_v19  ;;  %v3573_v37 = vmul.f32 0.01, %v3131_v2  ;;  %vm3557_vm7 = vcmp.gt.f32.partialorder %v3131_v2, 0.0  ;;  %v2672_v57 = vunpack.c.l.b16 %v2592_v59 }
 0x3cd   :  { %v3861_v26 = vunpack.c.l.b16 %v3651_v53  ;;  %v2622_v19 = vunpack.c.l.b16 %v2574_v1 }
 0x3ce   :  { %v2896_v27 = vadd.f32 %v7761_v22, %v2847_v46  ;;  %3430 = vmatmul.bf16.gmra.mxu0 %v2683_v21  ;;  %v2593_v22 = vpack.c.bf16 %v7684_v34, %v7684_v34  ;;  %v3589_v14 = vsel %vm3557_vm7, %v3131_v2, %v3573_v37  ;;  %v2575_v34 = vpack.c.bf16 %v7686_v15, %v7686_v15 }
 0x3cf   :  { %v3083_v13 = vpop.f32.mrf.mxu1  ;;  %v3669_v29 = vpack.c.bf16 %v3589_v14, %v3589_v14 }
 0x3d0   :  { %vm3508_vm8 = vcmp.gt.f32.partialorder %v2896_v27, 0.0  ;;  %v3524_v62 = vmul.f32 0.01, %v2896_v27  ;;  %v3084_v30 = vadd.f32 %v7735_v5, %v3083_v13  ;;  %3376 = vmatmul.bf16.gmra.mxu3 %v2634_v48  ;;  %v2673_v23 = vunpack.c.l.b16 %v2593_v22 }
 0x3d1   :  { %v3960_v46 = vunpack.c.l.b16 %v3669_v29  ;;  %v2623_v58 = vunpack.c.l.b16 %v2575_v34  ;;  %v2576_v34 = vpack.c.bf16 %v7691_v11, %v7691_v11 }
 0x3d2   :  { %v3133_v24 = vadd.f32 %v3132_v52, %v3084_v30  ;;  %v3540_v10 = vsel %vm3508_vm8, %v2896_v27, %v3524_v62  ;;  %v3140_v27 = vpop.f32.mrf.mxu2  ;;  %v2684_v13 = vpack.c.b16 %v2673_v23, %v2672_v57 }
 0x3d3   :  { %v2849_v45 = vpop.f32.mrf.mxu3  ;;  %v7805_v21 = vpop.f32.mrf.mxu0  ;;  %v3652_v47 = vpack.c.bf16 %v3540_v10, %v3540_v10  ;;  %v2635_v22 = vpack.c.b16 %v2623_v58, %v2622_v19 }
 0x3d4   :  { %vm3558_vm9 = vcmp.gt.f32.partialorder %v3133_v24, 0.0  ;;  %v3574_v54 = vmul.f32 0.01, %v3133_v24  ;;  %v2850_v17 = vadd.f32 %v7753_v28, %v2849_v45 }
 0x3d5   :  { %v3862_v33 = vunpack.c.l.b16 %v3652_v47  ;;  %v2595_v47 = vpack.c.bf16 %v7693_v51, %v7693_v51 }
 0x3d6   :  { %v2899_v52 = vadd.f32 %v7772_v49, %v2850_v17  ;;  %v3590_v35 = vsel %vm3558_vm9, %v3133_v24, %v3574_v54 }
 0x3d7   :  { %v3086_v9 = vpop.f32.mrf.mxu1  ;;  %v3670_v38 = vpack.c.bf16 %v3590_v35, %v3590_v35  ;;  %v7813_v61 = vpack.c.b16 %v3862_v33, %v3861_v26 }
 0x3d8   :  { %v3087_v2 = vadd.f32 %v7735_v5, %v3086_v9  ;;  %v3525_v48 = vmul.f32 0.01, %v2899_v52  ;;  %vm3509_vm10 = vcmp.gt.f32.partialorder %v2899_v52, 0.0  ;;  %v2577_v9 = vpack.c.bf16 %v7696_v12, %v7696_v12 }
 0x3d9   :  { %v3961_v37 = vunpack.c.l.b16 %v3670_v38 }
 0x3da   :  { %v3136_v31 = vadd.f32 %v3135_v4, %v3087_v2  ;;  %3479 = vmatmul.bf16.gmra.mxu1 %v7622_v20  ;;  %v3541_v24 = vsel %vm3509_vm10, %v2899_v52, %v3525_v48  ;;  %v2594_v20 = vpack.c.bf16 %v7688_v6, %v7688_v6  ;;  %v7830_v33 = vpop.f32.mrf.mxu2  ;;  %v2624_v48 = vunpack.c.l.b16 %v2576_v34 }
 0x3db   :  { %v2851_v15 = vpop.f32.mrf.mxu3  ;;  %v7817_v49 = vpop.f32.mrf.mxu0  ;;  %v7819_v59 = vpack.c.b16 %v3961_v37, %v3960_v46  ;;  %v3653_v45 = vpack.c.bf16 %v3541_v24, %v3541_v24  ;;  %v2625_v11 = vunpack.c.l.b16 %v2577_v9  ;;  %v2578_v34 = vpack.c.bf16 %v7700_v50, %v7700_v50 }
 0x3dc   :  { %v2852_v62 = vadd.f32 %v7753_v28, %v2851_v15  ;;  %v3575_v30 = vmul.f32 0.01, %v3136_v31  ;;  %vm3559_vm11 = vcmp.gt.f32.partialorder %v3136_v31, 0.0  ;;  %v2674_v26 = vunpack.c.l.b16 %v2594_v20 }
 0x3dd   :  { %v3863_v35 = vunpack.c.l.b16 %v3653_v45  ;;  %v2636_v20 = vpack.c.b16 %v2625_v11, %v2624_v48  ;;  %v2580_v11 = vpack.c.bf16 %v7710_v40, %v7710_v40  ;;  %v2582_v40 = vpack.c.bf16 %v7721_v60, %v7721_v60 }
 0x3de   :  { %v2901_v53 = vadd.f32 %v7778_v3, %v2852_v62  ;;  %3435 = vmatmul.bf16.gmra.mxu0 %v2684_v13  ;;  %v3591_v54 = vsel %vm3559_vm11, %v3136_v31, %v3575_v30 }
 0x3df   :  { %v3088_v14 = vpop.f32.mrf.mxu1  ;;  %v3671_v52 = vpack.c.bf16 %v3591_v54, %v3591_v54 }
 0x3e0   :  { %vm3510_vm12 = vcmp.gt.f32.partialorder %v2901_v53, 0.0  ;;  %v3526_v4 = vmul.f32 0.01, %v2901_v53  ;;  %v3089_v10 = vadd.f32 %v7735_v5, %v3088_v14  ;;  %3381 = vmatmul.bf16.gmra.mxu3 %v2635_v22 }
 0x3e1   :  { %v3962_v31 = vunpack.c.l.b16 %v3671_v52 }
 0x3e2   :  { %v3138_v57 = vadd.f32 %v3137_v41, %v3089_v10  ;;  %v3542_v3 = vsel %vm3510_vm12, %v2901_v53, %v3526_v4  ;;  %v2675_v41 = vunpack.c.l.b16 %v2595_v47  ;;  %v7849_v24 = vpop.f32.mrf.mxu2  ;;  %v2596_v10 = vpack.c.bf16 %v7698_v56, %v7698_v56 }
 0x3e3   :  { %v2854_v17 = vpop.f32.mrf.mxu3  ;;  %v7828_v1 = vpop.f32.mrf.mxu0  ;;  %v3654_v29 = vpack.c.bf16 %v3542_v3, %v3542_v3  ;;  %v2597_v47 = vpack.c.bf16 %v7702_v16, %v7702_v16  ;;  %v2579_v56 = vpack.c.bf16 %v7705_v32, %v7705_v32  ;;  %v2598_v32 = vpack.c.bf16 %v7707_v0, %v7707_v0 }
 0x3e4   :  { %vm3560_vm13 = vcmp.gt.f32.partialorder %v3138_v57, 0.0  ;;  %v3576_v6 = vmul.f32 0.01, %v3138_v57  ;;  %v2855_v23 = vadd.f32 %v7753_v28, %v2854_v17  ;;  %v2685_v30 = vpack.c.b16 %v2675_v41, %v2674_v26 }
 0x3e5   :  { %v3864_v51 = vunpack.c.l.b16 %v3654_v29  ;;  %v2676_v29 = vunpack.c.l.b16 %v2596_v10  ;;  %v2626_v41 = vunpack.c.l.b16 %v2578_v34  ;;  %v2627_v9 = vunpack.c.l.b16 %v2579_v56 }
 0x3e6   :  { %v2904_v38 = vadd.f32 %v7791_v63, %v2855_v23  ;;  %v3592_v2 = vsel %vm3560_vm13, %v3138_v57, %v3576_v6  ;;  %v2677_v23 = vunpack.c.l.b16 %v2597_v47 }
 0x3e7   :  { %v3091_v19 = vpop.f32.mrf.mxu1  ;;  %v3672_v46 = vpack.c.bf16 %v3592_v2, %v3592_v2  ;;  %v7838_v37 = vpack.c.b16 %v3864_v51, %v3863_v35  ;;  %v2637_v50 = vpack.c.b16 %v2627_v9, %v2626_v41 }
 0x3e8   :  { %v3092_v58 = vadd.f32 %v7735_v5, %v3091_v19  ;;  %v3527_v15 = vmul.f32 0.01, %v2904_v38  ;;  %vm3511_vm14 = vcmp.gt.f32.partialorder %v2904_v38, 0.0 }
 0x3e9   :  { %v3963_v13 = vunpack.c.l.b16 %v3672_v46 }
 0x3ea   :  { %v7841_v62 = vadd.f32 %v3140_v27, %v3092_v58  ;;  %3484 = vmatmul.bf16.gmra.mxu1 %v7615_v55  ;;  %v3543_v4 = vsel %vm3511_vm14, %v2904_v38, %v3527_v15  ;;  %v3147_v51 = vpop.f32.mrf.mxu2  ;;  %v2686_v38 = vpack.c.b16 %v2677_v23, %v2676_v29  ;;  %v2581_v15 = vpack.c.bf16 %v7714_v44, %v7714_v44 }
 0x3eb   :  { %v2856_v12 = vpop.f32.mrf.mxu3  ;;  %v7844_v63 = vpop.f32.mrf.mxu0  ;;  %v7846_v53 = vpack.c.b16 %v3963_v13, %v3962_v31  ;;  %v3655_v45 = vpack.c.bf16 %v3543_v4, %v3543_v4  ;;  %v2583_v44 = vpack.c.bf16 %v7723_v8, %v7723_v8 }
 0x3ec   :  { %v2857_v22 = vadd.f32 %v7753_v28, %v2856_v12  ;;  %v2628_v12 = vunpack.c.l.b16 %v2580_v11  ;;  %vm3561_vm2 = vcmp.gt.f32.partialorder %v7841_v62, 0.0 }
 0x3ed   :  { %v3865_v26 = vunpack.c.l.b16 %v3655_v45 }
 0x3ee   :  { %v2906_v14 = vadd.f32 %v7805_v21, %v2857_v22  ;;  %3440 = vmatmul.bf16.gmra.mxu0 %v2685_v30  ;;  %v2629_v22 = vunpack.c.l.b16 %v2581_v15 }
 0x3ef   :  { %v7852_v27 = vpop.f32.mrf.mxu1 }
 0x3f0   :  { %vm3512_vm15 = vcmp.gt.f32.partialorder %v2906_v14, 0.0  ;;  %v3528_v55 = vmul.f32 0.01, %v2906_v14  ;;  %3386 = vmatmul.bf16.gmra.mxu3 %v2636_v20  ;;  %v2638_v4 = vpack.c.b16 %v2629_v22, %v2628_v12  ;;  %v3094_v29 = vadd.f32 %v7735_v5, %v7852_v27 }
 0x3f2   :  { %v3544_v57 = vsel %vm3512_vm15, %v2906_v14, %v3528_v55  ;;  %v3150_v58 = vpop.f32.mrf.mxu2  ;;  %v3143_v41 = vadd.f32 %v7830_v33, %v3094_v29 }
 0x3f3   :  { %v2859_v54 = vpop.f32.mrf.mxu3  ;;  %v7858_v3 = vpop.f32.mrf.mxu0  ;;  %v3656_v21 = vpack.c.bf16 %v3544_v57, %v3544_v57 }
 0x3f4   :  { %v2860_v17 = vadd.f32 %v7753_v28, %v2859_v54  ;;  %vm3562_vm6 = vcmp.gt.f32.partialorder %v3143_v41, 0.0 }
 0x3f5   :  { %v3866_v6 = vunpack.c.l.b16 %v3656_v21  ;;  %v2630_v21 = vunpack.c.l.b16 %v2582_v40 }
 0x3f6   :  { %v7866_v52 = vadd.f32 %v7817_v49, %v2860_v17  ;;  %v2599_v49 = vpack.c.bf16 %v7712_v43, %v7712_v43  ;;  %v2631_v17 = vunpack.c.l.b16 %v2583_v44 }
 0x3f7   :  { %v3096_v16 = vpop.f32.mrf.mxu1  ;;  %v7868_v35 = vpack.c.b16 %v3866_v6, %v3865_v26 }
 0x3f8   :  { %v2679_v13 = vunpack.c.l.b16 %v2599_v49  ;;  %v3097_v56 = vadd.f32 %v7735_v5, %v3096_v16  ;;  %vm3513_vm15 = vcmp.gt.f32.partialorder %v7866_v52, 0.0 }
 0x3fa   :  { %3489 = vmatmul.bf16.gmra.mxu1 %v7607_v18  ;;  %v2678_v18 = vunpack.c.l.b16 %v2598_v32  ;;  %v3152_v20 = vpop.f32.mrf.mxu2  ;;  %v3146_v16 = vadd.f32 %v7849_v24, %v3097_v56 }
 0x3fb   :  { %v7871_v2 = vpop.f32.mrf.mxu3  ;;  %v7873_v19 = vpop.f32.mrf.mxu0 }
 0x3fc   :  { %v2687_v0 = vpack.c.b16 %v2679_v13, %v2678_v18  ;;  %v3577_v18 = vmul.f32 0.01, %v7841_v62  ;;  %v3578_v13 = vmul.f32 0.01, %v3143_v41  ;;  %vm3563_vm7 = vcmp.gt.f32.partialorder %v3146_v16, 0.0 }
 0x3fd   :  { %v3579_v24 = vmul.f32 0.01, %v3146_v16 }
 0x3fe   :  { %3445 = vmatmul.bf16.gmra.mxu0 %v2686_v38  ;;  %v3593_v29 = vsel %vm3561_vm2, %v7841_v62, %v3577_v18 }
 0x3ff   :  { %v3098_v46 = vpop.f32.mrf.mxu1 }
 0x400   :  { %3391 = vmatmul.bf16.gmra.mxu3 %v2637_v50  ;;  %v3099_v60 = vadd.f32 %v7735_v5, %v3098_v46  ;;  %v2639_v50 = vpack.c.b16 %v2631_v17, %v2630_v21 }
 0x402   :  { %v3155_v47 = vpop.f32.mrf.mxu2  ;;  %v3148_v32 = vadd.f32 %v3147_v51, %v3099_v60  ;;  %v3595_v60 = vsel %vm3563_vm7, %v3146_v16, %v3579_v24 }
 0x403   :  { %v7879_v48 = vpop.f32.mrf.mxu3  ;;  %v7881_v31 = vpop.f32.mrf.mxu0 }
 0x404   :  { %vm3564_vm3 = vcmp.gt.f32.partialorder %v3148_v32, 0.0  ;;  %v3580_v51 = vmul.f32 0.01, %v3148_v32 }
 0x406   :  { %v3596_v21 = vsel %vm3564_vm3, %v3148_v32, %v3580_v51 }
 0x407   :  { %v3101_v30 = vpop.f32.mrf.mxu1  ;;  %v3676_v56 = vpack.c.bf16 %v3596_v21, %v3596_v21 }
 0x408   :  { %v3102_v26 = vadd.f32 %v7735_v5, %v3101_v30 }
 0x40a   :  { %3494 = vmatmul.bf16.gmra.mxu1 %v7595_v42  ;;  %v3151_v9 = vadd.f32 %v3150_v58, %v3102_v26  ;;  %v3157_v46 = vpop.f32.mrf.mxu2  ;;  %v3594_v26 = vsel %vm3562_vm6, %v3143_v41, %v3578_v13 }
 0x40b   :  { %v7888_v43 = vpop.f32.mrf.mxu3  ;;  %v2923_v14 = vpop.f32.mrf.mxu0 }
 0x40c   :  { %v3581_v33 = vmul.f32 0.01, %v3151_v9  ;;  %vm3565_vm4 = vcmp.gt.f32.partialorder %v3151_v9, 0.0 }
 0x40e   :  { %3450 = vmatmul.bf16.gmra.mxu0 %v2687_v0  ;;  %v3597_v44 = vsel %vm3565_vm4, %v3151_v9, %v3581_v33 }
 0x40f   :  { %v3103_v55 = vpop.f32.mrf.mxu1 }
 0x410   :  { %3396 = vmatmul.bf16.gmra.mxu3 %v2638_v4  ;;  %v3104_v42 = vadd.f32 %v7735_v5, %v3103_v55 }
 0x412   :  { %v3153_v23 = vadd.f32 %v3152_v20, %v3104_v42 }
 0x413   :  { %v2869_v10 = vpop.f32.mrf.mxu3  ;;  %v7890_v45 = vpop.f32.mrf.mxu0 }
 0x414   :  { %v3582_v27 = vmul.f32 0.01, %v3153_v23  ;;  %vm3566_vm1 = vcmp.gt.f32.partialorder %v3153_v23, 0.0  ;;  %v2870_v4 = vadd.f32 %v7753_v28, %v2869_v10 }
 0x417   :  { %v3106_v57 = vpop.f32.mrf.mxu1 }
 0x418   :  { %v3107_v54 = vadd.f32 %v7735_v5, %v3106_v57 }
 0x41a   :  { %v3156_v6 = vadd.f32 %v3155_v47, %v3107_v54  ;;  %3499 = vmatmul.bf16.gmra.mxu1 %v7581_v25  ;;  %v2867_v47 = vadd.f32 %v7753_v28, %v7888_v43  ;;  %v2865_v43 = vadd.f32 %v7753_v28, %v7879_v48  ;;  %v3673_v48 = vpack.c.bf16 %v3593_v29, %v3593_v29 }
 0x41b   :  { %v2871_v8 = vpop.f32.mrf.mxu3  ;;  %v7903_v34 = vpop.f32.mrf.mxu0  ;;  %v3529_v29 = vmul.f32 0.01, %v7866_v52 }
 0x41c   :  { %v3583_v38 = vmul.f32 0.01, %v3156_v6  ;;  %vm3567_vm0 = vcmp.gt.f32.partialorder %v3156_v6, 0.0  ;;  %v2872_v12 = vadd.f32 %v7753_v28, %v2871_v8  ;;  %v2916_v9 = vadd.f32 %v7858_v3, %v2867_v47 }
 0x41d   :  { %v3674_v3 = vpack.c.bf16 %v3594_v26, %v3594_v26 }
 0x41e   :  { %v3599_v58 = vsel %vm3567_vm0, %v3156_v6, %v3583_v38  ;;  %v2921_v17 = vadd.f32 %v7881_v31, %v2872_v12  ;;  %v3532_v13 = vmul.f32 0.01, %v2916_v9  ;;  %vm3516_vm12 = vcmp.gt.f32.partialorder %v2916_v9, 0.0 }
 0x41f   :  { %v3108_v49 = vpop.f32.mrf.mxu1  ;;  %v3679_v20 = vpack.c.bf16 %v3599_v58, %v3599_v58 }
 0x420   :  { %v3109_v25 = vadd.f32 %v7735_v5, %v3108_v49  ;;  %3401 = vmatmul.bf16.gmra.mxu3 %v2639_v50  ;;  %v3598_v5 = vsel %vm3566_vm1, %v3153_v23, %v3582_v27  ;;  %v2919_v23 = vadd.f32 %v7873_v19, %v2870_v4  ;;  %v2862_v50 = vadd.f32 %v7753_v28, %v7871_v2 }
 0x421   :  { %v3678_v54 = vpack.c.bf16 %v3598_v5, %v3598_v5  ;;  %v3970_v10 = vunpack.c.l.b16 %v3679_v20  ;;  %v3534_v32 = vmul.f32 0.01, %v2921_v17  ;;  %vm3518_vm9 = vcmp.gt.f32.partialorder %v2921_v17, 0.0 }
 0x422   :  { %v3158_v11 = vadd.f32 %v3157_v46, %v3109_v25  ;;  %v3675_v49 = vpack.c.bf16 %v3595_v60, %v3595_v60  ;;  %v2914_v25 = vadd.f32 %v7844_v63, %v2865_v43  ;;  %v3533_v46 = vmul.f32 0.01, %v2919_v23  ;;  %v7950_v63 = vld [vmem:[%s8369_s12 + $0x1] ss:$0 sm:$0xff] }
 0x423   :  { %v2874_v15 = vpop.f32.mrf.mxu3  ;;  %v7911_v30 = vpop.f32.mrf.mxu0  ;;  %v3969_v62 = vunpack.c.l.b16 %v3678_v54  ;;  %vm3517_vm10 = vcmp.gt.f32.partialorder %v2919_v23, 0.0  ;;  %v2911_v58 = vadd.f32 %v7828_v1, %v2862_v50  ;;  %v3550_v51 = vsel %vm3518_vm9, %v2921_v17, %v3534_v32 }
 0x424   :  { %vm3568_vm5 = vcmp.gt.f32.partialorder %v3158_v11, 0.0  ;;  %v3584_v22 = vmul.f32 0.01, %v3158_v11  ;;  %v2875_v0 = vadd.f32 %v7753_v28, %v2874_v15  ;;  %v3966_v15 = vunpack.c.l.b16 %v3675_v49 }
 0x425   :  { %v3531_v5 = vmul.f32 0.01, %v2914_v25  ;;  %vm3515_vm13 = vcmp.gt.f32.partialorder %v2914_v25, 0.0  ;;  %v3662_v4 = vpack.c.bf16 %v3550_v51, %v3550_v51  ;;  %v3548_v47 = vsel %vm3516_vm12, %v2916_v9, %v3532_v13 }
 0x426   :  { %v3600_v55 = vsel %vm3568_vm5, %v3158_v11, %v3584_v22  ;;  %v2924_v40 = vadd.f32 %v2923_v14, %v2875_v0  ;;  %v3677_v14 = vpack.c.bf16 %v3597_v44, %v3597_v44  ;;  %v3965_v22 = vunpack.c.l.b16 %v3674_v3 }
 0x427   :  { %v3680_v42 = vpack.c.bf16 %v3600_v55, %v3600_v55  ;;  %v7919_v57 = vpop.f32.mrf.mxu1  ;;  %v3549_v0 = vsel %vm3517_vm10, %v2919_v23, %v3533_v46  ;;  %v3530_v55 = vmul.f32 0.01, %v2911_v58  ;;  %v3964_v44 = vunpack.c.l.b16 %v3673_v48 }
 0x428   :  { %v3535_v8 = vmul.f32 0.01, %v2924_v40  ;;  %vm3519_vm8 = vcmp.gt.f32.partialorder %v2924_v40, 0.0  ;;  %v3968_v19 = vunpack.c.l.b16 %v3677_v14  ;;  %vm3514_vm14 = vcmp.gt.f32.partialorder %v2911_v58, 0.0 }
 0x429   :  { %v3971_v6 = vunpack.c.l.b16 %v3680_v42  ;;  %v3661_v17 = vpack.c.bf16 %v3549_v0, %v3549_v0  ;;  %v7968_v60 = vpack.c.b16 %v3965_v22, %v3964_v44  ;;  %v3872_v43 = vunpack.c.l.b16 %v3662_v4 }
 0x42a   :  { %v3551_v18 = vsel %vm3519_vm8, %v2924_v40, %v3535_v8  ;;  %v7944_v33 = vpack.c.b16 %v3969_v62, %v3968_v19  ;;  %v3660_v23 = vpack.c.bf16 %v3548_v47, %v3548_v47 }
 0x42b   :  { %v2876_v31 = vpop.f32.mrf.mxu3  ;;  %v7931_v38 = vpack.c.b16 %v3971_v6, %v3970_v10  ;;  %v7933_v41 = vpop.f32.mrf.mxu0  ;;  %v3547_v10 = vsel %vm3515_vm13, %v2914_v25, %v3531_v5  ;;  %v3871_v9 = vunpack.c.l.b16 %v3661_v17 }
 0x42c   :  { %v2877_v27 = vadd.f32 %v7753_v28, %v2876_v31  ;;  %v3967_v28 = vunpack.c.l.b16 %v3676_v56  ;;  %v3546_v56 = vsel %vm3514_vm14, %v2911_v58, %v3530_v55  ;;  %v3545_v31 = vsel %vm3513_vm15, %v7866_v52, %v3529_v29  ;;  %v6570_v55 = vld [vmem:[#allocation13 + $0x8] sm:$0xff] }
 0x42d   :  { %3988 = vmatpush.bf16.msrb.mxu1 %v7931_v38  ;;  %v7979_v50 = vpack.c.b16 %v3872_v43, %v3871_v9  ;;  %v3870_v32 = vunpack.c.l.b16 %v3660_v23  ;;  %v3657_v48 = vpack.c.bf16 %v3545_v31, %v3545_v31  ;;  %v6572_v43 = vld [vmem:[#allocation13 + $0x10] sm:$0xff] }
 0x42e   :  { %v2926_v16 = vadd.f32 %v7890_v45, %v2877_v27  ;;  %v3663_v45 = vpack.c.bf16 %v3551_v18, %v3551_v18  ;;  %v7955_v20 = vpack.c.b16 %v3967_v28, %v3966_v15  ;;  %v3658_v27 = vpack.c.bf16 %v3546_v56, %v3546_v56 }
 0x42f   :  { %v7942_v2 = vpop.f32.mrf.mxu1  ;;  %8386 = vst [vmem:[#allocation32_spill] sm:$0xff] %v7979_v50  ;;  %v3867_v52 = vunpack.c.l.b16 %v3657_v48 }
 0x430   :  { %vm3520_vm11 = vcmp.gt.f32.partialorder %v2926_v16, 0.0  ;;  %v3536_v11 = vmul.f32 0.01, %v2926_v16  ;;  %v3873_v42 = vunpack.c.l.b16 %v3663_v45  ;;  %v3868_v25 = vunpack.c.l.b16 %v3658_v27  ;;  %v6568_v45 = vld [vmem:[#allocation13] sm:$0xff]  ;;  %v6573_v27 = vld [vmem:[#allocation11 + $0x10] sm:$0xff] }
 0x431   :  { %3989 = vmatpush.bf16.msrb.mxu1 %v7944_v33 }
 0x432   :  { %v3552_v12 = vsel %vm3520_vm11, %v2926_v16, %v3536_v11  ;;  %v7989_v18 = vpack.c.b16 %v3868_v25, %v3867_v52 }
 0x433   :  { %v3664_v1 = vpack.c.bf16 %v3552_v12, %v3552_v12  ;;  %v3367_v24 = vpop.f32.mrf.mxu3  ;;  %v7960_v21 = vpop.f32.mrf.mxu0 }
 0x434   :  { %v3368_v40 = vadd.f32 %v7950_v63, %v3367_v24  ;;  %v6569_v24 = vld [vmem:[#allocation11] sm:$0xff] }
 0x435   :  { %v3874_v54 = vunpack.c.l.b16 %v3664_v1  ;;  %3990 = vmatpush.bf16.msrb.mxu1 %v7955_v20 }
 0x436   :  { %v3417_v26 = vadd.f32 %v7903_v34, %v3368_v40  ;;  %v3659_v34 = vpack.c.bf16 %v3547_v10, %v3547_v10 }
 0x437   :  { %v3470_v6 = vpop.f32.mrf.mxu1  ;;  %v7966_v14 = vpack.c.b16 %v3874_v54, %v3873_v42 }
 0x438   :  { %v7971_v8 = vadd.f32 %v7919_v57, %v3417_v26  ;;  %v3869_v57 = vunpack.c.l.b16 %v3659_v34  ;;  %v6571_v26 = vld [vmem:[#allocation11 + $0x8] sm:$0xff] }
 0x439   :  { %8385 = vst [vmem:[#allocation33_spill] sm:$0xff] %v7966_v14  ;;  %3891 = vmatpush.bf16.msra.mxu0 %v7966_v14  ;;  %3991 = vmatpush.bf16.msrb.mxu1 %v7968_v60 }
 0x43a   :  { %v7985_v49 = vpack.c.b16 %v3870_v32, %v3869_v57  ;;  %vm3601_vm15 = vcmp.gt.f32.partialorder %v7971_v8, 0.0 }
 0x43b   :  { %v7977_v62 = vpop.f32.mrf.mxu3  ;;  %v3426_v3 = vpop.f32.mrf.mxu0 }
 0x43c   :  { %8387 = vst [vmem:[#allocation31_spill] sm:$0xff] %v7985_v49 }
 0x43d   :  { %3892 = vmatpush.bf16.msra.mxu0 %v7979_v50  ;;  %3992 = vmatpush.bf16.msrb.mxu1 %v7846_v53 }
 0x43f   :  { %v7983_v19 = vpop.f32.mrf.mxu1 }
 0x441   :  { %3893 = vmatpush.bf16.msra.mxu0 %v7985_v49  ;;  %3993 = vmatpush.bf16.msrb.mxu1 %v7819_v59 }
 0x443   :  { %v3372_v46 = vpop.f32.mrf.mxu3  ;;  %v7999_v11 = vpop.f32.mrf.mxu0 }
 0x444   :  { %v3373_v16 = vadd.f32 %v7950_v63, %v3372_v46 }
 0x445   :  { %3894 = vmatpush.bf16.msra.mxu0 %v7989_v18  ;;  %3994 = vmatpush.bf16.msrb.mxu1 %v7793_v36 }
 0x446   :  { %v3422_v13 = vadd.f32 %v7933_v41, %v3373_v16 }
 0x447   :  { %v3475_v28 = vpop.f32.mrf.mxu1 }
 0x448   :  { %v7995_v58 = vadd.f32 %v3470_v6, %v3422_v13  ;;  %v6575_v13 = vld [vmem:[#allocation11 + $0x18] sm:$0xff] }
 0x449   :  { %3895 = vmatpush.bf16.msra.mxu0 %v7868_v35  ;;  %3995 = vmatpush.bf16.msrb.mxu1 %v7774_v39 }
 0x44a   :  { %vm3603_vm13 = vcmp.gt.f32.partialorder %v7995_v58, 0.0 }
 0x44b   :  { %v8001_v51 = vpop.f32.mrf.mxu3  ;;  %v3431_v5 = vpop.f32.mrf.mxu0 }
 0x44c   :  { %3996 = vmatmul.bf16.vlgmr.msrb.gmra.mxu1 %v6568_v45  ;;  %v6454_v45 = vld [vmem:[#allocation16 + $0x178] sm:$0xff] }
 0x44d   :  { %3896 = vmatpush.bf16.msra.mxu0 %v7838_v37  ;;  %4708 = vmatpush.bf16.msra.mxu1 %v6454_v45 }
 0x44f   :  { %v8004_v15 = vpop.f32.mrf.mxu1 }
 0x451   :  { %3897 = vmatpush.bf16.msra.mxu0 %v7813_v61 }
 0x453   :  { %v3377_v41 = vpop.f32.mrf.mxu3  ;;  %v8013_v40 = vpop.f32.mrf.mxu0 }
 0x454   :  { %v3378_v12 = vadd.f32 %v7950_v63, %v3377_v41  ;;  %v6576_v41 = vld [vmem:[#allocation13 + $0x20] sm:$0xff] }
 0x455   :  { %3898 = vmatpush.bf16.msra.mxu0 %v7786_v7 }
 0x456   :  { %v3427_v22 = vadd.f32 %v3426_v3, %v3378_v12  ;;  %v6574_v3 = vld [vmem:[#allocation13 + $0x18] sm:$0xff]  ;;  %v6453_v12 = vld [vmem:[#allocation16 + $0x170] sm:$0xff] }
 0x457   :  { %v3480_v0 = vpop.f32.mrf.mxu1  ;;  %4709 = vmatpush.bf16.msra.mxu1 %v6453_v12 }
 0x458   :  { %v8009_v1 = vadd.f32 %v3475_v28, %v3427_v22  ;;  %3899 = vmatmul.bf16.vlgmr.msra.gmra.mxu0 %v6569_v24 }
 0x45a   :  { %vm3605_vm11 = vcmp.gt.f32.partialorder %v8009_v1, 0.0 }
 0x45b   :  { %v8011_v4 = vpop.f32.mrf.mxu3  ;;  %v3436_v17 = vpop.f32.mrf.mxu0 }
 0x45c   :  { %4001 = vmatmul.bf16.gmra.mxu1 %v6570_v55  ;;  %v6451_v55 = vld [vmem:[#allocation16 + $0x160] sm:$0xff] }
 0x45f   :  { %v8015_v44 = vpop.f32.mrf.mxu1 }
 0x463   :  { %v3382_v47 = vpop.f32.mrf.mxu3  ;;  %v8022_v23 = vpop.f32.mrf.mxu0 }
 0x464   :  { %v3383_v42 = vadd.f32 %v7950_v63, %v3382_v47  ;;  %v6577_v47 = vld [vmem:[#allocation11 + $0x20] sm:$0xff] }
 0x466   :  { %v3432_v54 = vadd.f32 %v3431_v5, %v3383_v42 }
 0x467   :  { %v3485_v10 = vpop.f32.mrf.mxu1 }
 0x468   :  { %v8018_v29 = vadd.f32 %v3480_v0, %v3432_v54  ;;  %3904 = vmatmul.bf16.gmra.mxu0 %v6571_v26  ;;  %v6452_v0 = vld [vmem:[#allocation16 + $0x168] sm:$0xff]  ;;  %v6450_v26 = vld [vmem:[#allocation16 + $0x158] sm:$0xff] }
 0x469   :  { %4710 = vmatpush.bf16.msra.mxu1 %v6452_v0 }
 0x46a   :  { %vm3607_vm9 = vcmp.gt.f32.partialorder %v8018_v29, 0.0 }
 0x46b   :  { %v8020_v6 = vpop.f32.mrf.mxu3  ;;  %v3441_v57 = vpop.f32.mrf.mxu0 }
 0x46c   :  { %4006 = vmatmul.bf16.gmra.mxu1 %v6572_v43  ;;  %v6449_v43 = vld [vmem:[#allocation16 + $0x150] sm:$0xff] }
 0x46d   :  { %4711 = vmatpush.bf16.msra.mxu1 %v6451_v55  ;;  %v6447_v55 = vld [vmem:[#allocation16 + $0x140] sm:$0xff] }
 0x46f   :  { %v8024_v56 = vpop.f32.mrf.mxu1 }
 0x471   :  { %4712 = vmatpush.bf16.msra.mxu1 %v6450_v26 }
 0x473   :  { %v3387_v9 = vpop.f32.mrf.mxu3  ;;  %v3443_v46 = vpop.f32.mrf.mxu0 }
 0x474   :  { %v3388_v34 = vadd.f32 %v7950_v63, %v3387_v9 }
 0x475   :  { %4713 = vmatpush.bf16.msra.mxu1 %v6449_v43  ;;  %v6579_v43 = vld [vmem:[#allocation11 + $0x28] sm:$0xff] }
 0x476   :  { %v3437_v31 = vadd.f32 %v3436_v17, %v3388_v34 }
 0x477   :  { %v8029_v25 = vpop.f32.mrf.mxu1 }
 0x478   :  { %v8027_v32 = vadd.f32 %v3485_v10, %v3437_v31  ;;  %3909 = vmatmul.bf16.gmra.mxu0 %v6573_v27  ;;  %v6578_v10 = vld [vmem:[#allocation13 + $0x28] sm:$0xff] }
 0x479   :  { %v6448_v27 = vld [vmem:[#allocation16 + $0x148] sm:$0xff] }
 0x47a   :  { %4714 = vmatpush.bf16.msra.mxu1 %v6448_v27  ;;  %vm3609_vm7 = vcmp.gt.f32.partialorder %v8027_v32, 0.0 }
 0x47b   :  { %v3389_v48 = vpop.f32.mrf.mxu3  ;;  %v3446_v5 = vpop.f32.mrf.mxu0 }
 0x47c   :  { %4011 = vmatmul.bf16.gmra.mxu1 %v6574_v3 }
 0x47e   :  { %4715 = vmatpush.bf16.msra.mxu1 %v6447_v55  ;;  %v3375_v55 = vadd.f32 %v7950_v63, %v8001_v51  ;;  %v6581_v51 = vld [vmem:[#allocation11 + $0x30] sm:$0xff] }
 0x47f   :  { %v3492_v16 = vpop.f32.mrf.mxu1 }
 0x483   :  { %v3392_v52 = vpop.f32.mrf.mxu3  ;;  %v3448_v42 = vpop.f32.mrf.mxu0 }
 0x487   :  { %v3495_v22 = vpop.f32.mrf.mxu1 }
 0x488   :  { %3914 = vmatmul.bf16.gmra.mxu0 %v6575_v13 }
 0x48b   :  { %v3394_v28 = vpop.f32.mrf.mxu3  ;;  %v3451_v34 = vpop.f32.mrf.mxu0 }
 0x48c   :  { %4016 = vmatmul.bf16.gmra.mxu1 %v6576_v41  ;;  %v3395_v41 = vadd.f32 %v7950_v63, %v3394_v28 }
 0x48e   :  { %v3444_v14 = vadd.f32 %v3443_v46, %v3395_v41 }
 0x48f   :  { %v3497_v54 = vpop.f32.mrf.mxu1 }
 0x493   :  { %v3397_v24 = vpop.f32.mrf.mxu3 }
 0x494   :  { %v3398_v3 = vadd.f32 %v7950_v63, %v3397_v24 }
 0x496   :  { %v3447_v26 = vadd.f32 %v3446_v5, %v3398_v3 }
 0x497   :  { %v3500_v45 = vpop.f32.mrf.mxu1 }
 0x498   :  { %3919 = vmatmul.bf16.gmra.mxu0 %v6577_v47  ;;  %v3393_v47 = vadd.f32 %v7950_v63, %v3392_v52  ;;  %v3496_v49 = vadd.f32 %v3495_v22, %v3447_v26  ;;  %v3385_v52 = vadd.f32 %v7950_v63, %v8020_v6 }
 0x49a   :  { %v3629_v22 = vmul.f32 0.01, %v3496_v49  ;;  %vm3613_vm2 = vcmp.gt.f32.partialorder %v3496_v49, 0.0 }
 0x49b   :  { %v3399_v17 = vpop.f32.mrf.mxu3 }
 0x49c   :  { %4021 = vmatmul.bf16.gmra.mxu1 %v6578_v10  ;;  %v3400_v9 = vadd.f32 %v7950_v63, %v3399_v17  ;;  %v3390_v17 = vadd.f32 %v7950_v63, %v3389_v48 }
 0x49e   :  { %v3449_v12 = vadd.f32 %v3448_v42, %v3400_v9  ;;  %v6580_v42 = vld [vmem:[#allocation13 + $0x30] sm:$0xff]  ;;  %v3439_v5 = vadd.f32 %v8022_v23, %v3390_v17  ;;  %v3453_v9 = vpop.f32.mrf.mxu0 }
 0x49f   :  { %v3502_v46 = vpop.f32.mrf.mxu1 }
 0x4a0   :  { %v3498_v24 = vadd.f32 %v3497_v54, %v3449_v12  ;;  %v3488_v6 = vadd.f32 %v8024_v56, %v3439_v5 }
 0x4a2   :  { %v3630_v48 = vmul.f32 0.01, %v3498_v24  ;;  %vm3614_vm1 = vcmp.gt.f32.partialorder %v3498_v24, 0.0  ;;  %v3626_v56 = vmul.f32 0.01, %v3488_v6  ;;  %vm3610_vm6 = vcmp.gt.f32.partialorder %v3488_v6, 0.0 }
 0x4a3   :  { %v3402_v31 = vpop.f32.mrf.mxu3 }
 0x4a4   :  { %v3403_v13 = vadd.f32 %v7950_v63, %v3402_v31  ;;  %v3442_v31 = vadd.f32 %v3441_v57, %v3393_v47 }
 0x4a6   :  { %v3452_v0 = vadd.f32 %v3451_v34, %v3403_v13  ;;  %v3493_v34 = vadd.f32 %v3492_v16, %v3444_v14  ;;  %v3491_v57 = vadd.f32 %v8029_v25, %v3442_v31  ;;  %v3646_v16 = vsel %vm3614_vm1, %v3498_v24, %v3630_v48  ;;  %v6582_v48 = vld [vmem:[#allocation13 + $0x38] sm:$0xff] }
 0x4a7   :  { %v3645_v25 = vsel %vm3613_vm2, %v3496_v49, %v3629_v22  ;;  %v3694_v26 = vpack.c.bf16 %v3646_v16, %v3646_v16  ;;  %v3370_v31 = vadd.f32 %v7950_v63, %v7977_v62  ;;  %v3625_v49 = vmul.f32 0.01, %v8027_v32 }
 0x4a8   :  { %v3501_v10 = vadd.f32 %v3500_v45, %v3452_v0  ;;  %3924 = vmatmul.bf16.gmra.mxu0 %v6579_v43  ;;  %v3434_v45 = vadd.f32 %v8013_v40, %v3385_v52  ;;  %v3628_v23 = vmul.f32 0.01, %v3493_v34  ;;  %vm3612_vm4 = vcmp.gt.f32.partialorder %v3493_v34, 0.0 }
 0x4a9   :  { %v3627_v12 = vmul.f32 0.01, %v3491_v57  ;;  %vm3611_vm5 = vcmp.gt.f32.partialorder %v3491_v57, 0.0  ;;  %v3693_v24 = vpack.c.bf16 %v3645_v25, %v3645_v25  ;;  %v3619_v25 = vmul.f32 0.01, %v7995_v58 }
 0x4aa   :  { %v3631_v27 = vmul.f32 0.01, %v3501_v10  ;;  %vm3615_vm0 = vcmp.gt.f32.partialorder %v3501_v10, 0.0  ;;  %v3483_v40 = vadd.f32 %v8015_v44, %v3434_v45  ;;  %v3424_v44 = vadd.f32 %v7960_v21, %v3375_v55 }
 0x4ab   :  { %v3404_v50 = vpop.f32.mrf.mxu3 }
 0x4ac   :  { %v3405_v28 = vadd.f32 %v7950_v63, %v3404_v50  ;;  %4026 = vmatmul.bf16.gmra.mxu1 %v6580_v42  ;;  %v3647_v54 = vsel %vm3615_vm0, %v3501_v10, %v3631_v27  ;;  %v3380_v50 = vadd.f32 %v7950_v63, %v8011_v4  ;;  %v3644_v10 = vsel %vm3612_vm4, %v3493_v34, %v3628_v23 }
 0x4ad   :  { %v3695_v41 = vpack.c.bf16 %v3647_v54, %v3647_v54  ;;  %v3643_v27 = vsel %vm3611_vm5, %v3491_v57, %v3627_v12  ;;  %v3726_v42 = vunpack.c.l.b16 %v3694_v26  ;;  %v3624_v5 = vmul.f32 0.01, %v3483_v40 }
 0x4ae   :  { %v3454_v3 = vadd.f32 %v3453_v9, %v3405_v28  ;;  %v3429_v4 = vadd.f32 %v7999_v11, %v3380_v50  ;;  %v3692_v11 = vpack.c.bf16 %v3644_v10, %v3644_v10  ;;  %v3642_v9 = vsel %vm3610_vm6, %v3488_v6, %v3626_v56 }
 0x4af   :  { %v3727_v43 = vunpack.c.l.b16 %v3695_v41  ;;  %v3725_v63 = vunpack.c.l.b16 %v3693_v24  ;;  %v3691_v62 = vpack.c.bf16 %v3643_v27, %v3643_v27  ;;  %vm3608_vm8 = vcmp.gt.f32.partialorder %v3483_v40, 0.0 }
 0x4b0   :  { %v3503_v13 = vadd.f32 %v3502_v46, %v3454_v3  ;;  %v3478_v52 = vadd.f32 %v8004_v15, %v3429_v4  ;;  %v3623_v34 = vmul.f32 0.01, %v8018_v29  ;;  %v3641_v3 = vsel %vm3609_vm7, %v8027_v32, %v3625_v49 }
 0x4b1   :  { %v8062_v46 = vpack.c.b16 %v3726_v42, %v3725_v63  ;;  %v3724_v21 = vunpack.c.l.b16 %v3692_v11  ;;  %v3690_v57 = vpack.c.bf16 %v3642_v9, %v3642_v9  ;;  %v3419_v15 = vadd.f32 %v7911_v30, %v3370_v31 }
 0x4b2   :  { %vm3616_vm3 = vcmp.gt.f32.partialorder %v3503_v13, 0.0  ;;  %v3632_v14 = vmul.f32 0.01, %v3503_v13  ;;  %v3473_v22 = vadd.f32 %v7983_v19, %v3424_v44  ;;  %v3622_v54 = vmul.f32 0.01, %v3478_v52 }
 0x4b3   :  { %v3723_v50 = vunpack.c.l.b16 %v3691_v62  ;;  %v3689_v45 = vpack.c.bf16 %v3641_v3, %v3641_v3  ;;  %vm3606_vm10 = vcmp.gt.f32.partialorder %v3478_v52, 0.0  ;;  %v3621_v32 = vmul.f32 0.01, %v8009_v1 }
 0x4b4   :  { %v3648_v0 = vsel %vm3616_vm3, %v3503_v13, %v3632_v14  ;;  %v3640_v13 = vsel %vm3608_vm8, %v3483_v40, %v3624_v5  ;;  %v3639_v6 = vsel %vm3607_vm9, %v8018_v29, %v3623_v34  ;;  %v3722_v14 = vunpack.c.l.b16 %v3690_v57 }
 0x4b5   :  { %v3696_v47 = vpack.c.bf16 %v3648_v0, %v3648_v0  ;;  %v8071_v23 = vpack.c.b16 %v3724_v21, %v3723_v50  ;;  %v3688_v16 = vpack.c.bf16 %v3640_v13, %v3640_v13  ;;  %v3468_v30 = vadd.f32 %v7942_v2, %v3419_v15  ;;  %v6585_v13 = vld [vmem:[#allocation10] sm:$0xff] }
 0x4b6   :  { %v3620_v19 = vmul.f32 0.01, %v3473_v22  ;;  %v3638_v41 = vsel %vm3606_vm10, %v3478_v52, %v3622_v54  ;;  %v3721_v12 = vunpack.c.l.b16 %v3689_v45  ;;  %v3687_v0 = vpack.c.bf16 %v3639_v6, %v3639_v6  ;;  %v6584_v54 = vld [vmem:[#allocation8] sm:$0xff]  ;;  %v6587_v6 = vld [vmem:[#allocation10 + $0x8] sm:$0xff] }
 0x4b7   :  { %v3728_v17 = vunpack.c.l.b16 %v3696_v47  ;;  %vm3604_vm12 = vcmp.gt.f32.partialorder %v3473_v22, 0.0  ;;  %v3637_v29 = vsel %vm3605_vm11, %v8009_v1, %v3621_v32  ;;  %v3720_v47 = vunpack.c.l.b16 %v3688_v16  ;;  %v6583_v1 = vld [vmem:[#allocation11 + $0x38] sm:$0xff]  ;;  %v6586_v32 = vld [vmem:[#allocation8 + $0x8] sm:$0xff] }
 0x4b8   :  { %3929 = vmatmul.bf16.gmra.mxu0 %v6581_v51  ;;  %v8079_v55 = vpack.c.b16 %v3722_v14, %v3721_v12  ;;  %v3686_v26 = vpack.c.bf16 %v3638_v41, %v3638_v41  ;;  %v3618_v2 = vmul.f32 0.01, %v3468_v30  ;;  %v3636_v4 = vsel %vm3604_vm12, %v3473_v22, %v3620_v19  ;;  %v6589_v19 = vld [vmem:[#allocation10 + $0x10] sm:$0xff]  ;;  %v6590_v12 = vld [vmem:[#allocation8 + $0x18] sm:$0xff] }
 0x4b9   :  { %v8053_v28 = vpack.c.b16 %v3728_v17, %v3727_v43  ;;  %v3719_v40 = vunpack.c.l.b16 %v3687_v0  ;;  %v3685_v56 = vpack.c.bf16 %v3637_v29, %v3637_v29  ;;  %vm3602_vm14 = vcmp.gt.f32.partialorder %v3468_v30, 0.0  ;;  %v6591_v0 = vld [vmem:[#allocation10 + $0x18] sm:$0xff] }
 0x4ba   :  { %v3617_v10 = vmul.f32 0.01, %v7971_v8  ;;  %v3635_v43 = vsel %vm3603_vm13, %v7995_v58, %v3619_v25  ;;  %v3718_v31 = vunpack.c.l.b16 %v3686_v26  ;;  %v3684_v49 = vpack.c.bf16 %v3636_v4, %v3636_v4  ;;  %v6438_v4 = vld [vmem:[#allocation14 + $0x178] sm:$0xff] }
 0x4bb   :  { %3745 = vmatpush.bf16.msra.mxu2 %v8053_v28  ;;  %3794 = vmatpush.bf16.msra.mxu3 %v8053_v28  ;;  %v8086_v24 = vpack.c.b16 %v3720_v47, %v3719_v40  ;;  %v3634_v27 = vsel %vm3602_vm14, %v3468_v30, %v3618_v2  ;;  %v3717_v51 = vunpack.c.l.b16 %v3685_v56  ;;  %v3683_v42 = vpack.c.bf16 %v3635_v43, %v3635_v43  ;;  %v6588_v30 = vld [vmem:[#allocation8 + $0x10] sm:$0xff]  ;;  %v6592_v40 = vld [vmem:[#allocation8 + $0x20] sm:$0xff] }
 0x4bc   :  { %4031 = vmatmul.bf16.gmra.mxu1 %v6582_v48  ;;  %v3633_v58 = vsel %vm3601_vm15, %v7971_v8, %v3617_v10  ;;  %v3716_v44 = vunpack.c.l.b16 %v3684_v49  ;;  %v3682_v52 = vpack.c.bf16 %v3634_v27, %v3634_v27  ;;  %v6593_v56 = vld [vmem:[#allocation10 + $0x20] sm:$0xff] }
 0x4bd   :  { %v8093_v11 = vpack.c.b16 %v3718_v31, %v3717_v51  ;;  %v3715_v9 = vunpack.c.l.b16 %v3683_v42  ;;  %v3681_v63 = vpack.c.bf16 %v3633_v58, %v3633_v58  ;;  %v6435_v27 = vld [vmem:[#allocation14 + $0x160] sm:$0xff]  ;;  %v6434_v58 = vld [vmem:[#allocation14 + $0x158] sm:$0xff] }
 0x4be   :  { %v3714_v48 = vunpack.c.l.b16 %v3682_v52  ;;  %v6430_v52 = vld [vmem:[#allocation14 + $0x138] sm:$0xff] }
 0x4bf   :  { %3746 = vmatpush.bf16.msra.mxu2 %v8062_v46  ;;  %3795 = vmatpush.bf16.msra.mxu3 %v8062_v46  ;;  %v8097_v34 = vpack.c.b16 %v3716_v44, %v3715_v9  ;;  %v3713_v8 = vunpack.c.l.b16 %v3681_v63  ;;  %v6594_v44 = vld [vmem:[#allocation8 + $0x28] sm:$0xff]  ;;  %v6433_v9 = vld [vmem:[#allocation14 + $0x150] sm:$0xff] }
 0x4c0   :  { %v6429_v63 = vld [vmem:[#allocation14 + $0x130] sm:$0xff] }
 0x4c1   :  { %v8105_v57 = vpack.c.b16 %v3714_v48, %v3713_v8  ;;  %v6432_v8 = vld [vmem:[#allocation14 + $0x148] sm:$0xff] }
 0x4c3   :  { %3747 = vmatpush.bf16.msra.mxu2 %v8071_v23  ;;  %3796 = vmatpush.bf16.msra.mxu3 %v8071_v23 }
 0x4c7   :  { %3748 = vmatpush.bf16.msra.mxu2 %v8079_v55  ;;  %3797 = vmatpush.bf16.msra.mxu3 %v8079_v55 }
 0x4c8   :  { %3934 = vmatmul.bf16.gmra.mxu0 %v6583_v1  ;;  %v6436_v1 = vld [vmem:[#allocation14 + $0x168] sm:$0xff] }
 0x4c9   :  { %v3997_v17 = vpop.f32.mrf.mxu1 }
 0x4ca   :  { %v4181_v5 = vpack.c.bf16 %v3997_v17, %v3997_v17 }
 0x4cb   :  { %3749 = vmatpush.bf16.msra.mxu2 %v8086_v24  ;;  %3798 = vmatpush.bf16.msra.mxu3 %v8086_v24 }
 0x4cc   :  { %4716 = vmatmul.bf16.vlgmr.msra.gmra.mxu1 %v7774_v39  ;;  %v8099_v3 = vunpack.c.l.b16 %v4181_v5  ;;  %v6446_v5 = vld [vmem:[#allocation16 + $0x138] sm:$0xff] }
 0x4cd   :  { %4659 = vmatpush.bf16.msrb.mxu0 %v6446_v5 }
 0x4cf   :  { %3750 = vmatpush.bf16.msra.mxu2 %v8093_v11  ;;  %3799 = vmatpush.bf16.msra.mxu3 %v8093_v11 }
 0x4d1   :  { %v3999_v62 = vpop.f32.mrf.mxu1 }
 0x4d2   :  { %v4182_v39 = vpack.c.bf16 %v3999_v62, %v3999_v62  ;;  %v6445_v62 = vld [vmem:[#allocation16 + $0x130] sm:$0xff] }
 0x4d3   :  { %3751 = vmatpush.bf16.msra.mxu2 %v8097_v34  ;;  %3800 = vmatpush.bf16.msra.mxu3 %v8097_v34 }
 0x4d4   :  { %v8103_v21 = vunpack.c.l.b16 %v4182_v39  ;;  %4660 = vmatpush.bf16.msrb.mxu0 %v6445_v62 }
 0x4d6   :  { %v4277_v15 = vpack.c.b16 %v8103_v21, %v8099_v3 }
 0x4d7   :  { %3752 = vmatpush.bf16.msra.mxu2 %v8105_v57  ;;  %3801 = vmatpush.bf16.msra.mxu3 %v8105_v57 }
 0x4d9   :  { %v8111_v22 = vpop.f32.mrf.mxu1 }
 0x4da   :  { %3753 = vmatmul.bf16.vlgmr.msra.gmra.mxu2 %v6584_v54  ;;  %3802 = vmatmul.bf16.vlgmr.msra.gmra.mxu3 %v6585_v13  ;;  %v6428_v54 = vld [vmem:[#allocation14 + $0x128] sm:$0xff] }
 0x4db   :  { %4476 = vmatpush.bf16.msrb.mxu3 %v6438_v4  ;;  %4427 = vmatpush.bf16.msrb.mxu2 %v6430_v52  ;;  %v6444_v13 = vld [vmem:[#allocation16 + $0x128] sm:$0xff]  ;;  %v6599_v52 = vld [vmem:[#allocation10 + $0x38] sm:$0xff] }
 0x4dc   :  { %4721 = vmatmul.bf16.gmra.mxu1 %v7793_v36  ;;  %4661 = vmatpush.bf16.msrb.mxu0 %v6444_v13 }
 0x4df   :  { %4428 = vmatpush.bf16.msrb.mxu2 %v6429_v63 }
 0x4e1   :  { %v8114_v50 = vpop.f32.mrf.mxu1 }
 0x4e3   :  { %4429 = vmatpush.bf16.msrb.mxu2 %v6428_v54 }
 0x4e9   :  { %v8116_v45 = vpop.f32.mrf.mxu1 }
 0x4ea   :  { %3758 = vmatmul.bf16.gmra.mxu2 %v6586_v32  ;;  %3807 = vmatmul.bf16.gmra.mxu3 %v6587_v6 }
 0x4ec   :  { %4726 = vmatmul.bf16.gmra.mxu1 %v7819_v59 }
 0x4f1   :  { %v8119_v14 = vpop.f32.mrf.mxu1 }
 0x4f9   :  { %v8121_v16 = vpop.f32.mrf.mxu1 }
 0x4fa   :  { %3763 = vmatmul.bf16.gmra.mxu2 %v6588_v30  ;;  %3812 = vmatmul.bf16.gmra.mxu3 %v6589_v19  ;;  %v6431_v30 = vld [vmem:[#allocation14 + $0x140] sm:$0xff] }
 0x4fc   :  { %4731 = vmatmul.bf16.gmra.mxu1 %v7846_v53 }
 0x501   :  { %v8124_v36 = vpop.f32.mrf.mxu1 }
 0x502   :  { %v4188_v3 = vpack.c.bf16 %v8124_v36, %v8124_v36  ;;  %v8233_v36 = vld [vmem:[%s8367_s10 + $0x2] ss:$0 sm:$0xff] }
 0x509   :  { %v4017_v41 = vpop.f32.mrf.mxu1 }
 0x50a   :  { %3768 = vmatmul.bf16.gmra.mxu2 %v6590_v12  ;;  %3817 = vmatmul.bf16.gmra.mxu3 %v6591_v0  ;;  %v4189_v59 = vpack.c.bf16 %v4017_v41, %v4017_v41  ;;  %v6443_v41 = vld [vmem:[#allocation16 + $0x120] sm:$0xff] }
 0x50b   :  { %4662 = vmatpush.bf16.msrb.mxu0 %v6443_v41 }
 0x50c   :  { %4736 = vmatmul.bf16.gmra.mxu1 %v7968_v60  ;;  %v8127_v29 = vunpack.c.l.b16 %v4189_v59  ;;  %v6437_v60 = vld [vmem:[#allocation14 + $0x170] sm:$0xff] }
 0x50d   :  { %4477 = vmatpush.bf16.msrb.mxu3 %v6437_v60  ;;  %v6596_v59 = vld [vmem:[#allocation8 + $0x30] sm:$0xff] }
 0x511   :  { %v4019_v25 = vpop.f32.mrf.mxu1  ;;  %4478 = vmatpush.bf16.msrb.mxu3 %v6436_v1  ;;  %v6424_v1 = vld [vmem:[#allocation14 + $0x108] sm:$0xff] }
 0x512   :  { %v4190_v47 = vpack.c.bf16 %v4019_v25, %v4019_v25  ;;  %v6597_v25 = vld [vmem:[#allocation10 + $0x30] sm:$0xff] }
 0x514   :  { %v8129_v26 = vunpack.c.l.b16 %v4190_v47  ;;  %v6426_v47 = vld [vmem:[#allocation14 + $0x118] sm:$0xff] }
 0x515   :  { %4479 = vmatpush.bf16.msrb.mxu3 %v6435_v27 }
 0x516   :  { %v4281_v2 = vpack.c.b16 %v8129_v26, %v8127_v29 }
 0x519   :  { %v4022_v53 = vpop.f32.mrf.mxu1  ;;  %4480 = vmatpush.bf16.msrb.mxu3 %v6434_v58  ;;  %v6439_v58 = vld [vmem:[#allocation16 + $0x100] sm:$0xff] }
 0x51a   :  { %3773 = vmatmul.bf16.gmra.mxu2 %v6592_v40  ;;  %3822 = vmatmul.bf16.gmra.mxu3 %v6593_v56  ;;  %v4191_v10 = vpack.c.bf16 %v4022_v53, %v4022_v53  ;;  %v6442_v53 = vld [vmem:[#allocation16 + $0x118] sm:$0xff]  ;;  %v6425_v40 = vld [vmem:[#allocation14 + $0x110] sm:$0xff] }
 0x51b   :  { %4663 = vmatpush.bf16.msrb.mxu0 %v6442_v53  ;;  %v6441_v56 = vld [vmem:[#allocation16 + $0x110] sm:$0xff] }
 0x51c   :  { %4741 = vmatmul.bf16.gmra.mxu1 %v7955_v20  ;;  %v8134_v17 = vunpack.c.l.b16 %v4191_v10  ;;  %v6595_v20 = vld [vmem:[#allocation10 + $0x28] sm:$0xff] }
 0x51d   :  { %4481 = vmatpush.bf16.msrb.mxu3 %v6433_v9 }
 0x51f   :  { %4664 = vmatpush.bf16.msrb.mxu0 %v6441_v56 }
 0x521   :  { %v4024_v43 = vpop.f32.mrf.mxu1  ;;  %4482 = vmatpush.bf16.msrb.mxu3 %v6432_v8 }
 0x522   :  { %v4192_v31 = vpack.c.bf16 %v4024_v43, %v4024_v43 }
 0x524   :  { %v8136_v49 = vunpack.c.l.b16 %v4192_v31  ;;  %v6440_v31 = vld [vmem:[#allocation16 + $0x108] sm:$0xff] }
 0x525   :  { %4483 = vmatpush.bf16.msrb.mxu3 %v6431_v30  ;;  %4665 = vmatpush.bf16.msrb.mxu0 %v6440_v31 }
 0x526   :  { %v4282_v51 = vpack.c.b16 %v8136_v49, %v8134_v17 }
 0x529   :  { %v4027_v42 = vpop.f32.mrf.mxu1  ;;  %4666 = vmatpush.bf16.msrb.mxu0 %v6439_v58 }
 0x52a   :  { %3778 = vmatmul.bf16.gmra.mxu2 %v6594_v44  ;;  %3827 = vmatmul.bf16.gmra.mxu3 %v6595_v20  ;;  %v4193_v48 = vpack.c.bf16 %v4027_v42, %v4027_v42  ;;  %v6423_v42 = vld [vmem:[#allocation14 + $0x100] sm:$0xff]  ;;  %v8154_v44 = vpop.f32.mrf.mxu0  ;;  %v6598_v20 = vld [vmem:[#allocation8 + $0x38] sm:$0xff] }
 0x52c   :  { %4746 = vmatmul.bf16.gmra.mxu1 %v7944_v33  ;;  %v8141_v32 = vunpack.c.l.b16 %v4193_v48  ;;  %v6427_v33 = vld [vmem:[#allocation14 + $0x120] sm:$0xff] }
 0x52d   :  { %4430 = vmatpush.bf16.msrb.mxu2 %v6427_v33 }
 0x531   :  { %v4029_v39 = vpop.f32.mrf.mxu1  ;;  %4431 = vmatpush.bf16.msrb.mxu2 %v6426_v47 }
 0x532   :  { %v4194_v6 = vpack.c.bf16 %v4029_v39, %v4029_v39  ;;  %v8156_v5 = vpop.f32.mrf.mxu0 }
 0x534   :  { %v8143_v19 = vunpack.c.l.b16 %v4194_v6 }
 0x535   :  { %4432 = vmatpush.bf16.msrb.mxu2 %v6425_v40 }
 0x536   :  { %v4283_v12 = vpack.c.b16 %v8143_v19, %v8141_v32 }
 0x539   :  { %v4032_v0 = vpop.f32.mrf.mxu1  ;;  %4433 = vmatpush.bf16.msrb.mxu2 %v6424_v1 }
 0x53a   :  { %3783 = vmatmul.bf16.gmra.mxu2 %v6596_v59  ;;  %3832 = vmatmul.bf16.gmra.mxu3 %v6597_v25  ;;  %v4195_v4 = vpack.c.bf16 %v4032_v0, %v4032_v0  ;;  %v8159_v9 = vpop.f32.mrf.mxu0 }
 0x53c   :  { %4751 = vmatmul.bf16.gmra.mxu1 %v7931_v38  ;;  %v8148_v10 = vunpack.c.l.b16 %v4195_v4 }
 0x53d   :  { %4434 = vmatpush.bf16.msrb.mxu2 %v6423_v42 }
 0x541   :  { %v4034_v60 = vpop.f32.mrf.mxu1 }
 0x542   :  { %v4196_v43 = vpack.c.bf16 %v4034_v60, %v4034_v60  ;;  %v8161_v33 = vpop.f32.mrf.mxu0 }
 0x544   :  { %v8150_v27 = vunpack.c.l.b16 %v4196_v43 }
 0x546   :  { %v4284_v38 = vpack.c.b16 %v8150_v27, %v8148_v10 }
 0x54a   :  { %3788 = vmatmul.bf16.gmra.mxu2 %v6598_v20  ;;  %3837 = vmatmul.bf16.gmra.mxu3 %v6599_v52  ;;  %v8164_v4 = vpop.f32.mrf.mxu0 }
 0x55a   :  { %4484 = vmatmul.bf16.vlgmr.msrb.gmra.mxu3 %v7786_v7 }
 0x55d   :  { %v3754_v63 = vpop.f32.mrf.mxu2  ;;  %v3803_v62 = vpop.f32.mrf.mxu3 }
 0x55e   :  { %v4101_v48 = vpack.c.bf16 %v3803_v62, %v3803_v62  ;;  %v4037_v39 = vpack.c.bf16 %v3754_v63, %v3754_v63  ;;  %v8167_v62 = vpop.f32.mrf.mxu0 }
 0x560   :  { %v4133_v13 = vunpack.c.l.b16 %v4101_v48  ;;  %v4069_v41 = vunpack.c.l.b16 %v4037_v39 }
 0x565   :  { %v3756_v8 = vpop.f32.mrf.mxu2  ;;  %v3805_v54 = vpop.f32.mrf.mxu3 }
 0x566   :  { %v4038_v6 = vpack.c.bf16 %v3756_v8, %v3756_v8  ;;  %v4102_v30 = vpack.c.bf16 %v3805_v54, %v3805_v54 }
 0x568   :  { %v4070_v0 = vunpack.c.l.b16 %v4038_v6  ;;  %v4134_v59 = vunpack.c.l.b16 %v4102_v30 }
 0x56a   :  { %v4085_v25 = vpack.c.b16 %v4070_v0, %v4069_v41  ;;  %v4149_v47 = vpack.c.b16 %v4134_v59, %v4133_v13  ;;  %4489 = vmatmul.bf16.gmra.mxu3 %v7813_v61  ;;  %v8169_v13 = vpop.f32.mrf.mxu0 }
 0x56c   :  { %4435 = vmatmul.bf16.vlgmr.msrb.gmra.mxu2 %v4085_v25  ;;  %4667 = vmatmul.bf16.vlgmr.msrb.gmra.mxu0 %v4149_v47 }
 0x56d   :  { %v3759_v7 = vpop.f32.mrf.mxu2  ;;  %v3808_v53 = vpop.f32.mrf.mxu3 }
 0x56e   :  { %v4103_v40 = vpack.c.bf16 %v3808_v53, %v3808_v53  ;;  %v4039_v56 = vpack.c.bf16 %v3759_v7, %v3759_v7 }
 0x570   :  { %v4135_v1 = vunpack.c.l.b16 %v4103_v40  ;;  %v4071_v58 = vunpack.c.l.b16 %v4039_v56 }
 0x575   :  { %v3761_v60 = vpop.f32.mrf.mxu2  ;;  %v3810_v43 = vpop.f32.mrf.mxu3 }
 0x576   :  { %v4040_v31 = vpack.c.bf16 %v3761_v60, %v3761_v60  ;;  %v4104_v42 = vpack.c.bf16 %v3810_v43, %v3810_v43  ;;  %v8172_v60 = vpop.f32.mrf.mxu0 }
 0x578   :  { %v4072_v20 = vunpack.c.l.b16 %v4040_v31  ;;  %v4136_v52 = vunpack.c.l.b16 %v4104_v42 }
 0x57a   :  { %4494 = vmatmul.bf16.gmra.mxu3 %v7838_v37  ;;  %v4086_v63 = vpack.c.b16 %v4072_v20, %v4071_v58  ;;  %v4150_v61 = vpack.c.b16 %v4136_v52, %v4135_v1 }
 0x57c   :  { %4440 = vmatmul.bf16.gmra.mxu2 %v4086_v63  ;;  %4672 = vmatmul.bf16.gmra.mxu0 %v4150_v61 }
 0x57d   :  { %v3764_v48 = vpop.f32.mrf.mxu2  ;;  %v3813_v39 = vpop.f32.mrf.mxu3 }
 0x57e   :  { %v4105_v8 = vpack.c.bf16 %v3813_v39, %v3813_v39  ;;  %v4041_v54 = vpack.c.bf16 %v3764_v48, %v3764_v48  ;;  %v8174_v39 = vpop.f32.mrf.mxu0 }
 0x57f   :  { %v4173_v29 = vpack.c.bf16 %v8174_v39, %v8174_v39 }
 0x580   :  { %v4137_v41 = vunpack.c.l.b16 %v4105_v8  ;;  %v4073_v25 = vunpack.c.l.b16 %v4041_v54 }
 0x585   :  { %v3766_v6 = vpop.f32.mrf.mxu2  ;;  %v3815_v30 = vpop.f32.mrf.mxu3 }
 0x586   :  { %v4042_v0 = vpack.c.bf16 %v3766_v6, %v3766_v6  ;;  %v4106_v59 = vpack.c.bf16 %v3815_v30, %v3815_v30  ;;  %v6470_v30 = vld [vmem:[#allocation17 + $0x1f8] sm:$0xff] }
 0x587   :  { %5004 = vmatpush.bf16.msra.mxu3 %v6470_v30  ;;  %v6465_v30 = vld [vmem:[#allocation17 + $0x1d0] sm:$0xff] }
 0x588   :  { %v4074_v47 = vunpack.c.l.b16 %v4042_v0  ;;  %v4138_v37 = vunpack.c.l.b16 %v4106_v59  ;;  %v8177_v59 = vpop.f32.mrf.mxu0 }
 0x58a   :  { %4499 = vmatmul.bf16.gmra.mxu3 %v7868_v35  ;;  %v4087_v7 = vpack.c.b16 %v4074_v47, %v4073_v25  ;;  %v4151_v53 = vpack.c.b16 %v4138_v37, %v4137_v41  ;;  %v6469_v41 = vld [vmem:[#allocation17 + $0x1f0] sm:$0xff] }
 0x58b   :  { %5005 = vmatpush.bf16.msra.mxu3 %v6469_v41 }
 0x58c   :  { %4445 = vmatmul.bf16.gmra.mxu2 %v4087_v7  ;;  %4677 = vmatmul.bf16.gmra.mxu0 %v4151_v53  ;;  %v6468_v7 = vld [vmem:[#allocation17 + $0x1e8] sm:$0xff] }
 0x58d   :  { %v3769_v40 = vpop.f32.mrf.mxu2  ;;  %v3818_v56 = vpop.f32.mrf.mxu3 }
 0x58e   :  { %v4107_v43 = vpack.c.bf16 %v3818_v56, %v3818_v56  ;;  %v4043_v1 = vpack.c.bf16 %v3769_v40, %v3769_v40 }
 0x58f   :  { %5006 = vmatpush.bf16.msra.mxu3 %v6468_v7 }
 0x590   :  { %v4139_v58 = vunpack.c.l.b16 %v4107_v43  ;;  %v4075_v63 = vunpack.c.l.b16 %v4043_v1 }
 0x595   :  { %v3771_v31 = vpop.f32.mrf.mxu2  ;;  %v3820_v42 = vpop.f32.mrf.mxu3 }
 0x596   :  { %v4044_v20 = vpack.c.bf16 %v3771_v31, %v3771_v31  ;;  %v4108_v52 = vpack.c.bf16 %v3820_v42, %v3820_v42  ;;  %v6467_v31 = vld [vmem:[#allocation17 + $0x1e0] sm:$0xff] }
 0x597   :  { %v8388_v42 = vld [vmem:[#allocation31_spill] sm:$0xff]  ;;  %5007 = vmatpush.bf16.msra.mxu3 %v6467_v31 }
 0x598   :  { %v4076_v61 = vunpack.c.l.b16 %v4044_v20  ;;  %v4140_v48 = vunpack.c.l.b16 %v4108_v52  ;;  %v6462_v52 = vld [vmem:[#allocation17 + $0x1b8] sm:$0xff]  ;;  %v6475_v31 = vld [vmem:[#allocation17 + $0x220] sm:$0xff] }
 0x599   :  { %4955 = vmatpush.bf16.msra.mxu2 %v6462_v52  ;;  %v6463_v52 = vld [vmem:[#allocation17 + $0x1c0] sm:$0xff] }
 0x59a   :  { %4504 = vmatmul.bf16.gmra.mxu3 %v7989_v18  ;;  %v4088_v35 = vpack.c.b16 %v4076_v61, %v4075_v63  ;;  %v4152_v8 = vpack.c.b16 %v4140_v48, %v4139_v58  ;;  %v6478_v63 = vld [vmem:[#allocation17 + $0x238] sm:$0xff]  ;;  %v8180_v61 = vpop.f32.mrf.mxu0 }
 0x59b   :  { %5053 = vmatpush.bf16.msra.mxu0 %v6478_v63  ;;  %v8389_v63 = vld [vmem:[#allocation32_spill] sm:$0xff]  ;;  %v4175_v17 = vpack.c.bf16 %v8180_v61, %v8180_v61 }
 0x59c   :  { %4450 = vmatmul.bf16.gmra.mxu2 %v4088_v35  ;;  %4682 = vmatmul.bf16.gmra.mxu0 %v4152_v8  ;;  %v6466_v8 = vld [vmem:[#allocation17 + $0x1d8] sm:$0xff] }
 0x59d   :  { %v3774_v54 = vpop.f32.mrf.mxu2  ;;  %v3823_v6 = vpop.f32.mrf.mxu3  ;;  %5008 = vmatpush.bf16.msra.mxu3 %v6466_v8  ;;  %v6458_v8 = vld [vmem:[#allocation17 + $0x198] sm:$0xff] }
 0x59e   :  { %v4109_v0 = vpack.c.bf16 %v3823_v6, %v3823_v6  ;;  %v4045_v25 = vpack.c.bf16 %v3774_v54, %v3774_v54  ;;  %v6461_v54 = vld [vmem:[#allocation17 + $0x1b0] sm:$0xff] }
 0x59f   :  { %v6477_v6 = vld [vmem:[#allocation17 + $0x230] sm:$0xff]  ;;  %4956 = vmatpush.bf16.msra.mxu2 %v6461_v54  ;;  %v6474_v54 = vld [vmem:[#allocation17 + $0x218] sm:$0xff] }
 0x5a0   :  { %v4141_v53 = vunpack.c.l.b16 %v4109_v0  ;;  %v4077_v56 = vunpack.c.l.b16 %v4045_v25  ;;  %5054 = vmatpush.bf16.msra.mxu0 %v6477_v6  ;;  %v6460_v0 = vld [vmem:[#allocation17 + $0x1a8] sm:$0xff] }
 0x5a1   :  { %v6476_v25 = vld [vmem:[#allocation17 + $0x228] sm:$0xff]  ;;  %5009 = vmatpush.bf16.msra.mxu3 %v6465_v30 }
 0x5a3   :  { %4957 = vmatpush.bf16.msra.mxu2 %v6460_v0  ;;  %v6473_v0 = vld [vmem:[#allocation17 + $0x210] sm:$0xff] }
 0x5a4   :  { %5055 = vmatpush.bf16.msra.mxu0 %v6476_v25 }
 0x5a5   :  { %v3776_v47 = vpop.f32.mrf.mxu2  ;;  %v3825_v37 = vpop.f32.mrf.mxu3 }
 0x5a6   :  { %v4046_v40 = vpack.c.bf16 %v3776_v47, %v3776_v47  ;;  %v4110_v18 = vpack.c.bf16 %v3825_v37, %v3825_v37 }
 0x5a8   :  { %v4078_v43 = vunpack.c.l.b16 %v4046_v40  ;;  %v4142_v1 = vunpack.c.l.b16 %v4110_v18  ;;  %5056 = vmatpush.bf16.msra.mxu0 %v6475_v31 }
 0x5aa   :  { %4509 = vmatmul.bf16.gmra.mxu3 %v8388_v42  ;;  %v4089_v58 = vpack.c.b16 %v4078_v43, %v4077_v56  ;;  %v4153_v20 = vpack.c.b16 %v4142_v1, %v4141_v53  ;;  %v6464_v53 = vld [vmem:[#allocation17 + $0x1c8] sm:$0xff]  ;;  %v8182_v43 = vpop.f32.mrf.mxu0  ;;  %v6459_v1 = vld [vmem:[#allocation17 + $0x1a0] sm:$0xff] }
 0x5ab   :  { %5010 = vmatpush.bf16.msra.mxu3 %v6464_v53  ;;  %4958 = vmatpush.bf16.msra.mxu2 %v6459_v1  ;;  %v6472_v53 = vld [vmem:[#allocation17 + $0x208] sm:$0xff] }
 0x5ac   :  { %4455 = vmatmul.bf16.gmra.mxu2 %v4089_v58  ;;  %4687 = vmatmul.bf16.gmra.mxu0 %v4153_v20 }
 0x5ad   :  { %v3779_v48 = vpop.f32.mrf.mxu2  ;;  %v3828_v35 = vpop.f32.mrf.mxu3  ;;  %5057 = vmatpush.bf16.msra.mxu0 %v6474_v54  ;;  %v8390_v54 = vld [vmem:[#allocation33_spill] sm:$0xff] }
 0x5ae   :  { %v4111_v41 = vpack.c.bf16 %v3828_v35, %v3828_v35  ;;  %v4047_v47 = vpack.c.bf16 %v3779_v48, %v3779_v48 }
 0x5af   :  { %5011 = vmatpush.bf16.msra.mxu3 %v6463_v52  ;;  %4959 = vmatpush.bf16.msra.mxu2 %v6458_v8  ;;  %v6455_v52 = vld [vmem:[#allocation17 + $0x180] sm:$0xff] }
 0x5b0   :  { %v4143_v40 = vunpack.c.l.b16 %v4111_v41  ;;  %v4079_v42 = vunpack.c.l.b16 %v4047_v47  ;;  %v6457_v41 = vld [vmem:[#allocation17 + $0x190] sm:$0xff] }
 0x5b1   :  { %5058 = vmatpush.bf16.msra.mxu0 %v6473_v0 }
 0x5b2   :  { %v8185_v25 = vpop.f32.mrf.mxu0 }
 0x5b3   :  { %4960 = vmatpush.bf16.msra.mxu2 %v6457_v41  ;;  %v4717_v41 = vpop.f32.mrf.mxu1  ;;  %v4177_v32 = vpack.c.bf16 %v8185_v25, %v8185_v25 }
 0x5b5   :  { %v3781_v37 = vpop.f32.mrf.mxu2  ;;  %v3830_v7 = vpop.f32.mrf.mxu3  ;;  %5059 = vmatpush.bf16.msra.mxu0 %v6472_v53  ;;  %v4185_v53 = vpack.c.bf16 %v8116_v45, %v8116_v45 }
 0x5b6   :  { %v4048_v18 = vpack.c.bf16 %v3781_v37, %v3781_v37  ;;  %v4112_v56 = vpack.c.bf16 %v3830_v7, %v3830_v7  ;;  %v4183_v37 = vpack.c.bf16 %v8111_v22, %v8111_v22  ;;  %v6456_v7 = vld [vmem:[#allocation17 + $0x188] sm:$0xff] }
 0x5b7   :  { %4961 = vmatpush.bf16.msra.mxu2 %v6456_v7 }
 0x5b8   :  { %v4080_v58 = vunpack.c.l.b16 %v4048_v18  ;;  %v4144_v20 = vunpack.c.l.b16 %v4112_v56 }
 0x5ba   :  { %4514 = vmatmul.bf16.gmra.mxu3 %v8389_v63  ;;  %v4090_v48 = vpack.c.b16 %v4080_v58, %v4079_v42  ;;  %v4154_v35 = vpack.c.b16 %v4144_v20, %v4143_v40  ;;  %v4184_v40 = vpack.c.bf16 %v8114_v50, %v8114_v50  ;;  %v4263_v20 = vunpack.c.l.b16 %v4183_v37  ;;  %v6471_v63 = vld [vmem:[#allocation17 + $0x200] sm:$0xff] }
 0x5bb   :  { %4962 = vmatpush.bf16.msra.mxu2 %v6455_v52  ;;  %5060 = vmatpush.bf16.msra.mxu0 %v6471_v63  ;;  %v8200_v63 = vunpack.c.l.b16 %v4185_v53  ;;  %v4187_v53 = vpack.c.bf16 %v8121_v16, %v8121_v16 }
 0x5bc   :  { %4460 = vmatmul.bf16.gmra.mxu2 %v4090_v48  ;;  %4692 = vmatmul.bf16.gmra.mxu0 %v4154_v35  ;;  %v4264_v48 = vunpack.c.l.b16 %v4184_v40  ;;  %v4186_v40 = vpack.c.bf16 %v8119_v14, %v8119_v14 }
 0x5bd   :  { %v3784_v6 = vpop.f32.mrf.mxu2  ;;  %v3833_v30 = vpop.f32.mrf.mxu3 }
 0x5be   :  { %v4113_v47 = vpack.c.bf16 %v3833_v30, %v3833_v30  ;;  %v4049_v18 = vpack.c.bf16 %v3784_v6, %v3784_v6  ;;  %v8192_v30 = vpop.f32.mrf.mxu0  ;;  %v4278_v0 = vpack.c.b16 %v4264_v48, %v4263_v20  ;;  %v4719_v20 = vpop.f32.mrf.mxu1  ;;  %v8202_v48 = vunpack.c.l.b16 %v4186_v40 }
 0x5c0   :  { %v4145_v31 = vunpack.c.l.b16 %v4113_v47  ;;  %v4081_v35 = vunpack.c.l.b16 %v4049_v18  ;;  %v4279_v14 = vpack.c.b16 %v8202_v48, %v8200_v63 }
 0x5c5   :  { %v3786_v56 = vpop.f32.mrf.mxu2  ;;  %v3835_v1 = vpop.f32.mrf.mxu3 }
 0x5c6   :  { %v4050_v42 = vpack.c.bf16 %v3786_v56, %v3786_v56  ;;  %v4114_v58 = vpack.c.bf16 %v3835_v1, %v3835_v1  ;;  %v8198_v56 = vpop.f32.mrf.mxu0 }
 0x5c7   :  { %v4179_v10 = vpack.c.bf16 %v8198_v56, %v8198_v56 }
 0x5c8   :  { %v4082_v8 = vunpack.c.l.b16 %v4050_v42  ;;  %v4146_v22 = vunpack.c.l.b16 %v4114_v58 }
 0x5ca   :  { %4519 = vmatmul.bf16.gmra.mxu3 %v8390_v54  ;;  %v4091_v50 = vpack.c.b16 %v4082_v8, %v4081_v35  ;;  %v4155_v6 = vpack.c.b16 %v4146_v22, %v4145_v31 }
 0x5cc   :  { %4465 = vmatmul.bf16.gmra.mxu2 %v4091_v50  ;;  %4697 = vmatmul.bf16.gmra.mxu0 %v4155_v6 }
 0x5cd   :  { %v3789_v47 = vpop.f32.mrf.mxu2  ;;  %v3838_v37 = vpop.f32.mrf.mxu3 }
 0x5ce   :  { %v4115_v7 = vpack.c.bf16 %v3838_v37, %v3838_v37  ;;  %v4051_v18 = vpack.c.bf16 %v3789_v47, %v3789_v47  ;;  %v8209_v6 = vpop.f32.mrf.mxu0  ;;  %v4722_v47 = vpop.f32.mrf.mxu1  ;;  %v4165_v37 = vpack.c.bf16 %v8154_v44, %v8154_v44  ;;  %v8226_v44 = vunpack.c.l.b16 %v4188_v3 }
 0x5d0   :  { %v4147_v42 = vunpack.c.l.b16 %v4115_v7  ;;  %v4083_v35 = vunpack.c.l.b16 %v4051_v18  ;;  %v4166_v7 = vpack.c.bf16 %v8156_v5, %v8156_v5  ;;  %v8222_v18 = vld [vmem:[%s8368_s11 + $0x2] ss:$0 sm:$0xff] }
 0x5d2   :  { %v4214_v40 = vunpack.c.l.b16 %v4166_v7 }
 0x5d5   :  { %v3791_v1 = vpop.f32.mrf.mxu2  ;;  %v3840_v31 = vpop.f32.mrf.mxu3 }
 0x5d6   :  { %v4052_v58 = vpack.c.bf16 %v3791_v1, %v3791_v1  ;;  %v4116_v52 = vpack.c.bf16 %v3840_v31, %v3840_v31  ;;  %v8224_v1 = vunpack.c.l.b16 %v4187_v53  ;;  %v4724_v16 = vpop.f32.mrf.mxu1 }
 0x5d8   :  { %v4084_v8 = vunpack.c.l.b16 %v4052_v58  ;;  %v4148_v22 = vunpack.c.l.b16 %v4116_v52  ;;  %v4280_v52 = vpack.c.b16 %v8226_v44, %v8224_v1  ;;  %v4172_v44 = vpack.c.bf16 %v8172_v60, %v8172_v60 }
 0x5da   :  { %v4092_v45 = vpack.c.b16 %v4084_v8, %v4083_v35  ;;  %v4156_v54 = vpack.c.b16 %v4148_v22, %v4147_v42  ;;  %5012 = vmatmul.bf16.vlgmr.msra.gmra.mxu3 %v4277_v15  ;;  %v4213_v15 = vunpack.c.l.b16 %v4165_v37  ;;  %v4168_v22 = vpack.c.bf16 %v8161_v33, %v8161_v33 }
 0x5dc   :  { %4470 = vmatmul.bf16.gmra.mxu2 %v4092_v45  ;;  %4702 = vmatmul.bf16.gmra.mxu0 %v4156_v54  ;;  %v4229_v5 = vpack.c.b16 %v4214_v40, %v4213_v15  ;;  %v4216_v40 = vunpack.c.l.b16 %v4168_v22 }
 0x5dd   :  { %v4485_v50 = vpop.f32.mrf.mxu3 }
 0x5de   :  { %v4727_v53 = vpop.f32.mrf.mxu1 }
 0x5e5   :  { %v4487_v21 = vpop.f32.mrf.mxu3 }
 0x5e6   :  { %v4729_v22 = vpop.f32.mrf.mxu1 }
 0x5e9   :  { %v4668_v31 = vpop.f32.mrf.mxu0 }
 0x5ea   :  { %v4669_v42 = vadd.f32 %v8222_v18, %v4668_v31  ;;  %5017 = vmatmul.bf16.gmra.mxu3 %v4278_v0 }
 0x5ec   :  { %v4718_v58 = vadd.f32 %v4717_v41, %v4669_v42  ;;  %4963 = vmatmul.bf16.vlgmr.msra.gmra.mxu2 %v4229_v5  ;;  %5061 = vmatmul.bf16.vlgmr.msra.gmra.mxu0 %v8105_v57  ;;  %v4167_v41 = vpack.c.bf16 %v8159_v9, %v8159_v9 }
 0x5ed   :  { %v4490_v63 = vpop.f32.mrf.mxu3 }
 0x5ee   :  { %vm5150_vm0 = vcmp.gt.f32.partialorder %v4718_v58, 0.0  ;;  %v5166_v48 = vmul.f32 0.01, %v4718_v58  ;;  %v4215_v3 = vunpack.c.l.b16 %v4167_v41 }
 0x5ef   :  { %v4436_v35 = vpop.f32.mrf.mxu2 }
 0x5f0   :  { %v5182_v8 = vsel %vm5150_vm0, %v4718_v58, %v5166_v48  ;;  %v4437_v0 = vadd.f32 %v8233_v36, %v4436_v35  ;;  %v4230_v35 = vpack.c.b16 %v4216_v40, %v4215_v3 }
 0x5f1   :  { %5278 = vst [vmem:[#allocation22] sm:$0xff] %v5182_v8  ;;  %v4670_v57 = vpop.f32.mrf.mxu0 }
 0x5f2   :  { %v4486_v45 = vadd.f32 %v4485_v50, %v4437_v0  ;;  %v4671_v54 = vadd.f32 %v8222_v18, %v4670_v57 }
 0x5f4   :  { %vm5102_vm1 = vcmp.gt.f32.partialorder %v4486_v45, 0.0  ;;  %v5118_v37 = vmul.f32 0.01, %v4486_v45  ;;  %v4720_v7 = vadd.f32 %v4719_v20, %v4671_v54 }
 0x5f5   :  { %v4492_v15 = vpop.f32.mrf.mxu3 }
 0x5f6   :  { %v5134_v31 = vsel %vm5102_vm1, %v4486_v45, %v5118_v37  ;;  %vm5151_vm2 = vcmp.gt.f32.partialorder %v4720_v7, 0.0  ;;  %v5167_v5 = vmul.f32 0.01, %v4720_v7  ;;  %v4169_v37 = vpack.c.bf16 %v8164_v4, %v8164_v4 }
 0x5f7   :  { %5262 = vst [vmem:[#allocation20] sm:$0xff] %v5134_v31  ;;  %v4438_v9 = vpop.f32.mrf.mxu2 }
 0x5f8   :  { %v5183_v42 = vsel %vm5151_vm2, %v4720_v7, %v5167_v5  ;;  %v4439_v58 = vadd.f32 %v8233_v36, %v4438_v9  ;;  %v4217_v31 = vunpack.c.l.b16 %v4169_v37  ;;  %v4171_v37 = vpack.c.bf16 %v8169_v13, %v8169_v13 }
 0x5f9   :  { %5279 = vst [vmem:[#allocation22 + $0x8] sm:$0xff] %v5183_v42  ;;  %v4673_v33 = vpop.f32.mrf.mxu0 }
 0x5fa   :  { %v4488_v50 = vadd.f32 %v4487_v21, %v4439_v58  ;;  %v4674_v48 = vadd.f32 %v8222_v18, %v4673_v33  ;;  %5022 = vmatmul.bf16.gmra.mxu3 %v4279_v14 }
 0x5fc   :  { %vm5103_vm3 = vcmp.gt.f32.partialorder %v4488_v50, 0.0  ;;  %v5119_v20 = vmul.f32 0.01, %v4488_v50  ;;  %v4723_v8 = vadd.f32 %v4722_v47, %v4674_v48  ;;  %4968 = vmatmul.bf16.gmra.mxu2 %v4230_v35  ;;  %5066 = vmatmul.bf16.gmra.mxu0 %v8097_v34  ;;  %v4170_v47 = vpack.c.bf16 %v8167_v62, %v8167_v62  ;;  %v4732_v48 = vpop.f32.mrf.mxu1 }
 0x5fd   :  { %v4495_v0 = vpop.f32.mrf.mxu3 }
 0x5fe   :  { %v5135_v41 = vsel %vm5103_vm3, %v4488_v50, %v5119_v20  ;;  %vm5152_vm4 = vcmp.gt.f32.partialorder %v4723_v8, 0.0  ;;  %v5168_v57 = vmul.f32 0.01, %v4723_v8  ;;  %v4218_v9 = vunpack.c.l.b16 %v4170_v47 }
 0x5ff   :  { %5263 = vst [vmem:[#allocation20 + $0x8] sm:$0xff] %v5135_v41  ;;  %v4441_v45 = vpop.f32.mrf.mxu2 }
 0x600   :  { %v5184_v54 = vsel %vm5152_vm4, %v4723_v8, %v5168_v57  ;;  %v4442_v21 = vadd.f32 %v8233_v36, %v4441_v45  ;;  %v4231_v20 = vpack.c.b16 %v4218_v9, %v4217_v31 }
 0x601   :  { %5280 = vst [vmem:[#allocation22 + $0x10] sm:$0xff] %v5184_v54  ;;  %v4675_v14 = vpop.f32.mrf.mxu0 }
 0x602   :  { %v4491_v7 = vadd.f32 %v4490_v63, %v4442_v21  ;;  %v4676_v34 = vadd.f32 %v8222_v18, %v4675_v14 }
 0x604   :  { %vm5104_vm5 = vcmp.gt.f32.partialorder %v4491_v7, 0.0  ;;  %v5120_v3 = vmul.f32 0.01, %v4491_v7  ;;  %v4725_v40 = vadd.f32 %v4724_v16, %v4676_v34 }
 0x605   :  { %v4497_v5 = vpop.f32.mrf.mxu3 }
 0x606   :  { %v5136_v42 = vsel %vm5104_vm5, %v4491_v7, %v5120_v3  ;;  %vm5153_vm6 = vcmp.gt.f32.partialorder %v4725_v40, 0.0  ;;  %v5169_v58 = vmul.f32 0.01, %v4725_v40  ;;  %v4219_v7 = vunpack.c.l.b16 %v4171_v37 }
 0x607   :  { %5264 = vst [vmem:[#allocation20 + $0x10] sm:$0xff] %v5136_v42  ;;  %v4443_v33 = vpop.f32.mrf.mxu2  ;;  %v4220_v3 = vunpack.c.l.b16 %v4172_v44 }
 0x608   :  { %v5185_v4 = vsel %vm5153_vm6, %v4725_v40, %v5169_v58  ;;  %v4444_v50 = vadd.f32 %v8233_v36, %v4443_v33 }
 0x609   :  { %5281 = vst [vmem:[#allocation22 + $0x18] sm:$0xff] %v5185_v4  ;;  %v4678_v62 = vpop.f32.mrf.mxu0  ;;  %v4232_v33 = vpack.c.b16 %v4220_v3, %v4219_v7 }
 0x60a   :  { %v4493_v63 = vadd.f32 %v4492_v15, %v4444_v50  ;;  %v4679_v35 = vadd.f32 %v8222_v18, %v4678_v62  ;;  %5027 = vmatmul.bf16.gmra.mxu3 %v4280_v52 }
 0x60c   :  { %vm5105_vm7 = vcmp.gt.f32.partialorder %v4493_v63, 0.0  ;;  %v5121_v16 = vmul.f32 0.01, %v4493_v63  ;;  %v4728_v8 = vadd.f32 %v4727_v53, %v4679_v35  ;;  %4973 = vmatmul.bf16.gmra.mxu2 %v4231_v20  ;;  %5071 = vmatmul.bf16.gmra.mxu0 %v8093_v11  ;;  %v4734_v53 = vpop.f32.mrf.mxu1 }
 0x60d   :  { %v4500_v41 = vpop.f32.mrf.mxu3 }
 0x60e   :  { %v5137_v57 = vsel %vm5105_vm7, %v4493_v63, %v5121_v16  ;;  %vm5154_vm8 = vcmp.gt.f32.partialorder %v4728_v8, 0.0  ;;  %v5170_v45 = vmul.f32 0.01, %v4728_v8 }
 0x60f   :  { %5265 = vst [vmem:[#allocation20 + $0x18] sm:$0xff] %v5137_v57  ;;  %v4446_v54 = vpop.f32.mrf.mxu2 }
 0x610   :  { %v5186_v15 = vsel %vm5154_vm8, %v4728_v8, %v5170_v45  ;;  %v4447_v21 = vadd.f32 %v8233_v36, %v4446_v54  ;;  %v4221_v45 = vunpack.c.l.b16 %v4173_v29 }
 0x611   :  { %5282 = vst [vmem:[#allocation22 + $0x20] sm:$0xff] %v5186_v15  ;;  %v4680_v1 = vpop.f32.mrf.mxu0 }
 0x612   :  { %v4496_v52 = vadd.f32 %v4495_v0, %v4447_v21  ;;  %v4681_v11 = vadd.f32 %v8222_v18, %v4680_v1 }
 0x614   :  { %vm5106_vm9 = vcmp.gt.f32.partialorder %v4496_v52, 0.0  ;;  %v5122_v14 = vmul.f32 0.01, %v4496_v52  ;;  %v4730_v47 = vadd.f32 %v4729_v22, %v4681_v11  ;;  %v4737_v50 = vpop.f32.mrf.mxu1 }
 0x615   :  { %v4502_v34 = vpop.f32.mrf.mxu3 }
 0x616   :  { %v5138_v40 = vsel %vm5106_vm9, %v4496_v52, %v5122_v14  ;;  %vm5155_vm10 = vcmp.gt.f32.partialorder %v4730_v47, 0.0  ;;  %v5171_v31 = vmul.f32 0.01, %v4730_v47 }
 0x617   :  { %5266 = vst [vmem:[#allocation20 + $0x20] sm:$0xff] %v5138_v40  ;;  %v4448_v13 = vpop.f32.mrf.mxu2 }
 0x618   :  { %v5187_v9 = vsel %vm5155_vm10, %v4730_v47, %v5171_v31  ;;  %v4449_v42 = vadd.f32 %v8233_v36, %v4448_v13 }
 0x619   :  { %5283 = vst [vmem:[#allocation22 + $0x28] sm:$0xff] %v5187_v9  ;;  %v4683_v60 = vpop.f32.mrf.mxu0 }
 0x61a   :  { %v4498_v0 = vadd.f32 %v4497_v5, %v4449_v42  ;;  %v4684_v58 = vadd.f32 %v8222_v18, %v4683_v60  ;;  %5032 = vmatmul.bf16.gmra.mxu3 %v4281_v2  ;;  %v4174_v2 = vpack.c.bf16 %v8177_v59, %v8177_v59 }
 0x61c   :  { %vm5107_vm11 = vcmp.gt.f32.partialorder %v4498_v0, 0.0  ;;  %v5123_v22 = vmul.f32 0.01, %v4498_v0  ;;  %v4733_v4 = vadd.f32 %v4732_v48, %v4684_v58  ;;  %4978 = vmatmul.bf16.gmra.mxu2 %v4232_v33  ;;  %5076 = vmatmul.bf16.gmra.mxu0 %v8086_v24  ;;  %v4222_v15 = vunpack.c.l.b16 %v4174_v2  ;;  %v4739_v1 = vpop.f32.mrf.mxu1 }
 0x61d   :  { %v4505_v62 = vpop.f32.mrf.mxu3  ;;  %v4223_v58 = vunpack.c.l.b16 %v4175_v17 }
 0x61e   :  { %v5139_v63 = vsel %vm5107_vm11, %v4498_v0, %v5123_v22  ;;  %vm5156_vm12 = vcmp.gt.f32.partialorder %v4733_v4, 0.0  ;;  %v5172_v35 = vmul.f32 0.01, %v4733_v4  ;;  %v4233_v14 = vpack.c.b16 %v4222_v15, %v4221_v45 }
 0x61f   :  { %5267 = vst [vmem:[#allocation20 + $0x28] sm:$0xff] %v5139_v63  ;;  %v4451_v5 = vpop.f32.mrf.mxu2 }
 0x620   :  { %v5188_v20 = vsel %vm5156_vm12, %v4733_v4, %v5172_v35  ;;  %v4452_v16 = vadd.f32 %v8233_v36, %v4451_v5 }
 0x621   :  { %5284 = vst [vmem:[#allocation22 + $0x30] sm:$0xff] %v5188_v20  ;;  %v4685_v26 = vpop.f32.mrf.mxu0 }
 0x622   :  { %v4501_v48 = vadd.f32 %v4500_v41, %v4452_v16  ;;  %v4686_v24 = vadd.f32 %v8222_v18, %v4685_v26 }
 0x624   :  { %vm5108_vm13 = vcmp.gt.f32.partialorder %v4501_v48, 0.0  ;;  %v5124_v8 = vmul.f32 0.01, %v4501_v48  ;;  %v4735_v57 = vadd.f32 %v4734_v53, %v4686_v24  ;;  %v4742_v9 = vpop.f32.mrf.mxu1 }
 0x625   :  { %v4507_v54 = vpop.f32.mrf.mxu3 }
 0x626   :  { %v5140_v21 = vsel %vm5108_vm13, %v4501_v48, %v5124_v8  ;;  %vm5157_vm14 = vcmp.gt.f32.partialorder %v4735_v57, 0.0  ;;  %v5173_v37 = vmul.f32 0.01, %v4735_v57 }
 0x627   :  { %5268 = vst [vmem:[#allocation20 + $0x30] sm:$0xff] %v5140_v21  ;;  %v4453_v39 = vpop.f32.mrf.mxu2 }
 0x628   :  { %v5189_v44 = vsel %vm5157_vm14, %v4735_v57, %v5173_v37  ;;  %v4454_v52 = vadd.f32 %v8233_v36, %v4453_v39 }
 0x629   :  { %5285 = vst [vmem:[#allocation22 + $0x38] sm:$0xff] %v5189_v44  ;;  %v4688_v59 = vpop.f32.mrf.mxu0 }
 0x62a   :  { %v4503_v41 = vadd.f32 %v4502_v34, %v4454_v52  ;;  %v4689_v11 = vadd.f32 %v8222_v18, %v4688_v59  ;;  %5037 = vmatmul.bf16.gmra.mxu3 %v4282_v51  ;;  %v4176_v51 = vpack.c.bf16 %v8182_v43, %v8182_v43 }
 0x62c   :  { %vm5109_vm15 = vcmp.gt.f32.partialorder %v4503_v41, 0.0  ;;  %v5125_v53 = vmul.f32 0.01, %v4503_v41  ;;  %v4738_v47 = vadd.f32 %v4737_v50, %v4689_v11  ;;  %4983 = vmatmul.bf16.gmra.mxu2 %v4233_v14  ;;  %5081 = vmatmul.bf16.gmra.mxu0 %v8079_v55  ;;  %v4224_v22 = vunpack.c.l.b16 %v4176_v51  ;;  %v4744_v16 = vpop.f32.mrf.mxu1 }
 0x62d   :  { %v4510_v7 = vpop.f32.mrf.mxu3 }
 0x62e   :  { %v5141_v3 = vsel %vm5109_vm15, %v4503_v41, %v5125_v53  ;;  %vm5158_vm0 = vcmp.gt.f32.partialorder %v4738_v47, 0.0  ;;  %v5174_v40 = vmul.f32 0.01, %v4738_v47  ;;  %v4234_v20 = vpack.c.b16 %v4224_v22, %v4223_v58 }
 0x62f   :  { %5269 = vst [vmem:[#allocation20 + $0x38] sm:$0xff] %v5141_v3  ;;  %v4456_v31 = vpop.f32.mrf.mxu2 }
 0x630   :  { %v5190_v34 = vsel %vm5158_vm0, %v4738_v47, %v5174_v40  ;;  %v4457_v13 = vadd.f32 %v8233_v36, %v4456_v31 }
 0x631   :  { %5286 = vst [vmem:[#allocation22 + $0x40] sm:$0xff] %v5190_v34  ;;  %v4690_v49 = vpop.f32.mrf.mxu0 }
 0x632   :  { %v4506_v42 = vadd.f32 %v4505_v62, %v4457_v13  ;;  %v4691_v55 = vadd.f32 %v8222_v18, %v4690_v49 }
 0x634   :  { %vm5110_vm1 = vcmp.gt.f32.partialorder %v4506_v42, 0.0  ;;  %v5126_v60 = vmul.f32 0.01, %v4506_v42  ;;  %v4740_v0 = vadd.f32 %v4739_v1, %v4691_v55  ;;  %v4747_v37 = vpop.f32.mrf.mxu1  ;;  %v4225_v1 = vunpack.c.l.b16 %v4177_v32 }
 0x635   :  { %v4512_v33 = vpop.f32.mrf.mxu3 }
 0x636   :  { %v5142_v4 = vsel %vm5110_vm1, %v4506_v42, %v5126_v60  ;;  %vm5159_vm2 = vcmp.gt.f32.partialorder %v4740_v0, 0.0  ;;  %v5175_v50 = vmul.f32 0.01, %v4740_v0  ;;  %v4227_v60 = vunpack.c.l.b16 %v4179_v10 }
 0x637   :  { %5270 = vst [vmem:[#allocation20 + $0x40] sm:$0xff] %v5142_v4  ;;  %v4458_v63 = vpop.f32.mrf.mxu2 }
 0x638   :  { %v5191_v61 = vsel %vm5159_vm2, %v4740_v0, %v5175_v50  ;;  %v4459_v35 = vadd.f32 %v8233_v36, %v4458_v63 }
 0x639   :  { %5287 = vst [vmem:[#allocation22 + $0x48] sm:$0xff] %v5191_v61  ;;  %v4693_v5 = vpop.f32.mrf.mxu0 }
 0x63a   :  { %v4508_v43 = vadd.f32 %v4507_v54, %v4459_v35  ;;  %v4694_v62 = vadd.f32 %v8222_v18, %v4693_v5  ;;  %5042 = vmatmul.bf16.gmra.mxu3 %v4283_v12  ;;  %v4178_v12 = vpack.c.bf16 %v8192_v30, %v8192_v30 }
 0x63c   :  { %vm5111_vm3 = vcmp.gt.f32.partialorder %v4508_v43, 0.0  ;;  %v5127_v29 = vmul.f32 0.01, %v4508_v43  ;;  %v4743_v26 = vadd.f32 %v4742_v9, %v4694_v62  ;;  %4988 = vmatmul.bf16.gmra.mxu2 %v4234_v20  ;;  %5086 = vmatmul.bf16.gmra.mxu0 %v8071_v23  ;;  %v4226_v44 = vunpack.c.l.b16 %v4178_v12  ;;  %v4749_v13 = vpop.f32.mrf.mxu1 }
 0x63d   :  { %v4515_v2 = vpop.f32.mrf.mxu3 }
 0x63e   :  { %v5143_v48 = vsel %vm5111_vm3, %v4508_v43, %v5127_v29  ;;  %vm5160_vm4 = vcmp.gt.f32.partialorder %v4743_v26, 0.0  ;;  %v5176_v24 = vmul.f32 0.01, %v4743_v26  ;;  %v4235_v47 = vpack.c.b16 %v4226_v44, %v4225_v1 }
 0x63f   :  { %5271 = vst [vmem:[#allocation20 + $0x48] sm:$0xff] %v5143_v48  ;;  %v4461_v8 = vpop.f32.mrf.mxu2 }
 0x640   :  { %v5192_v57 = vsel %vm5160_vm4, %v4743_v26, %v5176_v24  ;;  %v4462_v45 = vadd.f32 %v8233_v36, %v4461_v8 }
 0x641   :  { %5288 = vst [vmem:[#allocation22 + $0x50] sm:$0xff] %v5192_v57  ;;  %v4695_v19 = vpop.f32.mrf.mxu0 }
 0x642   :  { %v4511_v54 = vadd.f32 %v4510_v7, %v4462_v45  ;;  %v4696_v23 = vadd.f32 %v8222_v18, %v4695_v19 }
 0x644   :  { %vm5112_vm5 = vcmp.gt.f32.partialorder %v4511_v54, 0.0  ;;  %v5128_v15 = vmul.f32 0.01, %v4511_v54  ;;  %v4745_v21 = vadd.f32 %v4744_v16, %v4696_v23  ;;  %v4752_v63 = vpop.f32.mrf.mxu1 }
 0x645   :  { %v4517_v39 = vpop.f32.mrf.mxu3 }
 0x646   :  { %v5144_v52 = vsel %vm5112_vm5, %v4511_v54, %v5128_v15  ;;  %vm5161_vm6 = vcmp.gt.f32.partialorder %v4745_v21, 0.0  ;;  %v5177_v59 = vmul.f32 0.01, %v4745_v21 }
 0x647   :  { %5272 = vst [vmem:[#allocation20 + $0x50] sm:$0xff] %v5144_v52  ;;  %v4463_v25 = vpop.f32.mrf.mxu2 }
 0x648   :  { %v5193_v41 = vsel %vm5161_vm6, %v4745_v21, %v5177_v59  ;;  %v4464_v11 = vadd.f32 %v8233_v36, %v4463_v25 }
 0x649   :  { %5289 = vst [vmem:[#allocation22 + $0x58] sm:$0xff] %v5193_v41  ;;  %v4698_v30 = vpop.f32.mrf.mxu0 }
 0x64a   :  { %v4513_v14 = vadd.f32 %v4512_v33, %v4464_v11  ;;  %v4699_v53 = vadd.f32 %v8222_v18, %v4698_v30  ;;  %5047 = vmatmul.bf16.gmra.mxu3 %v4284_v38  ;;  %v4180_v38 = vpack.c.bf16 %v8209_v6, %v8209_v6 }
 0x64c   :  { %vm5113_vm7 = vcmp.gt.f32.partialorder %v4513_v14, 0.0  ;;  %v5129_v7 = vmul.f32 0.01, %v4513_v14  ;;  %v4748_v3 = vadd.f32 %v4747_v37, %v4699_v53  ;;  %4993 = vmatmul.bf16.gmra.mxu2 %v4235_v47  ;;  %5091 = vmatmul.bf16.gmra.mxu0 %v8062_v46  ;;  %v4228_v58 = vunpack.c.l.b16 %v4180_v38  ;;  %v4754_v45 = vpop.f32.mrf.mxu1 }
 0x64d   :  { %v4520_v40 = vpop.f32.mrf.mxu3 }
 0x64e   :  { %v5145_v31 = vsel %vm5113_vm7, %v4513_v14, %v5129_v7  ;;  %vm5162_vm8 = vcmp.gt.f32.partialorder %v4748_v3, 0.0  ;;  %v5178_v34 = vmul.f32 0.01, %v4748_v3  ;;  %v4236_v5 = vpack.c.b16 %v4228_v58, %v4227_v60 }
 0x64f   :  { %5273 = vst [vmem:[#allocation20 + $0x58] sm:$0xff] %v5145_v31  ;;  %v4466_v9 = vpop.f32.mrf.mxu2 }
 0x650   :  { %v5194_v17 = vsel %vm5162_vm8, %v4748_v3, %v5178_v34  ;;  %v4467_v49 = vadd.f32 %v8233_v36, %v4466_v9 }
 0x651   :  { %5290 = vst [vmem:[#allocation22 + $0x60] sm:$0xff] %v5194_v17  ;;  %v4700_v27 = vpop.f32.mrf.mxu0 }
 0x652   :  { %v4516_v51 = vadd.f32 %v4515_v2, %v4467_v49  ;;  %v4701_v46 = vadd.f32 %v8222_v18, %v4700_v27 }
 0x654   :  { %vm5114_vm9 = vcmp.gt.f32.partialorder %v4516_v51, 0.0  ;;  %v5130_v42 = vmul.f32 0.01, %v4516_v51  ;;  %v4750_v55 = vadd.f32 %v4749_v13, %v4701_v46 }
 0x655   :  { %v4522_v0 = vpop.f32.mrf.mxu3 }
 0x656   :  { %v5146_v33 = vsel %vm5114_vm9, %v4516_v51, %v5130_v42  ;;  %vm5163_vm10 = vcmp.gt.f32.partialorder %v4750_v55, 0.0  ;;  %v5179_v22 = vmul.f32 0.01, %v4750_v55 }
 0x657   :  { %5274 = vst [vmem:[#allocation20 + $0x60] sm:$0xff] %v5146_v33  ;;  %v4468_v4 = vpop.f32.mrf.mxu2 }
 0x658   :  { %v5195_v56 = vsel %vm5163_vm10, %v4750_v55, %v5179_v22  ;;  %v4469_v50 = vadd.f32 %v8233_v36, %v4468_v4 }
 0x659   :  { %5291 = vst [vmem:[#allocation22 + $0x68] sm:$0xff] %v5195_v56  ;;  %v4703_v6 = vpop.f32.mrf.mxu0 }
 0x65a   :  { %v4518_v61 = vadd.f32 %v4517_v39, %v4469_v50  ;;  %v4704_v35 = vadd.f32 %v8222_v18, %v4703_v6 }
 0x65c   :  { %vm5115_vm11 = vcmp.gt.f32.partialorder %v4518_v61, 0.0  ;;  %v5131_v43 = vmul.f32 0.01, %v4518_v61  ;;  %v4753_v62 = vadd.f32 %v4752_v63, %v4704_v35  ;;  %4998 = vmatmul.bf16.gmra.mxu2 %v4236_v5  ;;  %5096 = vmatmul.bf16.gmra.mxu0 %v8053_v28 }
 0x65d   :  { %v5013_v20 = vpop.f32.mrf.mxu3 }
 0x65e   :  { %v5147_v16 = vsel %vm5115_vm11, %v4518_v61, %v5131_v43  ;;  %vm5164_vm12 = vcmp.gt.f32.partialorder %v4753_v62, 0.0  ;;  %v5180_v29 = vmul.f32 0.01, %v4753_v62 }
 0x65f   :  { %5275 = vst [vmem:[#allocation20 + $0x68] sm:$0xff] %v5147_v16  ;;  %v4471_v26 = vpop.f32.mrf.mxu2 }
 0x660   :  { %v5196_v2 = vsel %vm5164_vm12, %v4753_v62, %v5180_v29  ;;  %v4472_v48 = vadd.f32 %v8233_v36, %v4471_v26 }
 0x661   :  { %5292 = vst [vmem:[#allocation22 + $0x70] sm:$0xff] %v5196_v2  ;;  %v4705_v24 = vpop.f32.mrf.mxu0 }
 0x662   :  { %v4521_v8 = vadd.f32 %v4520_v40, %v4472_v48  ;;  %v4706_v57 = vadd.f32 %v8222_v18, %v4705_v24  ;;  %v8321_v18 = vld [vmem:[%s8369_s12 + $0x2] ss:$0 sm:$0xff]  ;;  %s6943_s12 = smov [#allocation22]  }
 0x663   :  { %s5324_s30 = sshll.u32 %s6943_s12, 4  ;;  %s5325_s30 = int_to_ptr.vmem [resolvable:$true] %s5324_s30 }
 0x664   :  { %vm5116_vm13 = vcmp.gt.f32.partialorder %v4521_v8, 0.0  ;;  %v5132_v32 = vmul.f32 0.01, %v4521_v8  ;;  %v4755_v19 = vadd.f32 %v4754_v45, %v4706_v57 }
 0x665   :  { %v5015_v12 = vpop.f32.mrf.mxu3 }
 0x666   :  { %v5148_v28 = vsel %vm5116_vm13, %v4521_v8, %v5132_v32  ;;  %vm5165_vm14 = vcmp.gt.f32.partialorder %v4755_v19, 0.0  ;;  %v5181_v54 = vmul.f32 0.01, %v4755_v19 }
 0x667   :  { %5276 = vst [vmem:[#allocation20 + $0x70] sm:$0xff] %v5148_v28  ;;  %v4473_v23 = vpop.f32.mrf.mxu2 }
 0x668   :  { %v5197_v15 = vsel %vm5165_vm14, %v4755_v19, %v5181_v54  ;;  %v4474_v21 = vadd.f32 %v8233_v36, %v4473_v23 }
 0x669   :  { %5293 = vst [vmem:[#allocation22 + $0x78] sm:$0xff] %v5197_v15  ;;  %v5062_v37 = vpop.f32.mrf.mxu0 }
 0x66a   :  { %v4523_v1 = vadd.f32 %v4522_v0, %v4474_v21 }
 0x66c   :  { %vm5117_vm15 = vcmp.gt.f32.partialorder %v4523_v1, 0.0  ;;  %v5133_v39 = vmul.f32 0.01, %v4523_v1 }
 0x66d   :  { %v5018_v44 = vpop.f32.mrf.mxu3 }
 0x66e   :  { %v5149_v52 = vsel %vm5117_vm15, %v4523_v1, %v5133_v39 }
 0x66f   :  { %5277 = vst [vmem:[#allocation20 + $0x78] sm:$0xff] %v5149_v52  ;;  %v4964_v59 = vpop.f32.mrf.mxu2 }
 0x670   :  { %v4965_v36 = vadd.f32 %v8321_v18, %v4964_v59  ;;  %5319 = dma.vmem_to_hbm [thread:$0]  %s5312_s24, 2048, %s5314_s25, [#allocation21], %s6941_s28, %s6941_s28, %s6942_s29  }
 0x671   :  { %v5064_v25 = vpop.f32.mrf.mxu0  ;;  %5332 = dma.vmem_to_hbm [thread:$0]  %s5325_s30, 2048, %s5327_s9, [#allocation21], %s6941_s28, %s6941_s28, %s6942_s29  }
 0x672   :  { %v5014_v41 = vadd.f32 %v5013_v20, %v4965_v36 }
 0x674   :  { %v5063_v11 = vadd.f32 %v5062_v37, %v5014_v41 }
 0x675   :  { %v5020_v30 = vpop.f32.mrf.mxu3 }
 0x676   :  { %vm5198_vm0 = vcmp.gt.f32.partialorder %v5063_v11, 0.0  ;;  %v5214_v14 = vmul.f32 0.01, %v5063_v11 }
 0x677   :  { %v4966_v53 = vpop.f32.mrf.mxu2 }
 0x678   :  { %v5230_v47 = vsel %vm5198_vm0, %v5063_v11, %v5214_v14  ;;  %v4967_v7 = vadd.f32 %v8321_v18, %v4966_v53 }
 0x679   :  { %5246 = vst [vmem:[#allocation19] sm:$0xff] %v5230_v47  ;;  %v5067_v3 = vpop.f32.mrf.mxu0 }
 0x67a   :  { %v5016_v40 = vadd.f32 %v5015_v12, %v4967_v7 }
 0x67c   :  { %v5065_v31 = vadd.f32 %v5064_v25, %v5016_v40 }
 0x67d   :  { %v5023_v34 = vpop.f32.mrf.mxu3 }
 0x67e   :  { %vm5199_vm1 = vcmp.gt.f32.partialorder %v5065_v31, 0.0  ;;  %v5215_v13 = vmul.f32 0.01, %v5065_v31 }
 0x67f   :  { %v4969_v9 = vpop.f32.mrf.mxu2 }
 0x680   :  { %v5231_v17 = vsel %vm5199_vm1, %v5065_v31, %v5215_v13  ;;  %v4970_v49 = vadd.f32 %v8321_v18, %v4969_v9 }
 0x681   :  { %5247 = vst [vmem:[#allocation19 + $0x8] sm:$0xff] %v5231_v17  ;;  %v5069_v10 = vpop.f32.mrf.mxu0 }
 0x682   :  { %v5019_v27 = vadd.f32 %v5018_v44, %v4970_v49 }
 0x684   :  { %v5068_v38 = vadd.f32 %v5067_v3, %v5019_v27 }
 0x685   :  { %v5025_v51 = vpop.f32.mrf.mxu3 }
 0x686   :  { %vm5200_vm2 = vcmp.gt.f32.partialorder %v5068_v38, 0.0  ;;  %v5216_v46 = vmul.f32 0.01, %v5068_v38 }
 0x687   :  { %v4971_v42 = vpop.f32.mrf.mxu2 }
 0x688   :  { %v5232_v55 = vsel %vm5200_vm2, %v5068_v38, %v5216_v46  ;;  %v4972_v60 = vadd.f32 %v8321_v18, %v4971_v42 }
 0x689   :  { %5248 = vst [vmem:[#allocation19 + $0x10] sm:$0xff] %v5232_v55  ;;  %v5072_v0 = vpop.f32.mrf.mxu0 }
 0x68a   :  { %v5021_v58 = vadd.f32 %v5020_v30, %v4972_v60 }
 0x68c   :  { %v5070_v33 = vadd.f32 %v5069_v10, %v5021_v58 }
 0x68d   :  { %v5028_v56 = vpop.f32.mrf.mxu3 }
 0x68e   :  { %vm5201_vm3 = vcmp.gt.f32.partialorder %v5070_v33, 0.0  ;;  %v5217_v22 = vmul.f32 0.01, %v5070_v33 }
 0x68f   :  { %v4974_v4 = vpop.f32.mrf.mxu2 }
 0x690   :  { %v5233_v50 = vsel %vm5201_vm3, %v5070_v33, %v5217_v22  ;;  %v4975_v63 = vadd.f32 %v8321_v18, %v4974_v4 }
 0x691   :  { %5249 = vst [vmem:[#allocation19 + $0x18] sm:$0xff] %v5233_v50  ;;  %v5074_v6 = vpop.f32.mrf.mxu0 }
 0x692   :  { %v5024_v61 = vadd.f32 %v5023_v34, %v4975_v63 }
 0x694   :  { %v5073_v35 = vadd.f32 %v5072_v0, %v5024_v61 }
 0x695   :  { %v5030_v29 = vpop.f32.mrf.mxu3 }
 0x696   :  { %vm5202_vm4 = vcmp.gt.f32.partialorder %v5073_v35, 0.0  ;;  %v5218_v5 = vmul.f32 0.01, %v5073_v35 }
 0x697   :  { %v4976_v43 = vpop.f32.mrf.mxu2 }
 0x698   :  { %v5234_v62 = vsel %vm5202_vm4, %v5073_v35, %v5218_v5  ;;  %v4977_v20 = vadd.f32 %v8321_v18, %v4976_v43 }
 0x699   :  { %5250 = vst [vmem:[#allocation19 + $0x20] sm:$0xff] %v5234_v62  ;;  %v5077_v16 = vpop.f32.mrf.mxu0 }
 0x69a   :  { %v5026_v26 = vadd.f32 %v5025_v51, %v4977_v20 }
 0x69c   :  { %v5075_v2 = vadd.f32 %v5074_v6, %v5026_v26 }
 0x69d   :  { %v5033_v19 = vpop.f32.mrf.mxu3 }
 0x69e   :  { %vm5203_vm5 = vcmp.gt.f32.partialorder %v5075_v2, 0.0  ;;  %v5219_v48 = vmul.f32 0.01, %v5075_v2 }
 0x69f   :  { %v4979_v24 = vpop.f32.mrf.mxu2 }
 0x6a0   :  { %v5235_v8 = vsel %vm5203_vm5, %v5075_v2, %v5219_v48  ;;  %v4980_v57 = vadd.f32 %v8321_v18, %v4979_v24 }
 0x6a1   :  { %5251 = vst [vmem:[#allocation19 + $0x28] sm:$0xff] %v5235_v8  ;;  %v5079_v45 = vpop.f32.mrf.mxu0 }
 0x6a2   :  { %v5029_v32 = vadd.f32 %v5028_v56, %v4980_v57 }
 0x6a4   :  { %v5078_v12 = vadd.f32 %v5077_v16, %v5029_v32 }
 0x6a5   :  { %v5035_v39 = vpop.f32.mrf.mxu3 }
 0x6a6   :  { %vm5204_vm6 = vcmp.gt.f32.partialorder %v5078_v12, 0.0  ;;  %v5220_v28 = vmul.f32 0.01, %v5078_v12 }
 0x6a7   :  { %v4981_v54 = vpop.f32.mrf.mxu2 }
 0x6a8   :  { %v5236_v23 = vsel %vm5204_vm6, %v5078_v12, %v5220_v28  ;;  %v4982_v15 = vadd.f32 %v8321_v18, %v4981_v54 }
 0x6a9   :  { %5252 = vst [vmem:[#allocation19 + $0x30] sm:$0xff] %v5236_v23  ;;  %v5082_v21 = vpop.f32.mrf.mxu0 }
 0x6aa   :  { %v5031_v37 = vadd.f32 %v5030_v29, %v4982_v15 }
 0x6ac   :  { %v5080_v1 = vadd.f32 %v5079_v45, %v5031_v37 }
 0x6ad   :  { %v5038_v53 = vpop.f32.mrf.mxu3 }
 0x6ae   :  { %vm5205_vm7 = vcmp.gt.f32.partialorder %v5080_v1, 0.0  ;;  %v5221_v44 = vmul.f32 0.01, %v5080_v1 }
 0x6af   :  { %v4984_v52 = vpop.f32.mrf.mxu2 }
 0x6b0   :  { %v5237_v59 = vsel %vm5205_vm7, %v5080_v1, %v5221_v44  ;;  %v4985_v36 = vadd.f32 %v8321_v18, %v4984_v52 }
 0x6b1   :  { %5253 = vst [vmem:[#allocation19 + $0x38] sm:$0xff] %v5237_v59  ;;  %v5084_v25 = vpop.f32.mrf.mxu0 }
 0x6b2   :  { %v5034_v41 = vadd.f32 %v5033_v19, %v4985_v36 }
 0x6b4   :  { %v5083_v11 = vadd.f32 %v5082_v21, %v5034_v41 }
 0x6b5   :  { %v5040_v49 = vpop.f32.mrf.mxu3 }
 0x6b6   :  { %vm5206_vm8 = vcmp.gt.f32.partialorder %v5083_v11, 0.0  ;;  %v5222_v30 = vmul.f32 0.01, %v5083_v11 }
 0x6b7   :  { %v4986_v14 = vpop.f32.mrf.mxu2 }
 0x6b8   :  { %v5238_v47 = vsel %vm5206_vm8, %v5083_v11, %v5222_v30  ;;  %v4987_v7 = vadd.f32 %v8321_v18, %v4986_v14 }
 0x6b9   :  { %5254 = vst [vmem:[#allocation19 + $0x40] sm:$0xff] %v5238_v47  ;;  %v5087_v3 = vpop.f32.mrf.mxu0 }
 0x6ba   :  { %v5036_v40 = vadd.f32 %v5035_v39, %v4987_v7 }
 0x6bc   :  { %v5085_v31 = vadd.f32 %v5084_v25, %v5036_v40 }
 0x6bd   :  { %v5043_v0 = vpop.f32.mrf.mxu3 }
 0x6be   :  { %vm5207_vm9 = vcmp.gt.f32.partialorder %v5085_v31, 0.0  ;;  %v5223_v34 = vmul.f32 0.01, %v5085_v31 }
 0x6bf   :  { %v4989_v13 = vpop.f32.mrf.mxu2 }
 0x6c0   :  { %v5239_v9 = vsel %vm5207_vm9, %v5085_v31, %v5223_v34  ;;  %v4990_v17 = vadd.f32 %v8321_v18, %v4989_v13 }
 0x6c1   :  { %5255 = vst [vmem:[#allocation19 + $0x48] sm:$0xff] %v5239_v9  ;;  %v5089_v27 = vpop.f32.mrf.mxu0 }
 0x6c2   :  { %v5039_v10 = vadd.f32 %v5038_v53, %v4990_v17 }
 0x6c4   :  { %v5088_v38 = vadd.f32 %v5087_v3, %v5039_v10 }
 0x6c5   :  { %v5045_v61 = vpop.f32.mrf.mxu3 }
 0x6c6   :  { %vm5208_vm10 = vcmp.gt.f32.partialorder %v5088_v38, 0.0  ;;  %v5224_v51 = vmul.f32 0.01, %v5088_v38 }
 0x6c7   :  { %v4991_v46 = vpop.f32.mrf.mxu2 }
 0x6c8   :  { %v5240_v42 = vsel %vm5208_vm10, %v5088_v38, %v5224_v51  ;;  %v4992_v55 = vadd.f32 %v8321_v18, %v4991_v46 }
 0x6c9   :  { %5256 = vst [vmem:[#allocation19 + $0x50] sm:$0xff] %v5240_v42  ;;  %v5092_v33 = vpop.f32.mrf.mxu0 }
 0x6ca   :  { %v5041_v60 = vadd.f32 %v5040_v49, %v4992_v55 }
 0x6cc   :  { %v5090_v58 = vadd.f32 %v5089_v27, %v5041_v60 }
 0x6cd   :  { %v5048_v48 = vpop.f32.mrf.mxu3 }
 0x6ce   :  { %vm5209_vm11 = vcmp.gt.f32.partialorder %v5090_v58, 0.0  ;;  %v5225_v22 = vmul.f32 0.01, %v5090_v58 }
 0x6cf   :  { %v4994_v4 = vpop.f32.mrf.mxu2 }
 0x6d0   :  { %v5241_v56 = vsel %vm5209_vm11, %v5090_v58, %v5225_v22  ;;  %v4995_v50 = vadd.f32 %v8321_v18, %v4994_v4 }
 0x6d1   :  { %5257 = vst [vmem:[#allocation19 + $0x58] sm:$0xff] %v5241_v56  ;;  %v5094_v5 = vpop.f32.mrf.mxu0 }
 0x6d2   :  { %v5044_v63 = vadd.f32 %v5043_v0, %v4995_v50 }
 0x6d4   :  { %v5093_v6 = vadd.f32 %v5092_v33, %v5044_v63 }
 0x6d5   :  { %v5050_v23 = vpop.f32.mrf.mxu3 }
 0x6d6   :  { %vm5210_vm12 = vcmp.gt.f32.partialorder %v5093_v6, 0.0  ;;  %v5226_v35 = vmul.f32 0.01, %v5093_v6 }
 0x6d7   :  { %v4996_v43 = vpop.f32.mrf.mxu2 }
 0x6d8   :  { %v5242_v62 = vsel %vm5210_vm12, %v5093_v6, %v5226_v35  ;;  %v4997_v20 = vadd.f32 %v8321_v18, %v4996_v43 }
 0x6d9   :  { %5258 = vst [vmem:[#allocation19 + $0x60] sm:$0xff] %v5242_v62  ;;  %v5097_v57 = vpop.f32.mrf.mxu0 }
 0x6da   :  { %v5046_v16 = vadd.f32 %v5045_v61, %v4997_v20 }
 0x6dc   :  { %v5095_v29 = vadd.f32 %v5094_v5, %v5046_v16 }
 0x6de   :  { %vm5211_vm13 = vcmp.gt.f32.partialorder %v5095_v29, 0.0  ;;  %v5227_v26 = vmul.f32 0.01, %v5095_v29 }
 0x6df   :  { %v4999_v2 = vpop.f32.mrf.mxu2 }
 0x6e0   :  { %v5243_v24 = vsel %vm5211_vm13, %v5095_v29, %v5227_v26  ;;  %v5000_v8 = vadd.f32 %v8321_v18, %v4999_v2 }
 0x6e1   :  { %5259 = vst [vmem:[#allocation19 + $0x68] sm:$0xff] %v5243_v24  ;;  %v5099_v21 = vpop.f32.mrf.mxu0 }
 0x6e2   :  { %v5049_v45 = vadd.f32 %v5048_v48, %v5000_v8 }
 0x6e4   :  { %v5098_v32 = vadd.f32 %v5097_v57, %v5049_v45 }
 0x6e6   :  { %vm5212_vm14 = vcmp.gt.f32.partialorder %v5098_v32, 0.0  ;;  %v5228_v19 = vmul.f32 0.01, %v5098_v32 }
 0x6e7   :  { %v5001_v12 = vpop.f32.mrf.mxu2 }
 0x6e8   :  { %v5244_v28 = vsel %vm5212_vm14, %v5098_v32, %v5228_v19  ;;  %v5002_v54 = vadd.f32 %v8321_v18, %v5001_v12 }
 0x6e9   :  { %5260 = vst [vmem:[#allocation19 + $0x70] sm:$0xff] %v5244_v28 }
 0x6ea   :  { %v5051_v15 = vadd.f32 %v5050_v23, %v5002_v54 }
 0x6ec   :  { %v5100_v37 = vadd.f32 %v5099_v21, %v5051_v15 }
 0x6ee   :  { %vm5213_vm15 = vcmp.gt.f32.partialorder %v5100_v37, 0.0  ;;  %v5229_v1 = vmul.f32 0.01, %v5100_v37 }
 0x6f0   :  { %v5245_v39 = vsel %vm5213_vm15, %v5100_v37, %v5229_v1 }
 0x6f1   :  { %5261 = vst [vmem:[#allocation19 + $0x78] sm:$0xff] %v5245_v39 }
 0x6f2   :  { %5306 = dma.vmem_to_hbm [thread:$0]  %s5299_s26, 2048, %s5301_s0, [#allocation4], %s6941_s28, %s6941_s28, %s6942_s29  }
 0x6f3   :  { %6924 = dma.done.wait [#allocation4], 2048  }
 0x6f4   :  { %6925 = vsyncadd [#allocation4], 4294965248 }
 0x6f5   :  { %6926 = dma.done.wait [#allocation21], 4096  }
 0x6f6   :  { %6927 = vsyncadd [#allocation21], 4294963200 }
 0x6f7   :  { %5345 = vsyncpa [#allocation3], 1 }
 0x6f8   :  { %5346 = vsyncpa [#allocation6], 1 }
 0x6f9   :  { %5347 = vsyncpa [#allocation9], 1 }
 0x6fa   :  { %5348 = vsyncpa [#allocation12], 1 }
 0x6fb   :  { %5349 = vsyncpa [#allocation15], 1 }
 0x6fc   :  { %5350 = vsyncpa [#allocation18], 1 }
 0x6fd   :  { %5351 = vsyncpa [#allocation4], 1 }
 0x6fe   :  { %5352 = vsyncpa [#allocation21], 1 }

</bundles_post_ra>
